<compile_context>
chip_gen: v6e
topology: v6e:2x2x1
jax: 0.10.0
libtpu: 0.0.40
codegen_flags: <defaults>
</compile_context>

<pallas_src>
import functools

import jax
import jax.numpy as jnp
from jax.experimental import pallas as pl
from jax.experimental.pallas import tpu as pltpu


# ----------------------------------------------------------------------------
# Config
# ----------------------------------------------------------------------------
_ROW_TILE = 512                       # ~85% of HBM roofline for mem-bound row kernels
_VMEM_LIMIT = 32 * 1024 * 1024        # real footprint <8 MiB/step; plenty of headroom on v7x
_LN_EPS = 1e-5                        # torch.nn.LayerNorm default
_SQRT_HALF = 0.7071067811865476


def _cp(dimension_semantics):
    return pltpu.CompilerParams(
        dimension_semantics=dimension_semantics,
        vmem_limit_bytes=_VMEM_LIMIT,
    )


def _row_tile(m):
    """Row-tile size: 512 when large; otherwise split into >=2 tiles (multiples of 8)
    so both v7x TensorCores get work along the parallel grid axis."""
    if m > _ROW_TILE:
        return _ROW_TILE
    if m <= 8:
        return m
    half = -(-m // 2)            # ceil(m/2)
    half = -(-half // 8) * 8     # round up to sublane multiple
    return min(m, half)


# ----------------------------------------------------------------------------
# In-kernel math helpers (all elementwise math in f32 — v5e has no bf16 VPU/EUP)
# ----------------------------------------------------------------------------
def _erf_approx(x):
    # Abramowitz & Stegun 7.1.26, max abs error ~1.5e-7 (matches torch's exact erf-GELU).
    # TODO(synk): switch to tanh-approx GELU (EUP slot) if bundle dumps show VALU binding.
    a1, a2, a3, a4, a5 = 0.254829592, -0.284496736, 1.421413741, -1.453152027, 1.061405429
    p = 0.3275911
    sign = jnp.where(x >= 0.0, 1.0, -1.0)
    ax = jnp.abs(x)
    t = 1.0 / (1.0 + p * ax)
    poly = ((((a5 * t + a4) * t + a3) * t + a2) * t + a1) * t
    return sign * (1.0 - poly * jnp.exp(-ax * ax))


def _gelu_exact(x):
    # PyTorch F.gelu default (erf-based)
    return 0.5 * x * (1.0 + _erf_approx(x * _SQRT_HALF))


def _sigmoid(x):
    return 1.0 / (1.0 + jnp.exp(-x))      # exp goes to EUP slot


def _layernorm_f32(x, g, b):
    mu = jnp.mean(x, axis=-1, keepdims=True)
    var = jnp.mean(jnp.square(x - mu), axis=-1, keepdims=True)
    return (x - mu) * jax.lax.rsqrt(var + _LN_EPS) * g + b


# ----------------------------------------------------------------------------
# Kernels (all matmuls: bf16 operands, f32 accumulation)
# ----------------------------------------------------------------------------
def _linear_kernel(x_ref, w_ref, b_ref, o_ref):
    x = x_ref[...].astype(jnp.bfloat16)
    o_ref[...] = jnp.dot(x, w_ref[...], preferred_element_type=jnp.float32) + b_ref[...]


def _linear_nobias_kernel(x_ref, w_ref, o_ref):
    x = x_ref[...].astype(jnp.bfloat16)
    o_ref[...] = jnp.dot(x, w_ref[...],
                         preferred_element_type=jnp.float32).astype(o_ref.dtype)


def _layernorm_kernel(x_ref, g_ref, b_ref, o_ref):
    o_ref[...] = _layernorm_f32(x_ref[...], g_ref[...], b_ref[...])


def _ln_qkv_kernel(x_ref, g_ref, b_ref, w_ref, o_ref):
    # Fused LayerNorm + single concatenated q|k|v projection (one (D, 3*inner) matmul).
    xn = _layernorm_f32(x_ref[...], g_ref[...], b_ref[...]).astype(jnp.bfloat16)
    o_ref[...] = jnp.dot(xn, w_ref[...],
                         preferred_element_type=jnp.float32).astype(o_ref.dtype)


def _ln_ff_kernel(x_ref, g_ref, b_ref, w_in_ref, b_in_ref, w_out_ref, b_out_ref, o_ref,
                  *, ff_inner):
    # Fully fused GEGLU feed-forward:
    #   out = (val * gelu(gate)) @ W_out + b_out + x,  [val|gate] = LN(x) @ W_in + b_in
    # The (tm, ff_inner) hidden activation never leaves VMEM.
    x = x_ref[...]
    xn = _layernorm_f32(x, g_ref[...], b_ref[...]).astype(jnp.bfloat16)
    hid = jnp.dot(xn, w_in_ref[...], preferred_element_type=jnp.float32) + b_in_ref[...]
    val = hid[:, :ff_inner]
    gate = hid[:, ff_inner:]
    hidden = (val * _gelu_exact(gate)).astype(jnp.bfloat16)
    y = jnp.dot(hidden, w_out_ref[...], preferred_element_type=jnp.float32) + b_out_ref[...]
    o_ref[...] = (y + x).astype(o_ref.dtype)


def _proj_out_kernel(x_ref, w_ref, b_ref, xin_ref, o_ref, *, free_distance):
    # Fused zero-init output projection + scaled sigmoid + outer residual.
    x = x_ref[...].astype(jnp.bfloat16)
    y = jnp.dot(x, w_ref[...], preferred_element_type=jnp.float32) + b_ref[...]
    o_ref[...] = 2.0 * free_distance * _sigmoid(y) - free_distance + xin_ref[...]


def _attn_kernel(q_ref, k_ref, v_ref, res_ref, wo_ref, bo_ref, o_ref,
                 m_sc, l_sc, acc_sc, *, n_heads, d_head, kv_len, ragged_kv):
    # Flash-style attention, heads handled in-kernel (static unrolled loop).
    # Grid = (B, q_tiles, kv_tiles); kv axis is the (arbitrary) reduction axis.
    # The to_out projection + residual add are fused into the finalize branch.
    # Softmax scale is pre-folded into Wq (so q arrives pre-scaled).
    ki = pl.program_id(2)

    @pl.when(ki == 0)
    def _init():
        m_sc[...] = jnp.full(m_sc.shape, -jnp.inf, dtype=jnp.float32)
        l_sc[...] = jnp.zeros(l_sc.shape, dtype=jnp.float32)
        acc_sc[...] = jnp.zeros(acc_sc.shape, dtype=jnp.float32)

    q = q_ref[0]          # (tq, H*Dh) bf16
    k = k_ref[0]          # (tk, H*Dh) bf16
    v = v_ref[0]          # (tk, H*Dh) bf16
    tk = k.shape[0]

    # Ragged last KV tile handling is only emitted when statically needed; the V mask is
    # applied once for the whole slab (not per head), sim gets a (1, tk) -inf bias add.
    # NOTE: pl.cdiv guarantees every kv tile has >=1 valid column, so -inf masking cannot
    # produce exp(-inf - -inf) NaNs in valid rows.
    if ragged_kv:
        col = ki * tk + jax.lax.broadcasted_iota(jnp.int32, (1, tk), 1)
        sim_bias = jnp.where(col < kv_len, jnp.float32(0.0), jnp.float32(-jnp.inf))
        row = ki * tk + jax.lax.broadcasted_iota(jnp.int32, (tk, 1), 0)
        v = jnp.where(row < kv_len, v, 0).astype(jnp.bfloat16)   # padded rows may hold garbage

    # TODO(synk): per-head 32-lane slices + (H, tq, 1)/(H, tq, 32) scratch are not lane-dense;
    # a head-major relayout was evaluated but rejected (Dh=32-lane blocks violate/underfill the
    # 128-lane constraint).  Verify in a bundle dump whether these slices emit relayout ops.
    for h in range(n_heads):
        sl = slice(h * d_head, (h + 1) * d_head)
        qh = q[:, sl]
        kh = k[:, sl]
        # Contract the Dh axis directly — no explicit kh.T (keeps the XLU free).
        sim = jax.lax.dot_general(qh, kh, (((1,), (1,)), ((), ())),
                                  preferred_element_type=jnp.float32)        # (tq, tk)
        if ragged_kv:
            sim = sim + sim_bias

        m_prev = m_sc[h, :, :]
        m_new = jnp.maximum(m_prev, jnp.max(sim, axis=-1, keepdims=True))
        alpha = jnp.exp(m_prev - m_new)
        p = jnp.exp(sim - m_new)

        l_sc[h, :, :] = alpha * l_sc[h, :, :] + jnp.sum(p, axis=-1, keepdims=True)
        acc_sc[h, :, :] = alpha * acc_sc[h, :, :] + jnp.dot(
            p.astype(jnp.bfloat16), v[:, sl], preferred_element_type=jnp.float32)
        m_sc[h, :, :] = m_new

    @pl.when(ki == pl.num_programs(2) - 1)
    def _finalize():
        # approx reciprocal (EUP): small relative error vs exact 1/l — accepted deviation.
        outs = [acc_sc[h, :, :] * pl.reciprocal(l_sc[h, :, :], approx=True)
                for h in range(n_heads)]
        o_heads = jnp.concatenate(outs, axis=-1).astype(jnp.bfloat16)        # (tq, H*Dh)
        # Fused to_out projection + bias + residual: write the updated residual stream.
        y = jnp.dot(o_heads, wo_ref[...], preferred_element_type=jnp.float32) + bo_ref[...]
        o_ref[0] = (y + res_ref[0]).astype(o_ref.dtype)


# ----------------------------------------------------------------------------
# Wrappers (grid / BlockSpec plumbing)
# ----------------------------------------------------------------------------
def linear(x, w, b):
    M, K = x.shape
    N = w.shape[1]
    tm = _row_tile(M)
    return pl.pallas_call(
        _linear_kernel,
        out_shape=jax.ShapeDtypeStruct((M, N), jnp.float32),
        grid=(pl.cdiv(M, tm),),
        in_specs=[
            pl.BlockSpec((tm, K), lambda i: (i, 0)),
            pl.BlockSpec((K, N), lambda i: (0, 0)),
            pl.BlockSpec((1, N), lambda i: (0, 0)),
        ],
        out_specs=pl.BlockSpec((tm, N), lambda i: (i, 0)),
        compiler_params=_cp(("parallel",)),
    )(x, w, b.reshape(1, N))


def linear_nobias(x, w):
    M, K = x.shape
    N = w.shape[1]
    tm = _row_tile(M)
    return pl.pallas_call(
        _linear_nobias_kernel,
        out_shape=jax.ShapeDtypeStruct((M, N), jnp.bfloat16),
        grid=(pl.cdiv(M, tm),),
        in_specs=[
            pl.BlockSpec((tm, K), lambda i: (i, 0)),
            pl.BlockSpec((K, N), lambda i: (0, 0)),
        ],
        out_specs=pl.BlockSpec((tm, N), lambda i: (i, 0)),
        compiler_params=_cp(("parallel",)),
    )(x, w)


def layernorm(x, gamma, beta):
    M, D = x.shape
    tm = _row_tile(M)
    return pl.pallas_call(
        _layernorm_kernel,
        out_shape=jax.ShapeDtypeStruct((M, D), jnp.float32),
        grid=(pl.cdiv(M, tm),),
        in_specs=[
            pl.BlockSpec((tm, D), lambda i: (i, 0)),
            pl.BlockSpec((1, D), lambda i: (0, 0)),
            pl.BlockSpec((1, D), lambda i: (0, 0)),
        ],
        out_specs=pl.BlockSpec((tm, D), lambda i: (i, 0)),
        compiler_params=_cp(("parallel",)),
    )(x, gamma.reshape(1, D), beta.reshape(1, D))


def ln_qkv(x, gamma, beta, w_qkv):
    # x: (M, D); w_qkv: (D, 3*inner) -> single (M, 3*inner) bf16 q|k|v slab.
    M, D = x.shape
    N3 = w_qkv.shape[1]
    tm = _row_tile(M)
    return pl.pallas_call(
        _ln_qkv_kernel,
        out_shape=jax.ShapeDtypeStruct((M, N3), jnp.bfloat16),
        grid=(pl.cdiv(M, tm),),
        in_specs=[
            pl.BlockSpec((tm, D), lambda i: (i, 0)),
            pl.BlockSpec((1, D), lambda i: (0, 0)),
            pl.BlockSpec((1, D), lambda i: (0, 0)),
            pl.BlockSpec((D, N3), lambda i: (0, 0)),
        ],
        out_specs=pl.BlockSpec((tm, N3), lambda i: (i, 0)),
        compiler_params=_cp(("parallel",)),
    )(x, gamma.reshape(1, D), beta.reshape(1, D), w_qkv)


def ln_ff(x, gamma, beta, w_in, b_in, w_out, b_out):
    # Fully fused LN + GEGLU + out-projection + residual; returns the new residual stream.
    M, D = x.shape
    F2 = w_in.shape[1]
    ff_inner = F2 // 2
    tm = _row_tile(M)
    kernel = functools.partial(_ln_ff_kernel, ff_inner=ff_inner)
    return pl.pallas_call(
        kernel,
        out_shape=jax.ShapeDtypeStruct((M, D), jnp.float32),
        grid=(pl.cdiv(M, tm),),
        in_specs=[
            pl.BlockSpec((tm, D), lambda i: (i, 0)),
            pl.BlockSpec((1, D), lambda i: (0, 0)),
            pl.BlockSpec((1, D), lambda i: (0, 0)),
            pl.BlockSpec((D, F2), lambda i: (0, 0)),
            pl.BlockSpec((1, F2), lambda i: (0, 0)),
            pl.BlockSpec((ff_inner, D), lambda i: (0, 0)),
            pl.BlockSpec((1, D), lambda i: (0, 0)),
        ],
        out_specs=pl.BlockSpec((tm, D), lambda i: (i, 0)),
        compiler_params=_cp(("parallel",)),
    )(x, gamma.reshape(1, D), beta.reshape(1, D),
      w_in, b_in.reshape(1, F2), w_out, b_out.reshape(1, D))


def proj_out_sigmoid(x, w, b, x_in, free_distance):
    M, K = x.shape
    C = w.shape[1]
    tm = _row_tile(M)
    return pl.pallas_call(
        functools.partial(_proj_out_kernel, free_distance=free_distance),
        out_shape=jax.ShapeDtypeStruct((M, C), jnp.float32),
        grid=(pl.cdiv(M, tm),),
        in_specs=[
            pl.BlockSpec((tm, K), lambda i: (i, 0)),
            pl.BlockSpec((K, C), lambda i: (0, 0)),
            pl.BlockSpec((1, C), lambda i: (0, 0)),
            pl.BlockSpec((tm, C), lambda i: (i, 0)),
        ],
        out_specs=pl.BlockSpec((tm, C), lambda i: (i, 0)),
        compiler_params=_cp(("parallel",)),
    )(x, w, b.reshape(1, C), x_in)


def attention(q_arr, k_arr, v_arr, res, wo, bo, *, n_heads, d_head,
              q_col_block=0, k_col_block=0, v_col_block=0):
    # q/k/v may all point at the same (B, N, 3*inner) slab; the *_col_block indices select
    # 128-aligned lane windows of width inner=H*Dh.  Output is the updated residual stream
    # (to_out + residual fused in-kernel).
    inner = n_heads * d_head
    B, Nq = q_arr.shape[0], q_arr.shape[1]
    Nk = k_arr.shape[1]
    tq = _row_tile(Nq)
    tk = Nk if Nk <= _ROW_TILE else _ROW_TILE
    ragged_kv = (Nk % tk) != 0
    grid = (B, pl.cdiv(Nq, tq), pl.cdiv(Nk, tk))
    kernel = functools.partial(_attn_kernel, n_heads=n_heads, d_head=d_head,
                               kv_len=Nk, ragged_kv=ragged_kv)
    return pl.pallas_call(
        kernel,
        out_shape=jax.ShapeDtypeStruct((B, Nq, inner), jnp.float32),
        grid=grid,
        in_specs=[
            pl.BlockSpec((1, tq, inner), lambda b, qi, ki: (b, qi, q_col_block)),
            pl.BlockSpec((1, tk, inner), lambda b, qi, ki: (b, ki, k_col_block)),
            pl.BlockSpec((1, tk, inner), lambda b, qi, ki: (b, ki, v_col_block)),
            pl.BlockSpec((1, tq, inner), lambda b, qi, ki: (b, qi, 0)),   # residual stream
            pl.BlockSpec((inner, inner), lambda b, qi, ki: (0, 0)),       # to_out weight
            pl.BlockSpec((1, inner), lambda b, qi, ki: (0, 0)),           # to_out bias
        ],
        out_specs=pl.BlockSpec((1, tq, inner), lambda b, qi, ki: (b, qi, 0)),
        scratch_shapes=[
            pltpu.VMEM((n_heads, tq, 1), jnp.float32),       # running max
            pltpu.VMEM((n_heads, tq, 1), jnp.float32),       # running sum
            pltpu.VMEM((n_heads, tq, d_head), jnp.float32),  # output accumulator
        ],
        compiler_params=_cp(("parallel", "parallel", "arbitrary")),
    )(q_arr, k_arr, v_arr, res, wo, bo.reshape(1, inner))


# ----------------------------------------------------------------------------
# Full PointTransformer forward (thin JAX glue: reshapes only — weights are pre-cast)
# ----------------------------------------------------------------------------
def point_transformer_forward(x, params, *, n_heads, d_head, free_distance, context=None):
    B, N, C = x.shape
    inner = n_heads * d_head
    x_in_flat = x.reshape(B * N, C)

    h = linear(x_in_flat, params["proj_in_w"], params["proj_in_b"])        # (B*N, inner) f32

    for blk in params["blocks"]:
        # ---- x = CrossAttention(LayerNorm(x), context) + x   (context=None -> self-attn)
        if context is None:
            qkv = ln_qkv(h, blk["norm2_g"], blk["norm2_b"], blk["w_qkv"])  # (B*N, 3*inner) bf16
            qkv3 = qkv.reshape(B, N, 3 * inner)
            h = attention(qkv3, qkv3, qkv3, h.reshape(B, N, inner),
                          blk["to_out_w"], blk["to_out_b"],
                          n_heads=n_heads, d_head=d_head,
                          q_col_block=0, k_col_block=1, v_col_block=2)
        else:
            Bc, Nc, Dc = context.shape
            ctx_flat = context.reshape(Bc * Nc, Dc)
            hn = layernorm(h, blk["norm2_g"], blk["norm2_b"])
            wq = blk["w_qkv"][:, :inner]                 # scale already folded into Wq
            wk = blk["w_qkv"][:, inner:2 * inner]
            wv = blk["w_qkv"][:, 2 * inner:]
            q = linear_nobias(hn, wq).reshape(B, N, inner)
            k = linear_nobias(ctx_flat, wk).reshape(Bc, Nc, inner)
            v = linear_nobias(ctx_flat, wv).reshape(Bc, Nc, inner)
            h = attention(q, k, v, h.reshape(B, N, inner),
                          blk["to_out_w"], blk["to_out_b"],
                          n_heads=n_heads, d_head=d_head)
        h = h.reshape(B * N, inner)                                        # new residual stream

        # ---- x = GEGLU-FeedForward(LayerNorm(x)) + x    (fully fused, hidden stays in VMEM)
        h = ln_ff(h, blk["norm3_g"], blk["norm3_b"],
                  blk["ff_in_w"], blk["ff_in_b"],
                  blk["ff_out_w"], blk["ff_out_b"])

    out = proj_out_sigmoid(h, params["proj_out_w"], params["proj_out_b"],
                           x_in_flat, free_distance)
    return out.reshape(B, N, C)


# ----------------------------------------------------------------------------
# Deterministic parameter construction (shapes follow the nn.Module __init__).
# Weights are pre-cast to bf16 once here (no converts inside the jitted forward);
# the attention softmax scale d_head**-0.5 is folded into Wq.
# ----------------------------------------------------------------------------
def make_params(key, in_channels, n_heads, d_head, depth=1, ff_mult=4):
    inner = n_heads * d_head
    ff_inner = inner * ff_mult
    scale = float(d_head) ** -0.5

    def nrm(k, shape, s=0.02):
        return (s * jax.random.normal(k, shape)).astype(jnp.float32)

    keys = jax.random.split(key, 2 + depth)
    params = {
        "proj_in_w": nrm(keys[0], (in_channels, inner)).astype(jnp.bfloat16),
        "proj_in_b": nrm(keys[1], (inner,)),
        # zero_module(nn.Linear(inner, in_channels)) -> zeros
        "proj_out_w": jnp.zeros((inner, in_channels), jnp.bfloat16),
        "proj_out_b": jnp.zeros((in_channels,), jnp.float32),
        "blocks": [],
    }
    for d in range(depth):
        bk = jax.random.split(keys[2 + d], 10)
        wq = nrm(bk[0], (inner, inner)) * scale        # fold softmax scale into Wq (f32, exact)
        wk = nrm(bk[1], (inner, inner))                # context_dim=None -> inner
        wv = nrm(bk[2], (inner, inner))
        params["blocks"].append(
            {
                "norm2_g": jnp.ones((inner,), jnp.float32),
                "norm2_b": jnp.zeros((inner,), jnp.float32),
                "w_qkv": jnp.concatenate([wq, wk, wv], axis=1).astype(jnp.bfloat16),
                "to_out_w": nrm(bk[3], (inner, inner)).astype(jnp.bfloat16),
                "to_out_b": nrm(bk[4], (inner,)),
                "norm3_g": jnp.ones((inner,), jnp.float32),
                "norm3_b": jnp.zeros((inner,), jnp.float32),
                # GEGLU proj: Linear(inner, 2*ff_inner), chunk order = [value | gate]
                "ff_in_w": jnp.concatenate(
                    [nrm(bk[5], (inner, ff_inner)), nrm(bk[7], (inner, ff_inner))],
                    axis=1).astype(jnp.bfloat16),
                "ff_in_b": jnp.concatenate([nrm(bk[6], (ff_inner,)), nrm(bk[8], (ff_inner,))]),
                "ff_out_w": nrm(bk[9], (ff_inner, inner)).astype(jnp.bfloat16),
                "ff_out_b": jnp.zeros((inner,), jnp.float32),
            }
        )
    return params


# ----------------------------------------------------------------------------
if __name__ == "__main__":
    B, N, C_IN = 2, 16, 4
    N_HEADS, D_HEAD, DEPTH = 4, 32, 1      # inner = 128 -> lane-dense activations
    FREE_DISTANCE = 0.2

    root = jax.random.PRNGKey(0)
    k_param, k_x = jax.random.split(root)

    params = make_params(k_param, C_IN, N_HEADS, D_HEAD, depth=DEPTH)
    x = jax.random.normal(k_x, (B, N, C_IN), dtype=jnp.float32)

    fwd = jax.jit(functools.partial(point_transformer_forward,
                                    n_heads=N_HEADS, d_head=D_HEAD,
                                    free_distance=FREE_DISTANCE))
    out = fwd(x, params)
    out = jax.block_until_ready(out)

    assert out.shape == (B, N, C_IN), out.shape
    assert out.dtype == jnp.float32
    assert bool(jnp.all(jnp.isfinite(out)))
    print("KERNEL_OK")
</pallas_src>

<mosaic_0001>
module attributes {stable_mosaic.version = 11 : i64} {
  func.func @_ln_qkv_kernel(%arg0: i32, %arg1: memref<16x128xf32, #tpu.memory_space<vmem>>, %arg2: memref<1x128xf32, #tpu.memory_space<vmem>>, %arg3: memref<1x128xf32, #tpu.memory_space<vmem>>, %arg4: memref<128x384xbf16, #tpu.memory_space<vmem>>, %arg5: memref<16x384xbf16, #tpu.memory_space<vmem>>) attributes {dimension_semantics = [#tpu.dimension_semantics<parallel>], iteration_bounds = array<i64: 2>, scalar_prefetch = 0 : i64, scratch_operands = 0 : i64, tpu.core_type = #tpu.core_type<tc>, window_params = [{transform_indices = @transform_0, window_bounds = array<i64: 16, 128>}, {pipeline_mode = #tpu.pipeline_mode<synchronous>, transform_indices = @transform_1, window_bounds = array<i64: 1, 128>}, {pipeline_mode = #tpu.pipeline_mode<synchronous>, transform_indices = @transform_2, window_bounds = array<i64: 1, 128>}, {pipeline_mode = #tpu.pipeline_mode<synchronous>, transform_indices = @transform_3, window_bounds = array<i64: 128, 384>}, {transform_indices = @transform_4, window_bounds = array<i64: 16, 384>}]} {
    %c0 = arith.constant 0 : index
    %c0_0 = arith.constant 0 : index
    %0 = vector.load %arg1[%c0, %c0_0] : memref<16x128xf32, #tpu.memory_space<vmem>>, vector<16x128xf32>
    %c0_1 = arith.constant 0 : index
    %c0_2 = arith.constant 0 : index
    %1 = vector.load %arg2[%c0_1, %c0_2] : memref<1x128xf32, #tpu.memory_space<vmem>>, vector<1x128xf32>
    %c0_3 = arith.constant 0 : index
    %c0_4 = arith.constant 0 : index
    %2 = vector.load %arg3[%c0_3, %c0_4] : memref<1x128xf32, #tpu.memory_space<vmem>>, vector<1x128xf32>
    %cst = arith.constant dense<0.000000e+00> : vector<16xf32>
    %3 = vector.multi_reduction <add>, %0, %cst [1] : vector<16x128xf32> to vector<16xf32>
    %4 = vector.shape_cast %3 : vector<16xf32> to vector<16x1xf32>
    %cst_5 = arith.constant 1.280000e+02 : f32
    %5 = vector.broadcast %cst_5 : f32 to vector<16x1xf32>
    %6 = arith.divf %4, %5 : vector<16x1xf32>
    %7 = vector.broadcast %6 : vector<16x1xf32> to vector<16x128xf32>
    %8 = arith.subf %0, %7 : vector<16x128xf32>
    %9 = arith.mulf %8, %8 : vector<16x128xf32>
    %cst_6 = arith.constant dense<0.000000e+00> : vector<16xf32>
    %10 = vector.multi_reduction <add>, %9, %cst_6 [1] : vector<16x128xf32> to vector<16xf32>
    %11 = vector.shape_cast %10 : vector<16xf32> to vector<16x1xf32>
    %cst_7 = arith.constant 1.280000e+02 : f32
    %12 = vector.broadcast %cst_7 : f32 to vector<16x1xf32>
    %13 = arith.divf %11, %12 : vector<16x1xf32>
    %14 = vector.broadcast %6 : vector<16x1xf32> to vector<16x128xf32>
    %15 = arith.subf %0, %14 : vector<16x128xf32>
    %cst_8 = arith.constant 9.99999974E-6 : f32
    %16 = vector.broadcast %cst_8 : f32 to vector<16x1xf32>
    %17 = arith.addf %13, %16 : vector<16x1xf32>
    %18 = math.rsqrt %17 : vector<16x1xf32>
    %19 = vector.broadcast %18 : vector<16x1xf32> to vector<16x128xf32>
    %20 = arith.mulf %15, %19 : vector<16x128xf32>
    %21 = vector.broadcast %1 : vector<1x128xf32> to vector<16x128xf32>
    %22 = arith.mulf %20, %21 : vector<16x128xf32>
    %23 = vector.broadcast %2 : vector<1x128xf32> to vector<16x128xf32>
    %24 = arith.addf %22, %23 : vector<16x128xf32>
    %25 = arith.truncf %24 : vector<16x128xf32> to vector<16x128xbf16>
    %c0_9 = arith.constant 0 : index
    %c0_10 = arith.constant 0 : index
    %26 = vector.load %arg4[%c0_9, %c0_10] : memref<128x384xbf16, #tpu.memory_space<vmem>>, vector<128x384xbf16>
    %cst_11 = arith.constant dense<0.000000e+00> : vector<16x384xf32>
    %27 = tpu.matmul %25, %26, %cst_11 {dimension_numbers = #tpu.dot_dimension_numbers<[1], [0], [0], [1], [0, 0, 1, 1], [], []>} : vector<16x128xbf16>, vector<128x384xbf16>, vector<16x384xf32> -> vector<16x384xf32>
    %28 = arith.truncf %27 : vector<16x384xf32> to vector<16x384xbf16>
    %c0_12 = arith.constant 0 : index
    %c0_13 = arith.constant 0 : index
    %29 = vector.load %arg5[%c0_12, %c0_13] : memref<16x384xbf16, #tpu.memory_space<vmem>>, vector<16x384xbf16>
    tpu.vector_store %arg5[%c0_12, %c0_13], %28 {strides = array<i32>} : memref<16x384xbf16, #tpu.memory_space<vmem>>, vector<16x384xbf16>,
    return
  }
  func.func @transform_0(%arg0: i32) -> (i32, i32) {
    %c0_i32 = arith.constant 0 : i32
    %c0_i32_0 = arith.constant 0 : i32
    return %arg0, %c0_i32 : i32, i32
  }
  func.func @transform_1(%arg0: i32) -> (i32, i32) {
    %c0_i32 = arith.constant 0 : i32
    %c0_i32_0 = arith.constant 0 : i32
    %c0_i32_1 = arith.constant 0 : i32
    return %c0_i32, %c0_i32_0 : i32, i32
  }
  func.func @transform_2(%arg0: i32) -> (i32, i32) {
    %c0_i32 = arith.constant 0 : i32
    %c0_i32_0 = arith.constant 0 : i32
    %c0_i32_1 = arith.constant 0 : i32
    return %c0_i32, %c0_i32_0 : i32, i32
  }
  func.func @transform_3(%arg0: i32) -> (i32, i32) {
    %c0_i32 = arith.constant 0 : i32
    %c0_i32_0 = arith.constant 0 : i32
    %c0_i32_1 = arith.constant 0 : i32
    return %c0_i32, %c0_i32_0 : i32, i32
  }
  func.func @transform_4(%arg0: i32) -> (i32, i32) {
    %c0_i32 = arith.constant 0 : i32
    %c0_i32_0 = arith.constant 0 : i32
    return %arg0, %c0_i32 : i32, i32
  }
}

module attributes {stable_mosaic.version = 11 : i64} {
  func.func @_attn_kernel(%arg0: i32, %arg1: i32, %arg2: i32, %arg3: memref<1x8x128xbf16, #tpu.memory_space<vmem>>, %arg4: memref<1x16x128xbf16, #tpu.memory_space<vmem>>, %arg5: memref<1x16x128xbf16, #tpu.memory_space<vmem>>, %arg6: memref<1x8x128xf32, #tpu.memory_space<vmem>>, %arg7: memref<128x128xbf16, #tpu.memory_space<vmem>>, %arg8: memref<1x128xf32, #tpu.memory_space<vmem>>, %arg9: memref<1x8x128xf32, #tpu.memory_space<vmem>>, %arg10: memref<4x8x1xf32, #tpu.memory_space<vmem>>, %arg11: memref<4x8x1xf32, #tpu.memory_space<vmem>>, %arg12: memref<4x8x32xf32, #tpu.memory_space<vmem>>) attributes {dimension_semantics = [#tpu.dimension_semantics<parallel>, #tpu.dimension_semantics<parallel>, #tpu.dimension_semantics<arbitrary>], iteration_bounds = array<i64: 2, 2, 1>, scalar_prefetch = 0 : i64, scratch_operands = 3 : i64, tpu.core_type = #tpu.core_type<tc>, window_params = [{transform_indices = @transform_0, window_bounds = array<i64: 1, 8, 128>}, {transform_indices = @transform_1, window_bounds = array<i64: 1, 16, 128>}, {transform_indices = @transform_2, window_bounds = array<i64: 1, 16, 128>}, {transform_indices = @transform_3, window_bounds = array<i64: 1, 8, 128>}, {pipeline_mode = #tpu.pipeline_mode<synchronous>, transform_indices = @transform_4, window_bounds = array<i64: 128, 128>}, {pipeline_mode = #tpu.pipeline_mode<synchronous>, transform_indices = @transform_5, window_bounds = array<i64: 1, 128>}, {transform_indices = @transform_6, window_bounds = array<i64: 1, 8, 128>}]} {
    %c0_i32 = arith.constant 0 : i32
    %0 = arith.cmpi eq, %arg2, %c0_i32 : i32
    %1 = arith.extui %0 : i1 to i32
    %c0_i32_0 = arith.constant 0 : i32
    %2 = arith.cmpi ne, %1, %c0_i32_0 : i32
    scf.if %2 {
      %cst_95 = arith.constant 0xFF800000 : f32
      %156 = vector.broadcast %cst_95 : f32 to vector<4x8x1xf32>
      %c0_96 = arith.constant 0 : index
      %c0_97 = arith.constant 0 : index
      %c0_98 = arith.constant 0 : index
      %157 = vector.load %arg10[%c0_96, %c0_97, %c0_98] : memref<4x8x1xf32, #tpu.memory_space<vmem>>, vector<4x8x1xf32>
      tpu.vector_store %arg10[%c0_96, %c0_97, %c0_98], %156 {strides = array<i32>} : memref<4x8x1xf32, #tpu.memory_space<vmem>>, vector<4x8x1xf32>,
      %cst_99 = arith.constant 0.000000e+00 : f32
      %158 = vector.broadcast %cst_99 : f32 to vector<4x8x1xf32>
      %c0_100 = arith.constant 0 : index
      %c0_101 = arith.constant 0 : index
      %c0_102 = arith.constant 0 : index
      %159 = vector.load %arg11[%c0_100, %c0_101, %c0_102] : memref<4x8x1xf32, #tpu.memory_space<vmem>>, vector<4x8x1xf32>
      tpu.vector_store %arg11[%c0_100, %c0_101, %c0_102], %158 {strides = array<i32>} : memref<4x8x1xf32, #tpu.memory_space<vmem>>, vector<4x8x1xf32>,
      %cst_103 = arith.constant 0.000000e+00 : f32
      %160 = vector.broadcast %cst_103 : f32 to vector<4x8x32xf32>
      %c0_104 = arith.constant 0 : index
      %c0_105 = arith.constant 0 : index
      %c0_106 = arith.constant 0 : index
      %161 = vector.load %arg12[%c0_104, %c0_105, %c0_106] : memref<4x8x32xf32, #tpu.memory_space<vmem>>, vector<4x8x32xf32>
      tpu.vector_store %arg12[%c0_104, %c0_105, %c0_106], %160 {strides = array<i32>} : memref<4x8x32xf32, #tpu.memory_space<vmem>>, vector<4x8x32xf32>,
    } else {
    }
    %c0 = arith.constant 0 : index
    %c0_1 = arith.constant 0 : index
    %c0_2 = arith.constant 0 : index
    %3 = vector.load %arg3[%c0, %c0_1, %c0_2] : memref<1x8x128xbf16, #tpu.memory_space<vmem>>, vector<1x8x128xbf16>
    %4 = vector.shape_cast %3 : vector<1x8x128xbf16> to vector<8x128xbf16>
    %c0_3 = arith.constant 0 : index
    %c0_4 = arith.constant 0 : index
    %c0_5 = arith.constant 0 : index
    %5 = vector.load %arg4[%c0_3, %c0_4, %c0_5] : memref<1x16x128xbf16, #tpu.memory_space<vmem>>, vector<1x16x128xbf16>
    %6 = vector.shape_cast %5 : vector<1x16x128xbf16> to vector<16x128xbf16>
    %c0_6 = arith.constant 0 : index
    %c0_7 = arith.constant 0 : index
    %c0_8 = arith.constant 0 : index
    %7 = vector.load %arg5[%c0_6, %c0_7, %c0_8] : memref<1x16x128xbf16, #tpu.memory_space<vmem>>, vector<1x16x128xbf16>
    %8 = vector.shape_cast %7 : vector<1x16x128xbf16> to vector<16x128xbf16>
    %9 = vector.extract_strided_slice %4 {offsets = [0, 0], sizes = [8, 32], strides = [1, 1]} : vector<8x128xbf16> to vector<8x32xbf16>
    %10 = vector.extract_strided_slice %6 {offsets = [0, 0], sizes = [16, 32], strides = [1, 1]} : vector<16x128xbf16> to vector<16x32xbf16>
    %cst = arith.constant dense<0.000000e+00> : vector<8x16xf32>
    %11 = tpu.matmul %9, %10, %cst {dimension_numbers = #tpu.dot_dimension_numbers<[1], [1], [0], [0], [0, 0, 1, 0], [], []>} : vector<8x32xbf16>, vector<16x32xbf16>, vector<8x16xf32> -> vector<8x16xf32>
    %c0_9 = arith.constant 0 : index
    %c0_10 = arith.constant 0 : index
    %c0_11 = arith.constant 0 : index
    %12 = vector.load %arg10[%c0_9, %c0_10, %c0_11] : memref<4x8x1xf32, #tpu.memory_space<vmem>>, vector<1x8x1xf32>
    %13 = vector.shape_cast %12 : vector<1x8x1xf32> to vector<8x1xf32>
    %cst_12 = arith.constant dense<0xFF800000> : vector<8xf32>
    %14 = vector.multi_reduction <maximumf>, %11, %cst_12 [1] : vector<8x16xf32> to vector<8xf32>
    %15 = vector.shape_cast %14 : vector<8xf32> to vector<8x1xf32>
    %16 = arith.maximumf %13, %15 : vector<8x1xf32>
    %17 = arith.subf %13, %16 : vector<8x1xf32>
    %18 = math.exp %17 : vector<8x1xf32>
    %19 = vector.broadcast %16 : vector<8x1xf32> to vector<8x16xf32>
    %20 = arith.subf %11, %19 : vector<8x16xf32>
    %21 = math.exp %20 : vector<8x16xf32>
    %c0_13 = arith.constant 0 : index
    %c0_14 = arith.constant 0 : index
    %c0_15 = arith.constant 0 : index
    %22 = vector.load %arg11[%c0_13, %c0_14, %c0_15] : memref<4x8x1xf32, #tpu.memory_space<vmem>>, vector<1x8x1xf32>
    %23 = vector.shape_cast %22 : vector<1x8x1xf32> to vector<8x1xf32>
    %24 = arith.mulf %18, %23 : vector<8x1xf32>
    %cst_16 = arith.constant dense<0.000000e+00> : vector<8xf32>
    %25 = vector.multi_reduction <add>, %21, %cst_16 [1] : vector<8x16xf32> to vector<8xf32>
    %26 = vector.shape_cast %25 : vector<8xf32> to vector<8x1xf32>
    %27 = arith.addf %24, %26 : vector<8x1xf32>
    %c0_17 = arith.constant 0 : index
    %c0_18 = arith.constant 0 : index
    %c0_19 = arith.constant 0 : index
    %28 = vector.load %arg11[%c0_17, %c0_18, %c0_19] : memref<4x8x1xf32, #tpu.memory_space<vmem>>, vector<1x8x1xf32>
    %29 = vector.shape_cast %28 : vector<1x8x1xf32> to vector<8x1xf32>
    %30 = vector.shape_cast %27 : vector<8x1xf32> to vector<1x8x1xf32>
    tpu.vector_store %arg11[%c0_17, %c0_18, %c0_19], %30 {strides = array<i32>} : memref<4x8x1xf32, #tpu.memory_space<vmem>>, vector<1x8x1xf32>,
    %c0_20 = arith.constant 0 : index
    %c0_21 = arith.constant 0 : index
    %c0_22 = arith.constant 0 : index
    %31 = vector.load %arg12[%c0_20, %c0_21, %c0_22] : memref<4x8x32xf32, #tpu.memory_space<vmem>>, vector<1x8x32xf32>
    %32 = vector.shape_cast %31 : vector<1x8x32xf32> to vector<8x32xf32>
    %33 = vector.broadcast %18 : vector<8x1xf32> to vector<8x32xf32>
    %34 = arith.mulf %33, %32 : vector<8x32xf32>
    %35 = arith.truncf %21 : vector<8x16xf32> to vector<8x16xbf16>
    %36 = vector.extract_strided_slice %8 {offsets = [0, 0], sizes = [16, 32], strides = [1, 1]} : vector<16x128xbf16> to vector<16x32xbf16>
    %cst_23 = arith.constant dense<0.000000e+00> : vector<8x32xf32>
    %37 = tpu.matmul %35, %36, %cst_23 {dimension_numbers = #tpu.dot_dimension_numbers<[1], [0], [0], [1], [0, 0, 1, 1], [], []>} : vector<8x16xbf16>, vector<16x32xbf16>, vector<8x32xf32> -> vector<8x32xf32>
    %38 = arith.addf %34, %37 : vector<8x32xf32>
    %c0_24 = arith.constant 0 : index
    %c0_25 = arith.constant 0 : index
    %c0_26 = arith.constant 0 : index
    %39 = vector.load %arg12[%c0_24, %c0_25, %c0_26] : memref<4x8x32xf32, #tpu.memory_space<vmem>>, vector<1x8x32xf32>
    %40 = vector.shape_cast %39 : vector<1x8x32xf32> to vector<8x32xf32>
    %41 = vector.shape_cast %38 : vector<8x32xf32> to vector<1x8x32xf32>
    tpu.vector_store %arg12[%c0_24, %c0_25, %c0_26], %41 {strides = array<i32>} : memref<4x8x32xf32, #tpu.memory_space<vmem>>, vector<1x8x32xf32>,
    %c0_27 = arith.constant 0 : index
    %c0_28 = arith.constant 0 : index
    %c0_29 = arith.constant 0 : index
    %42 = vector.load %arg10[%c0_27, %c0_28, %c0_29] : memref<4x8x1xf32, #tpu.memory_space<vmem>>, vector<1x8x1xf32>
    %43 = vector.shape_cast %42 : vector<1x8x1xf32> to vector<8x1xf32>
    %44 = vector.shape_cast %16 : vector<8x1xf32> to vector<1x8x1xf32>
    tpu.vector_store %arg10[%c0_27, %c0_28, %c0_29], %44 {strides = array<i32>} : memref<4x8x1xf32, #tpu.memory_space<vmem>>, vector<1x8x1xf32>,
    %45 = vector.extract_strided_slice %4 {offsets = [0, 32], sizes = [8, 32], strides = [1, 1]} : vector<8x128xbf16> to vector<8x32xbf16>
    %46 = vector.extract_strided_slice %6 {offsets = [0, 32], sizes = [16, 32], strides = [1, 1]} : vector<16x128xbf16> to vector<16x32xbf16>
    %cst_30 = arith.constant dense<0.000000e+00> : vector<8x16xf32>
    %47 = tpu.matmul %45, %46, %cst_30 {dimension_numbers = #tpu.dot_dimension_numbers<[1], [1], [0], [0], [0, 0, 1, 0], [], []>} : vector<8x32xbf16>, vector<16x32xbf16>, vector<8x16xf32> -> vector<8x16xf32>
    %c1 = arith.constant 1 : index
    %c0_31 = arith.constant 0 : index
    %c0_32 = arith.constant 0 : index
    %48 = vector.load %arg10[%c1, %c0_31, %c0_32] : memref<4x8x1xf32, #tpu.memory_space<vmem>>, vector<1x8x1xf32>
    %49 = vector.shape_cast %48 : vector<1x8x1xf32> to vector<8x1xf32>
    %cst_33 = arith.constant dense<0xFF800000> : vector<8xf32>
    %50 = vector.multi_reduction <maximumf>, %47, %cst_33 [1] : vector<8x16xf32> to vector<8xf32>
    %51 = vector.shape_cast %50 : vector<8xf32> to vector<8x1xf32>
    %52 = arith.maximumf %49, %51 : vector<8x1xf32>
    %53 = arith.subf %49, %52 : vector<8x1xf32>
    %54 = math.exp %53 : vector<8x1xf32>
    %55 = vector.broadcast %52 : vector<8x1xf32> to vector<8x16xf32>
    %56 = arith.subf %47, %55 : vector<8x16xf32>
    %57 = math.exp %56 : vector<8x16xf32>
    %c1_34 = arith.constant 1 : index
    %c0_35 = arith.constant 0 : index
    %c0_36 = arith.constant 0 : index
    %58 = vector.load %arg11[%c1_34, %c0_35, %c0_36] : memref<4x8x1xf32, #tpu.memory_space<vmem>>, vector<1x8x1xf32>
    %59 = vector.shape_cast %58 : vector<1x8x1xf32> to vector<8x1xf32>
    %60 = arith.mulf %54, %59 : vector<8x1xf32>
    %cst_37 = arith.constant dense<0.000000e+00> : vector<8xf32>
    %61 = vector.multi_reduction <add>, %57, %cst_37 [1] : vector<8x16xf32> to vector<8xf32>
    %62 = vector.shape_cast %61 : vector<8xf32> to vector<8x1xf32>
    %63 = arith.addf %60, %62 : vector<8x1xf32>
    %c1_38 = arith.constant 1 : index
    %c0_39 = arith.constant 0 : index
    %c0_40 = arith.constant 0 : index
    %64 = vector.load %arg11[%c1_38, %c0_39, %c0_40] : memref<4x8x1xf32, #tpu.memory_space<vmem>>, vector<1x8x1xf32>
    %65 = vector.shape_cast %64 : vector<1x8x1xf32> to vector<8x1xf32>
    %66 = vector.shape_cast %63 : vector<8x1xf32> to vector<1x8x1xf32>
    tpu.vector_store %arg11[%c1_38, %c0_39, %c0_40], %66 {strides = array<i32>} : memref<4x8x1xf32, #tpu.memory_space<vmem>>, vector<1x8x1xf32>,
    %c1_41 = arith.constant 1 : index
    %c0_42 = arith.constant 0 : index
    %c0_43 = arith.constant 0 : index
    %67 = vector.load %arg12[%c1_41, %c0_42, %c0_43] : memref<4x8x32xf32, #tpu.memory_space<vmem>>, vector<1x8x32xf32>
    %68 = vector.shape_cast %67 : vector<1x8x32xf32> to vector<8x32xf32>
    %69 = vector.broadcast %54 : vector<8x1xf32> to vector<8x32xf32>
    %70 = arith.mulf %69, %68 : vector<8x32xf32>
    %71 = arith.truncf %57 : vector<8x16xf32> to vector<8x16xbf16>
    %72 = vector.extract_strided_slice %8 {offsets = [0, 32], sizes = [16, 32], strides = [1, 1]} : vector<16x128xbf16> to vector<16x32xbf16>
    %cst_44 = arith.constant dense<0.000000e+00> : vector<8x32xf32>
    %73 = tpu.matmul %71, %72, %cst_44 {dimension_numbers = #tpu.dot_dimension_numbers<[1], [0], [0], [1], [0, 0, 1, 1], [], []>} : vector<8x16xbf16>, vector<16x32xbf16>, vector<8x32xf32> -> vector<8x32xf32>
    %74 = arith.addf %70, %73 : vector<8x32xf32>
    %c1_45 = arith.constant 1 : index
    %c0_46 = arith.constant 0 : index
    %c0_47 = arith.constant 0 : index
    %75 = vector.load %arg12[%c1_45, %c0_46, %c0_47] : memref<4x8x32xf32, #tpu.memory_space<vmem>>, vector<1x8x32xf32>
    %76 = vector.shape_cast %75 : vector<1x8x32xf32> to vector<8x32xf32>
    %77 = vector.shape_cast %74 : vector<8x32xf32> to vector<1x8x32xf32>
    tpu.vector_store %arg12[%c1_45, %c0_46, %c0_47], %77 {strides = array<i32>} : memref<4x8x32xf32, #tpu.memory_space<vmem>>, vector<1x8x32xf32>,
    %c1_48 = arith.constant 1 : index
    %c0_49 = arith.constant 0 : index
    %c0_50 = arith.constant 0 : index
    %78 = vector.load %arg10[%c1_48, %c0_49, %c0_50] : memref<4x8x1xf32, #tpu.memory_space<vmem>>, vector<1x8x1xf32>
    %79 = vector.shape_cast %78 : vector<1x8x1xf32> to vector<8x1xf32>
    %80 = vector.shape_cast %52 : vector<8x1xf32> to vector<1x8x1xf32>
    tpu.vector_store %arg10[%c1_48, %c0_49, %c0_50], %80 {strides = array<i32>} : memref<4x8x1xf32, #tpu.memory_space<vmem>>, vector<1x8x1xf32>,
    %81 = vector.extract_strided_slice %4 {offsets = [0, 64], sizes = [8, 32], strides = [1, 1]} : vector<8x128xbf16> to vector<8x32xbf16>
    %82 = vector.extract_strided_slice %6 {offsets = [0, 64], sizes = [16, 32], strides = [1, 1]} : vector<16x128xbf16> to vector<16x32xbf16>
    %cst_51 = arith.constant dense<0.000000e+00> : vector<8x16xf32>
    %83 = tpu.matmul %81, %82, %cst_51 {dimension_numbers = #tpu.dot_dimension_numbers<[1], [1], [0], [0], [0, 0, 1, 0], [], []>} : vector<8x32xbf16>, vector<16x32xbf16>, vector<8x16xf32> -> vector<8x16xf32>
    %c2 = arith.constant 2 : index
    %c0_52 = arith.constant 0 : index
    %c0_53 = arith.constant 0 : index
    %84 = vector.load %arg10[%c2, %c0_52, %c0_53] : memref<4x8x1xf32, #tpu.memory_space<vmem>>, vector<1x8x1xf32>
    %85 = vector.shape_cast %84 : vector<1x8x1xf32> to vector<8x1xf32>
    %cst_54 = arith.constant dense<0xFF800000> : vector<8xf32>
    %86 = vector.multi_reduction <maximumf>, %83, %cst_54 [1] : vector<8x16xf32> to vector<8xf32>
    %87 = vector.shape_cast %86 : vector<8xf32> to vector<8x1xf32>
    %88 = arith.maximumf %85, %87 : vector<8x1xf32>
    %89 = arith.subf %85, %88 : vector<8x1xf32>
    %90 = math.exp %89 : vector<8x1xf32>
    %91 = vector.broadcast %88 : vector<8x1xf32> to vector<8x16xf32>
    %92 = arith.subf %83, %91 : vector<8x16xf32>
    %93 = math.exp %92 : vector<8x16xf32>
    %c2_55 = arith.constant 2 : index
    %c0_56 = arith.constant 0 : index
    %c0_57 = arith.constant 0 : index
    %94 = vector.load %arg11[%c2_55, %c0_56, %c0_57] : memref<4x8x1xf32, #tpu.memory_space<vmem>>, vector<1x8x1xf32>
    %95 = vector.shape_cast %94 : vector<1x8x1xf32> to vector<8x1xf32>
    %96 = arith.mulf %90, %95 : vector<8x1xf32>
    %cst_58 = arith.constant dense<0.000000e+00> : vector<8xf32>
    %97 = vector.multi_reduction <add>, %93, %cst_58 [1] : vector<8x16xf32> to vector<8xf32>
    %98 = vector.shape_cast %97 : vector<8xf32> to vector<8x1xf32>
    %99 = arith.addf %96, %98 : vector<8x1xf32>
    %c2_59 = arith.constant 2 : index
    %c0_60 = arith.constant 0 : index
    %c0_61 = arith.constant 0 : index
    %100 = vector.load %arg11[%c2_59, %c0_60, %c0_61] : memref<4x8x1xf32, #tpu.memory_space<vmem>>, vector<1x8x1xf32>
    %101 = vector.shape_cast %100 : vector<1x8x1xf32> to vector<8x1xf32>
    %102 = vector.shape_cast %99 : vector<8x1xf32> to vector<1x8x1xf32>
    tpu.vector_store %arg11[%c2_59, %c0_60, %c0_61], %102 {strides = array<i32>} : memref<4x8x1xf32, #tpu.memory_space<vmem>>, vector<1x8x1xf32>,
    %c2_62 = arith.constant 2 : index
    %c0_63 = arith.constant 0 : index
    %c0_64 = arith.constant 0 : index
    %103 = vector.load %arg12[%c2_62, %c0_63, %c0_64] : memref<4x8x32xf32, #tpu.memory_space<vmem>>, vector<1x8x32xf32>
    %104 = vector.shape_cast %103 : vector<1x8x32xf32> to vector<8x32xf32>
    %105 = vector.broadcast %90 : vector<8x1xf32> to vector<8x32xf32>
    %106 = arith.mulf %105, %104 : vector<8x32xf32>
    %107 = arith.truncf %93 : vector<8x16xf32> to vector<8x16xbf16>
    %108 = vector.extract_strided_slice %8 {offsets = [0, 64], sizes = [16, 32], strides = [1, 1]} : vector<16x128xbf16> to vector<16x32xbf16>
    %cst_65 = arith.constant dense<0.000000e+00> : vector<8x32xf32>
    %109 = tpu.matmul %107, %108, %cst_65 {dimension_numbers = #tpu.dot_dimension_numbers<[1], [0], [0], [1], [0, 0, 1, 1], [], []>} : vector<8x16xbf16>, vector<16x32xbf16>, vector<8x32xf32> -> vector<8x32xf32>
    %110 = arith.addf %106, %109 : vector<8x32xf32>
    %c2_66 = arith.constant 2 : index
    %c0_67 = arith.constant 0 : index
    %c0_68 = arith.constant 0 : index
    %111 = vector.load %arg12[%c2_66, %c0_67, %c0_68] : memref<4x8x32xf32, #tpu.memory_space<vmem>>, vector<1x8x32xf32>
    %112 = vector.shape_cast %111 : vector<1x8x32xf32> to vector<8x32xf32>
    %113 = vector.shape_cast %110 : vector<8x32xf32> to vector<1x8x32xf32>
    tpu.vector_store %arg12[%c2_66, %c0_67, %c0_68], %113 {strides = array<i32>} : memref<4x8x32xf32, #tpu.memory_space<vmem>>, vector<1x8x32xf32>,
    %c2_69 = arith.constant 2 : index
    %c0_70 = arith.constant 0 : index
    %c0_71 = arith.constant 0 : index
    %114 = vector.load %arg10[%c2_69, %c0_70, %c0_71] : memref<4x8x1xf32, #tpu.memory_space<vmem>>, vector<1x8x1xf32>
    %115 = vector.shape_cast %114 : vector<1x8x1xf32> to vector<8x1xf32>
    %116 = vector.shape_cast %88 : vector<8x1xf32> to vector<1x8x1xf32>
    tpu.vector_store %arg10[%c2_69, %c0_70, %c0_71], %116 {strides = array<i32>} : memref<4x8x1xf32, #tpu.memory_space<vmem>>, vector<1x8x1xf32>,
    %117 = vector.extract_strided_slice %4 {offsets = [0, 96], sizes = [8, 32], strides = [1, 1]} : vector<8x128xbf16> to vector<8x32xbf16>
    %118 = vector.extract_strided_slice %6 {offsets = [0, 96], sizes = [16, 32], strides = [1, 1]} : vector<16x128xbf16> to vector<16x32xbf16>
    %cst_72 = arith.constant dense<0.000000e+00> : vector<8x16xf32>
    %119 = tpu.matmul %117, %118, %cst_72 {dimension_numbers = #tpu.dot_dimension_numbers<[1], [1], [0], [0], [0, 0, 1, 0], [], []>} : vector<8x32xbf16>, vector<16x32xbf16>, vector<8x16xf32> -> vector<8x16xf32>
    %c3 = arith.constant 3 : index
    %c0_73 = arith.constant 0 : index
    %c0_74 = arith.constant 0 : index
    %120 = vector.load %arg10[%c3, %c0_73, %c0_74] : memref<4x8x1xf32, #tpu.memory_space<vmem>>, vector<1x8x1xf32>
    %121 = vector.shape_cast %120 : vector<1x8x1xf32> to vector<8x1xf32>
    %cst_75 = arith.constant dense<0xFF800000> : vector<8xf32>
    %122 = vector.multi_reduction <maximumf>, %119, %cst_75 [1] : vector<8x16xf32> to vector<8xf32>
    %123 = vector.shape_cast %122 : vector<8xf32> to vector<8x1xf32>
    %124 = arith.maximumf %121, %123 : vector<8x1xf32>
    %125 = arith.subf %121, %124 : vector<8x1xf32>
    %126 = math.exp %125 : vector<8x1xf32>
    %127 = vector.broadcast %124 : vector<8x1xf32> to vector<8x16xf32>
    %128 = arith.subf %119, %127 : vector<8x16xf32>
    %129 = math.exp %128 : vector<8x16xf32>
    %c3_76 = arith.constant 3 : index
    %c0_77 = arith.constant 0 : index
    %c0_78 = arith.constant 0 : index
    %130 = vector.load %arg11[%c3_76, %c0_77, %c0_78] : memref<4x8x1xf32, #tpu.memory_space<vmem>>, vector<1x8x1xf32>
    %131 = vector.shape_cast %130 : vector<1x8x1xf32> to vector<8x1xf32>
    %132 = arith.mulf %126, %131 : vector<8x1xf32>
    %cst_79 = arith.constant dense<0.000000e+00> : vector<8xf32>
    %133 = vector.multi_reduction <add>, %129, %cst_79 [1] : vector<8x16xf32> to vector<8xf32>
    %134 = vector.shape_cast %133 : vector<8xf32> to vector<8x1xf32>
    %135 = arith.addf %132, %134 : vector<8x1xf32>
    %c3_80 = arith.constant 3 : index
    %c0_81 = arith.constant 0 : index
    %c0_82 = arith.constant 0 : index
    %136 = vector.load %arg11[%c3_80, %c0_81, %c0_82] : memref<4x8x1xf32, #tpu.memory_space<vmem>>, vector<1x8x1xf32>
    %137 = vector.shape_cast %136 : vector<1x8x1xf32> to vector<8x1xf32>
    %138 = vector.shape_cast %135 : vector<8x1xf32> to vector<1x8x1xf32>
    tpu.vector_store %arg11[%c3_80, %c0_81, %c0_82], %138 {strides = array<i32>} : memref<4x8x1xf32, #tpu.memory_space<vmem>>, vector<1x8x1xf32>,
    %c3_83 = arith.constant 3 : index
    %c0_84 = arith.constant 0 : index
    %c0_85 = arith.constant 0 : index
    %139 = vector.load %arg12[%c3_83, %c0_84, %c0_85] : memref<4x8x32xf32, #tpu.memory_space<vmem>>, vector<1x8x32xf32>
    %140 = vector.shape_cast %139 : vector<1x8x32xf32> to vector<8x32xf32>
    %141 = vector.broadcast %126 : vector<8x1xf32> to vector<8x32xf32>
    %142 = arith.mulf %141, %140 : vector<8x32xf32>
    %143 = arith.truncf %129 : vector<8x16xf32> to vector<8x16xbf16>
    %144 = vector.extract_strided_slice %8 {offsets = [0, 96], sizes = [16, 32], strides = [1, 1]} : vector<16x128xbf16> to vector<16x32xbf16>
    %cst_86 = arith.constant dense<0.000000e+00> : vector<8x32xf32>
    %145 = tpu.matmul %143, %144, %cst_86 {dimension_numbers = #tpu.dot_dimension_numbers<[1], [0], [0], [1], [0, 0, 1, 1], [], []>} : vector<8x16xbf16>, vector<16x32xbf16>, vector<8x32xf32> -> vector<8x32xf32>
    %146 = arith.addf %142, %145 : vector<8x32xf32>
    %c3_87 = arith.constant 3 : index
    %c0_88 = arith.constant 0 : index
    %c0_89 = arith.constant 0 : index
    %147 = vector.load %arg12[%c3_87, %c0_88, %c0_89] : memref<4x8x32xf32, #tpu.memory_space<vmem>>, vector<1x8x32xf32>
    %148 = vector.shape_cast %147 : vector<1x8x32xf32> to vector<8x32xf32>
    %149 = vector.shape_cast %146 : vector<8x32xf32> to vector<1x8x32xf32>
    tpu.vector_store %arg12[%c3_87, %c0_88, %c0_89], %149 {strides = array<i32>} : memref<4x8x32xf32, #tpu.memory_space<vmem>>, vector<1x8x32xf32>,
    %c3_90 = arith.constant 3 : index
    %c0_91 = arith.constant 0 : index
    %c0_92 = arith.constant 0 : index
    %150 = vector.load %arg10[%c3_90, %c0_91, %c0_92] : memref<4x8x1xf32, #tpu.memory_space<vmem>>, vector<1x8x1xf32>
    %151 = vector.shape_cast %150 : vector<1x8x1xf32> to vector<8x1xf32>
    %152 = vector.shape_cast %124 : vector<8x1xf32> to vector<1x8x1xf32>
    tpu.vector_store %arg10[%c3_90, %c0_91, %c0_92], %152 {strides = array<i32>} : memref<4x8x1xf32, #tpu.memory_space<vmem>>, vector<1x8x1xf32>,
    %c0_i32_93 = arith.constant 0 : i32
    %153 = arith.cmpi eq, %arg2, %c0_i32_93 : i32
    %154 = arith.extui %153 : i1 to i32
    %c0_i32_94 = arith.constant 0 : i32
    %155 = arith.cmpi ne, %154, %c0_i32_94 : i32
    scf.if %155 {
      %c0_95 = arith.constant 0 : index
      %c0_96 = arith.constant 0 : index
      %c0_97 = arith.constant 0 : index
      %156 = vector.load %arg12[%c0_95, %c0_96, %c0_97] : memref<4x8x32xf32, #tpu.memory_space<vmem>>, vector<1x8x32xf32>
      %157 = vector.shape_cast %156 : vector<1x8x32xf32> to vector<8x32xf32>
      %c0_98 = arith.constant 0 : index
      %c0_99 = arith.constant 0 : index
      %c0_100 = arith.constant 0 : index
      %158 = vector.load %arg11[%c0_98, %c0_99, %c0_100] : memref<4x8x1xf32, #tpu.memory_space<vmem>>, vector<1x8x1xf32>
      %159 = vector.shape_cast %158 : vector<1x8x1xf32> to vector<8x1xf32>
      %160 = tpu.reciprocal %159 {approx = true} : vector<8x1xf32> -> vector<8x1xf32>
      %161 = vector.broadcast %160 : vector<8x1xf32> to vector<8x32xf32>
      %162 = arith.mulf %157, %161 : vector<8x32xf32>
      %c1_101 = arith.constant 1 : index
      %c0_102 = arith.constant 0 : index
      %c0_103 = arith.constant 0 : index
      %163 = vector.load %arg12[%c1_101, %c0_102, %c0_103] : memref<4x8x32xf32, #tpu.memory_space<vmem>>, vector<1x8x32xf32>
      %164 = vector.shape_cast %163 : vector<1x8x32xf32> to vector<8x32xf32>
      %c1_104 = arith.constant 1 : index
      %c0_105 = arith.constant 0 : index
      %c0_106 = arith.constant 0 : index
      %165 = vector.load %arg11[%c1_104, %c0_105, %c0_106] : memref<4x8x1xf32, #tpu.memory_space<vmem>>, vector<1x8x1xf32>
      %166 = vector.shape_cast %165 : vector<1x8x1xf32> to vector<8x1xf32>
      %167 = tpu.reciprocal %166 {approx = true} : vector<8x1xf32> -> vector<8x1xf32>
      %168 = vector.broadcast %167 : vector<8x1xf32> to vector<8x32xf32>
      %169 = arith.mulf %164, %168 : vector<8x32xf32>
      %c2_107 = arith.constant 2 : index
      %c0_108 = arith.constant 0 : index
      %c0_109 = arith.constant 0 : index
      %170 = vector.load %arg12[%c2_107, %c0_108, %c0_109] : memref<4x8x32xf32, #tpu.memory_space<vmem>>, vector<1x8x32xf32>
      %171 = vector.shape_cast %170 : vector<1x8x32xf32> to vector<8x32xf32>
      %c2_110 = arith.constant 2 : index
      %c0_111 = arith.constant 0 : index
      %c0_112 = arith.constant 0 : index
      %172 = vector.load %arg11[%c2_110, %c0_111, %c0_112] : memref<4x8x1xf32, #tpu.memory_space<vmem>>, vector<1x8x1xf32>
      %173 = vector.shape_cast %172 : vector<1x8x1xf32> to vector<8x1xf32>
      %174 = tpu.reciprocal %173 {approx = true} : vector<8x1xf32> -> vector<8x1xf32>
      %175 = vector.broadcast %174 : vector<8x1xf32> to vector<8x32xf32>
      %176 = arith.mulf %171, %175 : vector<8x32xf32>
      %c3_113 = arith.constant 3 : index
      %c0_114 = arith.constant 0 : index
      %c0_115 = arith.constant 0 : index
      %177 = vector.load %arg12[%c3_113, %c0_114, %c0_115] : memref<4x8x32xf32, #tpu.memory_space<vmem>>, vector<1x8x32xf32>
      %178 = vector.shape_cast %177 : vector<1x8x32xf32> to vector<8x32xf32>
      %c3_116 = arith.constant 3 : index
      %c0_117 = arith.constant 0 : index
      %c0_118 = arith.constant 0 : index
      %179 = vector.load %arg11[%c3_116, %c0_117, %c0_118] : memref<4x8x1xf32, #tpu.memory_space<vmem>>, vector<1x8x1xf32>
      %180 = vector.shape_cast %179 : vector<1x8x1xf32> to vector<8x1xf32>
      %181 = tpu.reciprocal %180 {approx = true} : vector<8x1xf32> -> vector<8x1xf32>
      %182 = vector.broadcast %181 : vector<8x1xf32> to vector<8x32xf32>
      %183 = arith.mulf %178, %182 : vector<8x32xf32>
      %184 = tpu.concatenate %162, %169, %176, %183 in 1 : vector<8x32xf32>, vector<8x32xf32>, vector<8x32xf32>, vector<8x32xf32> -> vector<8x128xf32>
      %185 = arith.truncf %184 : vector<8x128xf32> to vector<8x128xbf16>
      %c0_119 = arith.constant 0 : index
      %c0_120 = arith.constant 0 : index
      %186 = vector.load %arg7[%c0_119, %c0_120] : memref<128x128xbf16, #tpu.memory_space<vmem>>, vector<128x128xbf16>
      %cst_121 = arith.constant dense<0.000000e+00> : vector<8x128xf32>
      %187 = tpu.matmul %185, %186, %cst_121 {dimension_numbers = #tpu.dot_dimension_numbers<[1], [0], [0], [1], [0, 0, 1, 1], [], []>} : vector<8x128xbf16>, vector<128x128xbf16>, vector<8x128xf32> -> vector<8x128xf32>
      %c0_122 = arith.constant 0 : index
      %c0_123 = arith.constant 0 : index
      %188 = vector.load %arg8[%c0_122, %c0_123] : memref<1x128xf32, #tpu.memory_space<vmem>>, vector<1x128xf32>
      %189 = vector.broadcast %188 : vector<1x128xf32> to vector<8x128xf32>
      %190 = arith.addf %187, %189 : vector<8x128xf32>
      %c0_124 = arith.constant 0 : index
      %c0_125 = arith.constant 0 : index
      %c0_126 = arith.constant 0 : index
      %191 = vector.load %arg6[%c0_124, %c0_125, %c0_126] : memref<1x8x128xf32, #tpu.memory_space<vmem>>, vector<1x8x128xf32>
      %192 = vector.shape_cast %191 : vector<1x8x128xf32> to vector<8x128xf32>
      %193 = arith.addf %190, %192 : vector<8x128xf32>
      %c0_127 = arith.constant 0 : index
      %c0_128 = arith.constant 0 : index
      %c0_129 = arith.constant 0 : index
      %194 = vector.load %arg9[%c0_127, %c0_128, %c0_129] : memref<1x8x128xf32, #tpu.memory_space<vmem>>, vector<1x8x128xf32>
      %195 = vector.shape_cast %194 : vector<1x8x128xf32> to vector<8x128xf32>
      %196 = vector.shape_cast %193 : vector<8x128xf32> to vector<1x8x128xf32>
      tpu.vector_store %arg9[%c0_127, %c0_128, %c0_129], %196 {strides = array<i32>} : memref<1x8x128xf32, #tpu.memory_space<vmem>>, vector<1x8x128xf32>,
    } else {
    }
    return
  }
  func.func @transform_0(%arg0: i32, %arg1: i32, %arg2: i32) -> (i32, i32, i32) {
    %c0_i32 = arith.constant 0 : i32
    %c0_i32_0 = arith.constant 0 : i32
    return %arg0, %arg1, %c0_i32 : i32, i32, i32
  }
  func.func @transform_1(%arg0: i32, %arg1: i32, %arg2: i32) -> (i32, i32, i32) {
    %c1_i32 = arith.constant 1 : i32
    %c0_i32 = arith.constant 0 : i32
    return %arg0, %arg2, %c1_i32 : i32, i32, i32
  }
  func.func @transform_2(%arg0: i32, %arg1: i32, %arg2: i32) -> (i32, i32, i32) {
    %c2_i32 = arith.constant 2 : i32
    %c0_i32 = arith.constant 0 : i32
    return %arg0, %arg2, %c2_i32 : i32, i32, i32
  }
  func.func @transform_3(%arg0: i32, %arg1: i32, %arg2: i32) -> (i32, i32, i32) {
    %c0_i32 = arith.constant 0 : i32
    %c0_i32_0 = arith.constant 0 : i32
    return %arg0, %arg1, %c0_i32 : i32, i32, i32
  }
  func.func @transform_4(%arg0: i32, %arg1: i32, %arg2: i32) -> (i32, i32) {
    %c0_i32 = arith.constant 0 : i32
    %c0_i32_0 = arith.constant 0 : i32
    %c0_i32_1 = arith.constant 0 : i32
    return %c0_i32, %c0_i32_0 : i32, i32
  }
  func.func @transform_5(%arg0: i32, %arg1: i32, %arg2: i32) -> (i32, i32) {
    %c0_i32 = arith.constant 0 : i32
    %c0_i32_0 = arith.constant 0 : i32
    %c0_i32_1 = arith.constant 0 : i32
    return %c0_i32, %c0_i32_0 : i32, i32
  }
  func.func @transform_6(%arg0: i32, %arg1: i32, %arg2: i32) -> (i32, i32, i32) {
    %c0_i32 = arith.constant 0 : i32
    %c0_i32_0 = arith.constant 0 : i32
    return %arg0, %arg1, %c0_i32 : i32, i32, i32
  }
}

module attributes {stable_mosaic.version = 11 : i64} {
  func.func @_linear_kernel(%arg0: i32, %arg1: memref<16x4xf32, #tpu.memory_space<vmem>>, %arg2: memref<4x128xbf16, #tpu.memory_space<vmem>>, %arg3: memref<1x128xf32, #tpu.memory_space<vmem>>, %arg4: memref<16x128xf32, #tpu.memory_space<vmem>>) attributes {dimension_semantics = [#tpu.dimension_semantics<parallel>], iteration_bounds = array<i64: 2>, scalar_prefetch = 0 : i64, scratch_operands = 0 : i64, tpu.core_type = #tpu.core_type<tc>, window_params = [{transform_indices = @transform_0, window_bounds = array<i64: 16, 4>}, {pipeline_mode = #tpu.pipeline_mode<synchronous>, transform_indices = @transform_1, window_bounds = array<i64: 4, 128>}, {pipeline_mode = #tpu.pipeline_mode<synchronous>, transform_indices = @transform_2, window_bounds = array<i64: 1, 128>}, {transform_indices = @transform_3, window_bounds = array<i64: 16, 128>}]} {
    %c0 = arith.constant 0 : index
    %c0_0 = arith.constant 0 : index
    %0 = vector.load %arg1[%c0, %c0_0] : memref<16x4xf32, #tpu.memory_space<vmem>>, vector<16x4xf32>
    %1 = arith.truncf %0 : vector<16x4xf32> to vector<16x4xbf16>
    %c0_1 = arith.constant 0 : index
    %c0_2 = arith.constant 0 : index
    %2 = vector.load %arg2[%c0_1, %c0_2] : memref<4x128xbf16, #tpu.memory_space<vmem>>, vector<4x128xbf16>
    %cst = arith.constant dense<0.000000e+00> : vector<16x128xf32>
    %3 = tpu.matmul %1, %2, %cst {dimension_numbers = #tpu.dot_dimension_numbers<[1], [0], [0], [1], [0, 0, 1, 1], [], []>} : vector<16x4xbf16>, vector<4x128xbf16>, vector<16x128xf32> -> vector<16x128xf32>
    %c0_3 = arith.constant 0 : index
    %c0_4 = arith.constant 0 : index
    %4 = vector.load %arg3[%c0_3, %c0_4] : memref<1x128xf32, #tpu.memory_space<vmem>>, vector<1x128xf32>
    %5 = vector.broadcast %4 : vector<1x128xf32> to vector<16x128xf32>
    %6 = arith.addf %3, %5 : vector<16x128xf32>
    %c0_5 = arith.constant 0 : index
    %c0_6 = arith.constant 0 : index
    %7 = vector.load %arg4[%c0_5, %c0_6] : memref<16x128xf32, #tpu.memory_space<vmem>>, vector<16x128xf32>
    tpu.vector_store %arg4[%c0_5, %c0_6], %6 {strides = array<i32>} : memref<16x128xf32, #tpu.memory_space<vmem>>, vector<16x128xf32>,
    return
  }
  func.func @transform_0(%arg0: i32) -> (i32, i32) {
    %c0_i32 = arith.constant 0 : i32
    %c0_i32_0 = arith.constant 0 : i32
    return %arg0, %c0_i32 : i32, i32
  }
  func.func @transform_1(%arg0: i32) -> (i32, i32) {
    %c0_i32 = arith.constant 0 : i32
    %c0_i32_0 = arith.constant 0 : i32
    %c0_i32_1 = arith.constant 0 : i32
    return %c0_i32, %c0_i32_0 : i32, i32
  }
  func.func @transform_2(%arg0: i32) -> (i32, i32) {
    %c0_i32 = arith.constant 0 : i32
    %c0_i32_0 = arith.constant 0 : i32
    %c0_i32_1 = arith.constant 0 : i32
    return %c0_i32, %c0_i32_0 : i32, i32
  }
  func.func @transform_3(%arg0: i32) -> (i32, i32) {
    %c0_i32 = arith.constant 0 : i32
    %c0_i32_0 = arith.constant 0 : i32
    return %arg0, %c0_i32 : i32, i32
  }
}

module attributes {stable_mosaic.version = 11 : i64} {
  func.func @_ln_ff_kernel(%arg0: i32, %arg1: memref<16x128xf32, #tpu.memory_space<vmem>>, %arg2: memref<1x128xf32, #tpu.memory_space<vmem>>, %arg3: memref<1x128xf32, #tpu.memory_space<vmem>>, %arg4: memref<128x1024xbf16, #tpu.memory_space<vmem>>, %arg5: memref<1x1024xf32, #tpu.memory_space<vmem>>, %arg6: memref<512x128xbf16, #tpu.memory_space<vmem>>, %arg7: memref<1x128xf32, #tpu.memory_space<vmem>>, %arg8: memref<16x128xf32, #tpu.memory_space<vmem>>) attributes {dimension_semantics = [#tpu.dimension_semantics<parallel>], iteration_bounds = array<i64: 2>, scalar_prefetch = 0 : i64, scratch_operands = 0 : i64, tpu.core_type = #tpu.core_type<tc>, window_params = [{transform_indices = @transform_0, window_bounds = array<i64: 16, 128>}, {pipeline_mode = #tpu.pipeline_mode<synchronous>, transform_indices = @transform_1, window_bounds = array<i64: 1, 128>}, {pipeline_mode = #tpu.pipeline_mode<synchronous>, transform_indices = @transform_2, window_bounds = array<i64: 1, 128>}, {pipeline_mode = #tpu.pipeline_mode<synchronous>, transform_indices = @transform_3, window_bounds = array<i64: 128, 1024>}, {pipeline_mode = #tpu.pipeline_mode<synchronous>, transform_indices = @transform_4, window_bounds = array<i64: 1, 1024>}, {pipeline_mode = #tpu.pipeline_mode<synchronous>, transform_indices = @transform_5, window_bounds = array<i64: 512, 128>}, {pipeline_mode = #tpu.pipeline_mode<synchronous>, transform_indices = @transform_6, window_bounds = array<i64: 1, 128>}, {transform_indices = @transform_7, window_bounds = array<i64: 16, 128>}]} {
    %c0 = arith.constant 0 : index
    %c0_0 = arith.constant 0 : index
    %0 = vector.load %arg1[%c0, %c0_0] : memref<16x128xf32, #tpu.memory_space<vmem>>, vector<16x128xf32>
    %c0_1 = arith.constant 0 : index
    %c0_2 = arith.constant 0 : index
    %1 = vector.load %arg2[%c0_1, %c0_2] : memref<1x128xf32, #tpu.memory_space<vmem>>, vector<1x128xf32>
    %c0_3 = arith.constant 0 : index
    %c0_4 = arith.constant 0 : index
    %2 = vector.load %arg3[%c0_3, %c0_4] : memref<1x128xf32, #tpu.memory_space<vmem>>, vector<1x128xf32>
    %cst = arith.constant dense<0.000000e+00> : vector<16xf32>
    %3 = vector.multi_reduction <add>, %0, %cst [1] : vector<16x128xf32> to vector<16xf32>
    %4 = vector.shape_cast %3 : vector<16xf32> to vector<16x1xf32>
    %cst_5 = arith.constant 1.280000e+02 : f32
    %5 = vector.broadcast %cst_5 : f32 to vector<16x1xf32>
    %6 = arith.divf %4, %5 : vector<16x1xf32>
    %7 = vector.broadcast %6 : vector<16x1xf32> to vector<16x128xf32>
    %8 = arith.subf %0, %7 : vector<16x128xf32>
    %9 = arith.mulf %8, %8 : vector<16x128xf32>
    %cst_6 = arith.constant dense<0.000000e+00> : vector<16xf32>
    %10 = vector.multi_reduction <add>, %9, %cst_6 [1] : vector<16x128xf32> to vector<16xf32>
    %11 = vector.shape_cast %10 : vector<16xf32> to vector<16x1xf32>
    %cst_7 = arith.constant 1.280000e+02 : f32
    %12 = vector.broadcast %cst_7 : f32 to vector<16x1xf32>
    %13 = arith.divf %11, %12 : vector<16x1xf32>
    %14 = vector.broadcast %6 : vector<16x1xf32> to vector<16x128xf32>
    %15 = arith.subf %0, %14 : vector<16x128xf32>
    %cst_8 = arith.constant 9.99999974E-6 : f32
    %16 = vector.broadcast %cst_8 : f32 to vector<16x1xf32>
    %17 = arith.addf %13, %16 : vector<16x1xf32>
    %18 = math.rsqrt %17 : vector<16x1xf32>
    %19 = vector.broadcast %18 : vector<16x1xf32> to vector<16x128xf32>
    %20 = arith.mulf %15, %19 : vector<16x128xf32>
    %21 = vector.broadcast %1 : vector<1x128xf32> to vector<16x128xf32>
    %22 = arith.mulf %20, %21 : vector<16x128xf32>
    %23 = vector.broadcast %2 : vector<1x128xf32> to vector<16x128xf32>
    %24 = arith.addf %22, %23 : vector<16x128xf32>
    %25 = arith.truncf %24 : vector<16x128xf32> to vector<16x128xbf16>
    %c0_9 = arith.constant 0 : index
    %c0_10 = arith.constant 0 : index
    %26 = vector.load %arg4[%c0_9, %c0_10] : memref<128x1024xbf16, #tpu.memory_space<vmem>>, vector<128x1024xbf16>
    %cst_11 = arith.constant dense<0.000000e+00> : vector<16x1024xf32>
    %27 = tpu.matmul %25, %26, %cst_11 {dimension_numbers = #tpu.dot_dimension_numbers<[1], [0], [0], [1], [0, 0, 1, 1], [], []>} : vector<16x128xbf16>, vector<128x1024xbf16>, vector<16x1024xf32> -> vector<16x1024xf32>
    %c0_12 = arith.constant 0 : index
    %c0_13 = arith.constant 0 : index
    %28 = vector.load %arg5[%c0_12, %c0_13] : memref<1x1024xf32, #tpu.memory_space<vmem>>, vector<1x1024xf32>
    %29 = vector.broadcast %28 : vector<1x1024xf32> to vector<16x1024xf32>
    %30 = arith.addf %27, %29 : vector<16x1024xf32>
    %31 = vector.extract_strided_slice %30 {offsets = [0, 0], sizes = [16, 512], strides = [1, 1]} : vector<16x1024xf32> to vector<16x512xf32>
    %32 = vector.extract_strided_slice %30 {offsets = [0, 512], sizes = [16, 512], strides = [1, 1]} : vector<16x1024xf32> to vector<16x512xf32>
    %cst_14 = arith.constant 5.000000e-01 : f32
    %33 = vector.broadcast %cst_14 : f32 to vector<16x512xf32>
    %34 = arith.mulf %33, %32 : vector<16x512xf32>
    %cst_15 = arith.constant 0.707106769 : f32
    %35 = vector.broadcast %cst_15 : f32 to vector<16x512xf32>
    %36 = arith.mulf %32, %35 : vector<16x512xf32>
    %cst_16 = arith.constant 0.000000e+00 : f32
    %37 = vector.broadcast %cst_16 : f32 to vector<16x512xf32>
    %38 = arith.cmpf oge, %36, %37 : vector<16x512xf32>
    %cst_17 = arith.constant 1.000000e+00 : f32
    %cst_18 = arith.constant -1.000000e+00 : f32
    %39 = vector.broadcast %cst_17 : f32 to vector<16x512xf32>
    %40 = vector.broadcast %cst_18 : f32 to vector<16x512xf32>
    %41 = arith.select %38, %39, %40 : vector<16x512xi1>, vector<16x512xf32>
    %42 = math.absf %36 : vector<16x512xf32>
    %cst_19 = arith.constant 0.327591091 : f32
    %43 = vector.broadcast %cst_19 : f32 to vector<16x512xf32>
    %44 = arith.mulf %43, %42 : vector<16x512xf32>
    %cst_20 = arith.constant 1.000000e+00 : f32
    %45 = vector.broadcast %cst_20 : f32 to vector<16x512xf32>
    %46 = arith.addf %45, %44 : vector<16x512xf32>
    %cst_21 = arith.constant 1.000000e+00 : f32
    %47 = vector.broadcast %cst_21 : f32 to vector<16x512xf32>
    %48 = arith.divf %47, %46 : vector<16x512xf32>
    %cst_22 = arith.constant 1.06140542 : f32
    %49 = vector.broadcast %cst_22 : f32 to vector<16x512xf32>
    %50 = arith.mulf %49, %48 : vector<16x512xf32>
    %cst_23 = arith.constant -1.45315206 : f32
    %51 = vector.broadcast %cst_23 : f32 to vector<16x512xf32>
    %52 = arith.addf %50, %51 : vector<16x512xf32>
    %53 = arith.mulf %52, %48 : vector<16x512xf32>
    %cst_24 = arith.constant 1.42141378 : f32
    %54 = vector.broadcast %cst_24 : f32 to vector<16x512xf32>
    %55 = arith.addf %53, %54 : vector<16x512xf32>
    %56 = arith.mulf %55, %48 : vector<16x512xf32>
    %cst_25 = arith.constant -0.284496725 : f32
    %57 = vector.broadcast %cst_25 : f32 to vector<16x512xf32>
    %58 = arith.addf %56, %57 : vector<16x512xf32>
    %59 = arith.mulf %58, %48 : vector<16x512xf32>
    %cst_26 = arith.constant 0.254829586 : f32
    %60 = vector.broadcast %cst_26 : f32 to vector<16x512xf32>
    %61 = arith.addf %59, %60 : vector<16x512xf32>
    %62 = arith.mulf %61, %48 : vector<16x512xf32>
    %cst_27 = arith.constant 0.000000e+00 : f32
    %63 = vector.broadcast %cst_27 : f32 to vector<16x512xf32>
    %64 = arith.subf %63, %42 : vector<16x512xf32>
    %65 = arith.mulf %64, %42 : vector<16x512xf32>
    %66 = math.exp %65 : vector<16x512xf32>
    %67 = arith.mulf %62, %66 : vector<16x512xf32>
    %cst_28 = arith.constant 1.000000e+00 : f32
    %68 = vector.broadcast %cst_28 : f32 to vector<16x512xf32>
    %69 = arith.subf %68, %67 : vector<16x512xf32>
    %70 = arith.mulf %41, %69 : vector<16x512xf32>
    %cst_29 = arith.constant 1.000000e+00 : f32
    %71 = vector.broadcast %cst_29 : f32 to vector<16x512xf32>
    %72 = arith.addf %71, %70 : vector<16x512xf32>
    %73 = arith.mulf %34, %72 : vector<16x512xf32>
    %74 = arith.mulf %31, %73 : vector<16x512xf32>
    %75 = arith.truncf %74 : vector<16x512xf32> to vector<16x512xbf16>
    %c0_30 = arith.constant 0 : index
    %c0_31 = arith.constant 0 : index
    %76 = vector.load %arg6[%c0_30, %c0_31] : memref<512x128xbf16, #tpu.memory_space<vmem>>, vector<512x128xbf16>
    %cst_32 = arith.constant dense<0.000000e+00> : vector<16x128xf32>
    %77 = tpu.matmul %75, %76, %cst_32 {dimension_numbers = #tpu.dot_dimension_numbers<[1], [0], [0], [1], [0, 0, 1, 1], [], []>} : vector<16x512xbf16>, vector<512x128xbf16>, vector<16x128xf32> -> vector<16x128xf32>
    %c0_33 = arith.constant 0 : index
    %c0_34 = arith.constant 0 : index
    %78 = vector.load %arg7[%c0_33, %c0_34] : memref<1x128xf32, #tpu.memory_space<vmem>>, vector<1x128xf32>
    %79 = vector.broadcast %78 : vector<1x128xf32> to vector<16x128xf32>
    %80 = arith.addf %77, %79 : vector<16x128xf32>
    %81 = arith.addf %80, %0 : vector<16x128xf32>
    %c0_35 = arith.constant 0 : index
    %c0_36 = arith.constant 0 : index
    %82 = vector.load %arg8[%c0_35, %c0_36] : memref<16x128xf32, #tpu.memory_space<vmem>>, vector<16x128xf32>
    tpu.vector_store %arg8[%c0_35, %c0_36], %81 {strides = array<i32>} : memref<16x128xf32, #tpu.memory_space<vmem>>, vector<16x128xf32>,
    return
  }
  func.func @transform_0(%arg0: i32) -> (i32, i32) {
    %c0_i32 = arith.constant 0 : i32
    %c0_i32_0 = arith.constant 0 : i32
    return %arg0, %c0_i32 : i32, i32
  }
  func.func @transform_1(%arg0: i32) -> (i32, i32) {
    %c0_i32 = arith.constant 0 : i32
    %c0_i32_0 = arith.constant 0 : i32
    %c0_i32_1 = arith.constant 0 : i32
    return %c0_i32, %c0_i32_0 : i32, i32
  }
  func.func @transform_2(%arg0: i32) -> (i32, i32) {
    %c0_i32 = arith.constant 0 : i32
    %c0_i32_0 = arith.constant 0 : i32
    %c0_i32_1 = arith.constant 0 : i32
    return %c0_i32, %c0_i32_0 : i32, i32
  }
  func.func @transform_3(%arg0: i32) -> (i32, i32) {
    %c0_i32 = arith.constant 0 : i32
    %c0_i32_0 = arith.constant 0 : i32
    %c0_i32_1 = arith.constant 0 : i32
    return %c0_i32, %c0_i32_0 : i32, i32
  }
  func.func @transform_4(%arg0: i32) -> (i32, i32) {
    %c0_i32 = arith.constant 0 : i32
    %c0_i32_0 = arith.constant 0 : i32
    %c0_i32_1 = arith.constant 0 : i32
    return %c0_i32, %c0_i32_0 : i32, i32
  }
  func.func @transform_5(%arg0: i32) -> (i32, i32) {
    %c0_i32 = arith.constant 0 : i32
    %c0_i32_0 = arith.constant 0 : i32
    %c0_i32_1 = arith.constant 0 : i32
    return %c0_i32, %c0_i32_0 : i32, i32
  }
  func.func @transform_6(%arg0: i32) -> (i32, i32) {
    %c0_i32 = arith.constant 0 : i32
    %c0_i32_0 = arith.constant 0 : i32
    %c0_i32_1 = arith.constant 0 : i32
    return %c0_i32, %c0_i32_0 : i32, i32
  }
  func.func @transform_7(%arg0: i32) -> (i32, i32) {
    %c0_i32 = arith.constant 0 : i32
    %c0_i32_0 = arith.constant 0 : i32
    return %arg0, %c0_i32 : i32, i32
  }
}

module attributes {stable_mosaic.version = 11 : i64} {
  func.func @_proj_out_kernel(%arg0: i32, %arg1: memref<16x128xf32, #tpu.memory_space<vmem>>, %arg2: memref<128x4xbf16, #tpu.memory_space<vmem>>, %arg3: memref<1x4xf32, #tpu.memory_space<vmem>>, %arg4: memref<16x4xf32, #tpu.memory_space<vmem>>, %arg5: memref<16x4xf32, #tpu.memory_space<vmem>>) attributes {dimension_semantics = [#tpu.dimension_semantics<parallel>], iteration_bounds = array<i64: 2>, scalar_prefetch = 0 : i64, scratch_operands = 0 : i64, tpu.core_type = #tpu.core_type<tc>, window_params = [{transform_indices = @transform_0, window_bounds = array<i64: 16, 128>}, {pipeline_mode = #tpu.pipeline_mode<synchronous>, transform_indices = @transform_1, window_bounds = array<i64: 128, 4>}, {pipeline_mode = #tpu.pipeline_mode<synchronous>, transform_indices = @transform_2, window_bounds = array<i64: 1, 4>}, {transform_indices = @transform_3, window_bounds = array<i64: 16, 4>}, {transform_indices = @transform_4, window_bounds = array<i64: 16, 4>}]} {
    %c0 = arith.constant 0 : index
    %c0_0 = arith.constant 0 : index
    %0 = vector.load %arg1[%c0, %c0_0] : memref<16x128xf32, #tpu.memory_space<vmem>>, vector<16x128xf32>
    %1 = arith.truncf %0 : vector<16x128xf32> to vector<16x128xbf16>
    %c0_1 = arith.constant 0 : index
    %c0_2 = arith.constant 0 : index
    %2 = vector.load %arg2[%c0_1, %c0_2] : memref<128x4xbf16, #tpu.memory_space<vmem>>, vector<128x4xbf16>
    %cst = arith.constant dense<0.000000e+00> : vector<16x4xf32>
    %3 = tpu.matmul %1, %2, %cst {dimension_numbers = #tpu.dot_dimension_numbers<[1], [0], [0], [1], [0, 0, 1, 1], [], []>} : vector<16x128xbf16>, vector<128x4xbf16>, vector<16x4xf32> -> vector<16x4xf32>
    %c0_3 = arith.constant 0 : index
    %c0_4 = arith.constant 0 : index
    %4 = vector.load %arg3[%c0_3, %c0_4] : memref<1x4xf32, #tpu.memory_space<vmem>>, vector<1x4xf32>
    %5 = vector.broadcast %4 : vector<1x4xf32> to vector<16x4xf32>
    %6 = arith.addf %3, %5 : vector<16x4xf32>
    %cst_5 = arith.constant 0.000000e+00 : f32
    %7 = vector.broadcast %cst_5 : f32 to vector<16x4xf32>
    %8 = arith.subf %7, %6 : vector<16x4xf32>
    %9 = math.exp %8 : vector<16x4xf32>
    %cst_6 = arith.constant 1.000000e+00 : f32
    %10 = vector.broadcast %cst_6 : f32 to vector<16x4xf32>
    %11 = arith.addf %10, %9 : vector<16x4xf32>
    %cst_7 = arith.constant 1.000000e+00 : f32
    %12 = vector.broadcast %cst_7 : f32 to vector<16x4xf32>
    %13 = arith.divf %12, %11 : vector<16x4xf32>
    %cst_8 = arith.constant 4.000000e-01 : f32
    %14 = vector.broadcast %cst_8 : f32 to vector<16x4xf32>
    %15 = arith.mulf %14, %13 : vector<16x4xf32>
    %cst_9 = arith.constant 2.000000e-01 : f32
    %16 = vector.broadcast %cst_9 : f32 to vector<16x4xf32>
    %17 = arith.subf %15, %16 : vector<16x4xf32>
    %c0_10 = arith.constant 0 : index
    %c0_11 = arith.constant 0 : index
    %18 = vector.load %arg4[%c0_10, %c0_11] : memref<16x4xf32, #tpu.memory_space<vmem>>, vector<16x4xf32>
    %19 = arith.addf %17, %18 : vector<16x4xf32>
    %c0_12 = arith.constant 0 : index
    %c0_13 = arith.constant 0 : index
    %20 = vector.load %arg5[%c0_12, %c0_13] : memref<16x4xf32, #tpu.memory_space<vmem>>, vector<16x4xf32>
    tpu.vector_store %arg5[%c0_12, %c0_13], %19 {strides = array<i32>} : memref<16x4xf32, #tpu.memory_space<vmem>>, vector<16x4xf32>,
    return
  }
  func.func @transform_0(%arg0: i32) -> (i32, i32) {
    %c0_i32 = arith.constant 0 : i32
    %c0_i32_0 = arith.constant 0 : i32
    return %arg0, %c0_i32 : i32, i32
  }
  func.func @transform_1(%arg0: i32) -> (i32, i32) {
    %c0_i32 = arith.constant 0 : i32
    %c0_i32_0 = arith.constant 0 : i32
    %c0_i32_1 = arith.constant 0 : i32
    return %c0_i32, %c0_i32_0 : i32, i32
  }
  func.func @transform_2(%arg0: i32) -> (i32, i32) {
    %c0_i32 = arith.constant 0 : i32
    %c0_i32_0 = arith.constant 0 : i32
    %c0_i32_1 = arith.constant 0 : i32
    return %c0_i32, %c0_i32_0 : i32, i32
  }
  func.func @transform_3(%arg0: i32) -> (i32, i32) {
    %c0_i32 = arith.constant 0 : i32
    %c0_i32_0 = arith.constant 0 : i32
    return %arg0, %c0_i32 : i32, i32
  }
  func.func @transform_4(%arg0: i32) -> (i32, i32) {
    %c0_i32 = arith.constant 0 : i32
    %c0_i32_0 = arith.constant 0 : i32
    return %arg0, %c0_i32 : i32, i32
  }
}

</mosaic_0001>

<bundles_post_ra>
// kernel: point_transformer_forward.5
= control target key start
LH: loop header
LB: loop body
LE: loop exit
PB: predicated region body
PF: predicated region fallthrough
CT: control target
= control target key end

     0   :  { %s354_s12 = smov 0   ;;  %s377_s0 = inlined_call_operand.vmem [shape: f32[32,4], index: 0, kind: input, shape index: {}]   ;;  %s378_s1 = inlined_call_operand.vmem [shape: bf16[4,128], index: 1, kind: input, shape index: {}]   ;;  %s379_s2 = inlined_call_operand.vmem [shape: f32[1,128], index: 2, kind: input, shape index: {}]   ;;  %s380_s3 = inlined_call_operand.vmem [shape: f32[32,128], index: 3, kind: output, shape index: {}]  }
   0x1 LB: > { %s293_s13 = sadd.s32 4294967295, %s330_s12   ;;  %p297_p0 = scmp.ge.s32.totalorder %s330_s12, 1  ;;  %s330_s12 = sphi %s354_s12, %s13_s12  }
   0x2   : > { %p138_p1 = scmp.lt.s32.totalorder %s330_s12, 3 }
   0x4   : > { %p139_p2 = pnand %p297_p0, %p138_p1 }
   0x5   : > { %s298_s16 = sshll.u32 (!%p139_p2), %s293_s13, 1 }
   0x6   : > { %142 = sbr.rel (%p139_p2) target bundleno = 217 (0xd9), region = 32  ;;  %p163_p3 = scmp.lt.s32.totalorder (!%p139_p2), %s298_s16, 3 }
   0xb   : > { %v178_v0 = vld [vmem:[%s378_s1] sm:$0x3]  ;;  %vm190_vm0 = vcmask 1041408   ;;  %v332_v1 = vmov 0.0   ;;  %vm333_vm1 = vmmov 0   ;;  %s382_s16 = smov (!%p163_p3, %s298_s16), 3 }
   0xc   : > { %308 = vmatprep.subr.bf16.mxu0 %v332_v1  ;;  %v192_v2 = vsel %vm190_vm0, %v178_v0, 0  ;;  %310 = vmatprep.mubr.msk.bf16.mxu0 %vm333_vm1, %v332_v1  ;;  %s299_s17 = sshll.u32 %s382_s16, 3  ;;  %vm186_vm2 = vcmask 31744   ;;  %v302_v6 = vld [vmem:[%s379_s2] ss:$0 sm:$0xff] }
   0xd   : > { %309 = vmatpush3.bf16.msra.mxu0 %v192_v2  ;;  %s166_s20 = scalar_lea.vmem %s377_s0, %s299_s17  ;;  %s172_s25 = scalar_lea.vmem %s380_s3, %s299_s17 }
   0xe   : > { %v175_v3 = vld [vmem:[%s166_s20] sm:$0xff]  ;;  %v176_v4 = vld [vmem:[%s166_s20 + $0x8] sm:$0xff] }
   0xf   : > { %v177_v5 = vpack.c.bf16 %v176_v4, %v175_v3 }
  0x11   : > { %311 = vmatmul.mubr.msk.bf16.vlgmr.msra.gmra.mxu0 %vm186_vm2, %v177_v5 }
  0xd1   : > { %v228_v7 = vpop.f32.mrf.mxu0 }
  0xd2   : > { %v229_v8 = vadd.f32 %v302_v6, %v228_v7 }
  0xd3   : > { %v312_v9 = vpop.f32.mrf.mxu0 }
  0xd4   : > { %235 = vst [vmem:[%s172_s25] sm:$0xff] %v229_v8 }
  0xd5   : > { %v231_v10 = vpop.f32.mrf.mxu0 }
  0xd6   : > { %v232_v11 = vadd.f32 %v302_v6, %v231_v10 }
  0xd7   : > { %v313_v12 = vpop.f32.mrf.mxu0 }
  0xd8   : > { %236 = vst [vmem:[%s172_s25 + $0x8] sm:$0xff] %v232_v11 }
  0xd9 PF: > { %s13_s12 = sadd.s32 1, %s330_s12  }
  0xda   : > { %p10_p4 = scmp.ge.s32.totalorder %s13_s12, 4  }
  0xdc   :  { %12 = sbr.rel (!%p10_p4) target bundleno = 1 (0x1), region = 62 }

// kernel: point_transformer_forward.6
= control target key start
LH: loop header
LB: loop body
LE: loop exit
PB: predicated region body
PF: predicated region fallthrough
CT: control target
= control target key end

     0   :  { %9 = vsyncpa [#allocation3], 0  ;;  %s807_s15 = smov 0   ;;  %s874_s0 = inlined_call_operand.vmem [shape: f32[32,128], index: 0, kind: input, shape index: {}]   ;;  %s875_s1 = inlined_call_operand.vmem [shape: f32[1,128], index: 1, kind: input, shape index: {}]   ;;  %s876_s2 = inlined_call_operand.vmem [shape: f32[1,128], index: 2, kind: input, shape index: {}]   ;;  %s877_s3 = inlined_call_operand.hbm [shape: bf16[128,384], index: 3, kind: input, shape index: {}]   ;;  %s878_s4 = inlined_call_operand.vmem [shape: bf16[32,384], index: 4, kind: output, shape index: {}]  }
   0x1 LB: > { %s601_s16 = sadd.s32 4294967295, %s774_s15   ;;  %p603_p0 = scmp.ge.s32.totalorder %s774_s15, 1  ;;  %s774_s15 = sphi %s807_s15, %s15_s15  }
   0x2   : > { %p135_p1 = scmp.lt.s32.totalorder %s774_s15, 3  ;;  %s776_s17 = smov [#allocation2]  }
   0x3   : > { %s153_s18 = sshll.u32 %s776_s17, 4  ;;  %p819_p3 = scmp.eq.s32.totalorder %s601_s16, 0  ;;  %s154_s18 = int_to_ptr.vmem [resolvable:$true] %s153_s18 }
   0x4   : > { %p815_p2 = pnand %p603_p0, %p135_p1  ;;  %s749_s21 = scalar_lea.vmem %s154_s18, 3072 }
   0x5   : > { %p750_p7 = scmp.ne.s32.totalorder %s154_s18, %s749_s21  ;;  %p757_p10 = scmp.lt.s32.totalorder %s154_s18, %s154_s18 }
   0x6   : > { %p682_p4 = pneg %p815_p2  ;;  %p758_p11 = scmp.lt.s32.totalorder %s749_s21, %s749_s21 }
   0x8   : > { %p683_p5 = pnand %p819_p3, %p682_p4  ;;  %p759_p12 = por %p758_p11, %p757_p10 }
   0xa   : > { %p740_p6 = pneg %p683_p5 }
   0xc   : > { %p752_p8 = pnand %p750_p7, %p740_p6 }
   0xe   : > { %p753_p9 = pneg %p752_p8 }
  0x10   : > { %p760_p13 = pnand %p759_p12, %p753_p9 }
  0x12   : > { %763 = shalt.err (!%p760_p13)
}
  0x13   : > { %s777_s22 = smov 192   ;;  %s778_s23 = smov 12  }
  0x14   : > { %685 = dma.hbm_to_vmem [thread:$0]  (!%p683_p5), %s877_s3, 3072, %s154_s18, [#allocation3], %s777_s22, %s777_s22, %s778_s23  }
  0x15   : > { %178 = sbr.rel (%p815_p2) target bundleno = 548 (0x224), region = 36 }
  0x1a   : > { %769 = dma.done.wait (%p819_p3), [#allocation3], 3072  }
  0x1b   : > { %771 = vsyncadd (%p819_p3), [#allocation3], 4294964224  ;;  %s608_s26 = sshll.u32 %s601_s16, 1  ;;  %v702_v2 = vld [vmem:[#allocation2 + $0xac] ss:$12 sps:$4 sm:$0xff]   ;;  %v779_v4 = vmov 0.0  }
  0x1c   : > { %p206_p0 = scmp.lt.s32.totalorder %s608_s26, 3  ;;  %v704_v3 = vld [vmem:[#allocation2 + $0xa8] ss:$12 sps:$4 sm:$0xff]   ;;  %657 = vmatprep.subr.bf16.mxu1 %v779_v4  ;;  %v705_v5 = vld [vmem:[#allocation2 + $0xb0] ss:$12 sps:$4 sm:$0xff]   ;;  %423 = vmatprep.subr.bf16.mxu0 %v702_v2  ;;  %v780_v27 = vmov 0  }
  0x1d   : > { %424 = vmatpush1.bf16.msra.mxu0 %v704_v3  ;;  %658 = vmatpush3.bf16.msra.mxu1 %v705_v5  ;;  %v706_v14 = vld [vmem:[#allocation2 + $0x94] ss:$12 sps:$4 sm:$0xff]   ;;  %v708_v15 = vld [vmem:[#allocation2 + $0x90] ss:$12 sps:$4 sm:$0xff]   ;;  %v709_v16 = vld [vmem:[#allocation2 + $0x98] ss:$12 sps:$4 sm:$0xff]  }
  0x1e   : > { %s882_s26 = smov (!%p206_p0, %s608_s26), 3  ;;  %659 = vmatprep.subr.bf16.mxu1 %v779_v4  ;;  %425 = vmatprep.subr.bf16.mxu0 %v706_v14  ;;  %v710_v17 = vld [vmem:[#allocation2 + $0x7c] ss:$12 sps:$4 sm:$0xff]   ;;  %v712_v18 = vld [vmem:[#allocation2 + $0x78] ss:$12 sps:$4 sm:$0xff]   ;;  %vm781_vm0 = vmmov 0  }
  0x1f   : > { %s609_s27 = sshll.u32 %s882_s26, 3  ;;  %v713_v19 = vld [vmem:[#allocation2 + $0x80] ss:$12 sps:$4 sm:$0xff]   ;;  %v714_v20 = vld [vmem:[#allocation2 + $0x64] ss:$12 sps:$4 sm:$0xff]   ;;  %455 = vmatprep.mubr.bf16.mxu0 %v780_v27  ;;  %673 = vmatprep.mubr.msk.bf16.mxu1 %vm781_vm0, %v779_v4  ;;  %s677_s9 = smul.u32 12, %s882_s26 }
  0x20   : > { %s209_s30 = scalar_lea.vmem %s874_s0, %s609_s27  ;;  %v716_v21 = vld [vmem:[#allocation2 + $0x60] ss:$12 sps:$4 sm:$0xff]   ;;  %v717_v22 = vld [vmem:[#allocation2 + $0x68] ss:$12 sps:$4 sm:$0xff]   ;;  %v721_v25 = vld [vmem:[#allocation2 + $0x50] ss:$12 sps:$4 sm:$0xff]  }
  0x21   : > { %v219_v0 = vld [vmem:[%s209_s30] sm:$0xff]  ;;  %v220_v1 = vld [vmem:[%s209_s30 + $0x8] sm:$0xff]  ;;  %426 = vmatpush1.bf16.msra.mxu0 %v708_v15  ;;  %660 = vmatpush3.bf16.msra.mxu1 %v709_v16  ;;  %v724_v28 = vld [vmem:[#allocation2 + $0x30] ss:$12 sps:$4 sm:$0xff]   ;;  %s216_s12 = scalar_lea.vmem %s878_s4, %s677_s9 }
  0x22   : > { %223 = vadd.xlane.f32.xlu0 %v219_v0  ;;  %661 = vmatprep.subr.bf16.mxu1 %v779_v4  ;;  %v718_v23 = vld [vmem:[#allocation2 + $0x4c] ss:$12 sps:$4 sm:$0xff]   ;;  %v720_v24 = vld [vmem:[#allocation2 + $0x48] ss:$12 sps:$4 sm:$0xff]   ;;  %v730_v33 = vld [vmem:[#allocation2 + $0x4] ss:$12 sps:$4 sm:$0xff]  }
  0x23   : > { %427 = vmatprep.subr.bf16.mxu0 %v710_v17  ;;  %v722_v26 = vld [vmem:[#allocation2 + $0x34] ss:$12 sps:$4 sm:$0xff]   ;;  %v725_v29 = vld [vmem:[#allocation2 + $0x38] ss:$12 sps:$4 sm:$0xff]   ;;  %v726_v30 = vld [vmem:[#allocation2 + $0x1c] ss:$12 sps:$4 sm:$0xff]  }
  0x24   : > { %v728_v31 = vld [vmem:[#allocation2 + $0x18] ss:$12 sps:$4 sm:$0xff]   ;;  %v729_v32 = vld [vmem:[#allocation2 + $0x20] ss:$12 sps:$4 sm:$0xff]   ;;  %v733_v35 = vld [vmem:[#allocation2 + $0x8] ss:$12 sps:$4 sm:$0xff]  }
  0x25   : > { %428 = vmatpush1.bf16.msra.mxu0 %v712_v18  ;;  %662 = vmatpush3.bf16.msra.mxu1 %v713_v19  ;;  %v732_v34 = vld [vmem:[#allocation2] ss:$12 sps:$4 sm:$0xff]  }
  0x26   : > { %225 = vadd.xlane.f32.xlu0 %v220_v1  ;;  %663 = vmatprep.subr.bf16.mxu1 %v779_v4  ;;  %v612_v44 = vld [vmem:[%s875_s1] ss:$0 sm:$0xff] }
  0x27   : > { %429 = vmatprep.subr.bf16.mxu0 %v714_v20  ;;  %v613_v48 = vld [vmem:[%s876_s2] ss:$0 sm:$0xff] }
  0x29   : > { %430 = vmatpush1.bf16.msra.mxu0 %v716_v21  ;;  %664 = vmatpush3.bf16.msra.mxu1 %v717_v22 }
  0x2a   : > { %431 = vmatprep.subr.bf16.mxu0 %v718_v23  ;;  %665 = vmatprep.subr.bf16.mxu1 %v779_v4 }
  0x2d   : > { %432 = vmatpush1.bf16.msra.mxu0 %v720_v24  ;;  %666 = vmatpush3.bf16.msra.mxu1 %v721_v25 }
  0x2e   : > { %433 = vmatprep.subr.bf16.mxu0 %v722_v26  ;;  %667 = vmatprep.subr.bf16.mxu1 %v779_v4 }
  0x31   : > { %434 = vmatpush1.bf16.msra.mxu0 %v724_v28  ;;  %668 = vmatpush3.bf16.msra.mxu1 %v725_v29 }
  0x32   : > { %435 = vmatprep.subr.bf16.mxu0 %v726_v30  ;;  %669 = vmatprep.subr.bf16.mxu1 %v779_v4 }
  0x35   : > { %436 = vmatpush1.bf16.msra.mxu0 %v728_v31  ;;  %670 = vmatpush3.bf16.msra.mxu1 %v729_v32 }
  0x36   : > { %437 = vmatprep.subr.bf16.mxu0 %v730_v33  ;;  %671 = vmatprep.subr.bf16.mxu1 %v779_v4 }
  0x39   : > { %438 = vmatpush1.bf16.msra.mxu0 %v732_v34  ;;  %672 = vmatpush3.bf16.msra.mxu1 %v733_v35 }
  0xab   : > { %v224_v6 = vpop.xlane.xlu0 %223 }
  0xac   : > { %v228_v7 = vmul.f32 0.0078125, %v224_v6 }
  0xae   : > { %v844_v8 = vsub.f32 %v219_v0, %v228_v7 }
  0xaf   : > { %v226_v9 = vpop.xlane.xlu0 %225 }
  0xb0   : > { %v229_v10 = vmul.f32 0.0078125, %v226_v9  ;;  %v232_v11 = vmul.f32 %v844_v8, %v844_v8 }
  0xb2   : > { %v848_v12 = vsub.f32 %v220_v1, %v229_v10  ;;  %234 = vadd.xlane.f32.xlu1 %v232_v11 }
  0xb4   : > { %v233_v13 = vmul.f32 %v848_v12, %v848_v12 }
  0xb6   : > { %236 = vadd.xlane.f32.xlu1 %v233_v13 }
 0x13b   : > { %v235_v36 = vpop.xlane.xlu1 %234 }
 0x13c   : > { %v238_v37 = vmul.f32 0.0078125, %v235_v36 }
 0x13e   : > { %v240_v38 = vadd.f32 1e-05, %v238_v37 }
 0x13f   : > { %v237_v39 = vpop.xlane.xlu1 %236 }
 0x140   : > { %734 = vrsqrt.f32 %v240_v38  ;;  %v239_v40 = vmul.f32 0.0078125, %v237_v39 }
 0x142   : > { %v241_v41 = vadd.f32 1e-05, %v239_v40 }
 0x144   : > { %736 = vrsqrt.f32 %v241_v41 }
 0x14d   : > { %v735_v42 = vpop.eup %734 }
 0x14e   : > { %v244_v43 = vmul.f32 %v735_v42, %v844_v8 }
 0x150   : > { %v252_v47 = vmul.f32 %v612_v44, %v244_v43 }
 0x151   : > { %v737_v45 = vpop.eup %736 }
 0x152   : > { %v245_v46 = vmul.f32 %v737_v45, %v848_v12  ;;  %v260_v50 = vadd.f32 %v613_v48, %v252_v47 }
 0x154   : > { %v253_v49 = vmul.f32 %v612_v44, %v245_v46 }
 0x156   : > { %v261_v51 = vadd.f32 %v613_v48, %v253_v49 }
 0x158   : > { %v262_v52 = vpack.c.bf16 %v261_v51, %v260_v50 }
 0x15a   : > { %456 = vmatmul.mubr.bf16.vlgmr.msra.gmra.mxu0 %v262_v52  ;;  %674 = vmatmul.mubr.bf16.vlgmr.msra.gmra.mxu1 %v262_v52 }
 0x21a   : > { %v457_v53 = vpop.f32.mrf.mxu0  ;;  %v500_v54 = vpop.f32.mrf.mxu1 }
 0x21b   : > { %v645_v55 = vpack.c.bf16 %v500_v54, %v500_v54 }
 0x21c   : > { %v459_v56 = vpop.f32.mrf.mxu0  ;;  %v675_v57 = vpop.f32.mrf.mxu1 }
 0x21d   : > { %528 = vst [vmem:[%s216_s12 + $0x8] sm:$0xf] %v645_v55  ;;  %v644_v58 = vpack.c.bf16 %v459_v56, %v457_v53 }
 0x21e   : > { %v461_v59 = vpop.f32.mrf.mxu0  ;;  %v503_v60 = vpop.f32.mrf.mxu1 }
 0x21f   : > { %527 = vst [vmem:[%s216_s12] sm:$0xff] %v644_v58  ;;  %v647_v61 = vpack.c.bf16 %v503_v60, %v503_v60 }
 0x220   : > { %v463_v62 = vpop.f32.mrf.mxu0  ;;  %v676_v63 = vpop.f32.mrf.mxu1 }
 0x221   : > { %530 = vst [vmem:[%s216_s12 + $0x14] sm:$0xf] %v647_v61  ;;  %v646_v0 = vpack.c.bf16 %v463_v62, %v461_v59 }
 0x223   : > { %529 = vst [vmem:[%s216_s12 + $0xc] sm:$0xff] %v646_v0 }
 0x224 PF: > { %s15_s15 = sadd.s32 1, %s774_s15  }
 0x225   : > { %p12_p1 = scmp.ge.s32.totalorder %s15_s15, 4  }
 0x227   :  { %14 = sbr.rel (!%p12_p1) target bundleno = 1 (0x1), region = 71 }
 0x22c   :  { %555 = vsyncpa [#allocation3], 1 }
 0x22d   :  { %557 = vsyncpa [#allocation3 + $0x1], 1 }

// kernel: point_transformer_forward.7
= control target key start
LH: loop header
LB: loop body
LE: loop exit
PB: predicated region body
PF: predicated region fallthrough
CT: control target
= control target key end

     0   :  { %s1697_s21 = smov 0   ;;  %s1699_s22 = smov 0   ;;  %s1975_s0 = inlined_call_operand.vmem [shape: bf16[2,16,384], index: 0, kind: input, shape index: {}, may-alias: {0,1,2}]   ;;  %s1976_s1 = inlined_call_operand.vmem [shape: bf16[2,16,384], index: 1, kind: input, shape index: {}, may-alias: {0,1,2}]   ;;  %s1977_s2 = inlined_call_operand.vmem [shape: bf16[2,16,384], index: 2, kind: input, shape index: {}, may-alias: {0,1,2}]   ;;  %s1978_s3 = inlined_call_operand.vmem [shape: f32[2,16,128], index: 3, kind: input, shape index: {}]   ;;  %s1979_s4 = inlined_call_operand.vmem [shape: bf16[128,128], index: 4, kind: input, shape index: {}]   ;;  %s1980_s5 = inlined_call_operand.vmem [shape: f32[1,128], index: 5, kind: input, shape index: {}]   ;;  %s1981_s6 = inlined_call_operand.vmem [shape: f32[2,16,128], index: 6, kind: output, shape index: {}]  }
   0x1   :  { %s1701_s23 = smov 0   ;;  %s1703_s24 = smov 0  }
   0x2   :  { %s1705_s25 = smov 0   ;;  %s1707_s26 = smov 0  }
   0x3   :  { %s1709_s27 = smov 0  }
   0x4 LB: > { %s31_s28 = sadd.s32 1, %s1645_s25  ;;  %s35_s29 = sadd.s32 1, %s1649_s26  ;;  %s1653_s27 = sphi %s1709_s27, %s16_s27   ;;  %s1649_s26 = sphi %s1707_s26, %s1988_s26   ;;  %s1645_s25 = sphi %s1705_s25, %s1987_s25   ;;  %s1641_s24 = sphi %s1703_s24, %s1986_s24   ;;  %s1637_s23 = sphi %s1701_s23, %s1985_s23   ;;  %s1633_s22 = sphi %s1699_s22, %s1984_s22   ;;  %s1629_s21 = sphi %s1697_s21, %s1983_s21  }
   0x5   : > { %p33_p0 = scmp.ge.s32.totalorder %s31_s28, 2  ;;  %p79_p1 = scmp.ne.s32.totalorder %s1633_s22, %s1629_s21 }
   0x6   : > { %p80_p2 = scmp.eq.s32.totalorder %s1653_s27, 0  ;;  %s72_s8 = sadd.s32 1, %s1633_s22 }
   0x7   : > { %s1990_s28 = smov (%p33_p0, %s31_s28), 0  ;;  %s1992_s29 = smov (!%p33_p0, %s35_s29), %s1649_s26 }
   0x8   : > { %p1740_p3 = por %p80_p2, %p79_p1  ;;  %p37_p4 = scmp.ge.s32.totalorder %s1992_s29, 2 }
   0x9   : > { %p1365_p6 = scmp.ge.s32.totalorder %s1653_s27, 4 }
   0xa   : > { %s1994_s29 = smov (%p37_p4, %s1992_s29), 0 }
   0xb   : > { %s67_s7 = ssub.s32 %s1649_s26, %s1994_s29  ;;  %237 = sbr.rel (%p1365_p6) target bundleno = 28 (0x1c), region = 24 }
   0xc   : > { %p70_p5 = scmp.eq.s32.totalorder %s67_s7, 0 }
   0xe   : > { %s1750_s9 = scalar_select %p70_p5, %s1633_s22, %s72_s8  }
  0x10   : > { %252 = sbr.rel (!%p1740_p3) target bundleno = 22 (0x16), region = 32  ;;  %s254_s10 = sand.u32 (%p1740_p3), 1, %s1633_s22  }
  0x11   : > { %s1367_s11 = smul.u32 (%p1740_p3), 24, %s1649_s26  ;;  %s1366_s12 = sshll.u32 (%p1740_p3), %s254_s10, 3 }
  0x12   : > { %s256_s16 = scalar_lea.vmem (%p1740_p3), [#allocation5], %s1366_s12 }
  0x13   : > { %s1246_s15 = scalar_lea.vmem (%p1740_p3), %s1976_s1, %s1367_s11 }
  0x14   : > { %v1368_v0 = vld [vmem:[%s1246_s15 + $0x4] sm:$0xf] (%p1740_p3)  ;;  %v1369_v1 = vld [vmem:[%s1246_s15 + $0x10] sm:$0xf] (%p1740_p3) }
  0x15   : > { %281 = vst [vmem:[%s256_s16] sm:$0xf] %v1368_v0  ;;  %283 = vst [vmem:[%s256_s16 + $0x4] sm:$0xf] %v1369_v1 }
  0x16 PF: > { %311 = sbr.rel (!%p1740_p3) target bundleno = 28 (0x1c), region = 73  ;;  %s313_s17 = sand.u32 (%p1740_p3), 1, %s1633_s22  }
  0x17   : > { %s1371_s18 = smul.u32 (%p1740_p3), 24, %s1649_s26  ;;  %s1370_s19 = sshll.u32 (%p1740_p3), %s313_s17, 3 }
  0x18   : > { %s315_s10 = scalar_lea.vmem (%p1740_p3), [#allocation6], %s1370_s19 }
  0x19   : > { %s1254_s8 = scalar_lea.vmem (%p1740_p3), %s1977_s2, %s1371_s18 }
  0x1a   : > { %v1372_v2 = vld [vmem:[%s1254_s8 + $0x8] sm:$0xf] (%p1740_p3)  ;;  %v1373_v3 = vld [vmem:[%s1254_s8 + $0x14] sm:$0xf] (%p1740_p3) }
  0x1b   : > { %340 = vst [vmem:[%s315_s10] sm:$0xf] %v1372_v2  ;;  %342 = vst [vmem:[%s315_s10 + $0x4] sm:$0xf] %v1373_v3 }
  0x1c PF: > { %p1374_p7 = scmp.ge.s32.totalorder %s1653_s27, 1  ;;  %p380_p8 = scmp.lt.s32.totalorder %s1653_s27, 5 }
  0x1e   : > { %p381_p9 = pnand %p1374_p7, %p380_p8 }
  0x1f   : > { %s387_s30 = sand.u32 (!%p381_p9), 1, %s1629_s21   ;;  %p447_p10 = scmp.lt.s32.totalorder (!%p381_p9), %s1641_s24, 1 }
  0x20   : > { %384 = sbr.rel (%p381_p9) target bundleno = 1619 (0x653), region = 118  ;;  %s1772_s11 = sshll.u32 (!%p381_p9), %s387_s30, 3 }
  0x21   : > { %p449_p11 = scmp.lt.s32.totalorder (!%p381_p9), %s1637_s23, 1  ;;  %s389_s21 = scalar_lea.vmem (!%p381_p9), [#allocation5], %s1772_s11 }
  0x22   : > { %s1657_s13 = smov (!%p381_p9), 96   ;;  %s1658_s20 = smov (!%p381_p9), 64  }
  0x23   : > { %s1661_s7 = smov (!%p381_p9), 32   ;;  %s396_s8 = scalar_lea.vmem (!%p381_p9), [#allocation6], %s1772_s11 }
  0x25   : > { %vm488_vm0 = vcmask 261120   ;;  %v1655_v4 = vmov 0.0   ;;  %vm1656_vm1 = vmmov 0   ;;  %v1564_v5 = vld [vmem:[%s389_s21] sm:$0xff]   ;;  %s1996_s24 = smov (!%p447_p10, %s1641_s24), 1  ;;  %s1998_s23 = smov (!%p449_p11, %s1637_s23), 1 }
  0x26   : > { %1429 = vmatprep.subr.bf16.mxu0 %v1655_v4  ;;  %489 = vst.msk [vmem:[#allocation4] sm:$0xff] %vm488_vm0, %v1655_v4  ;;  %490 = vst.msk [vmem:[#allocation4 + $0x8] sm:$0xff] %vm488_vm0, %v1655_v4  ;;  %1431 = vmatprep.mubr.msk.bf16.mxu0 %vm1656_vm1, %v1655_v4  ;;  %v508_v6 = vsel %vm488_vm0, %v1564_v5, 0  ;;  %s1498_s12 = smul.u32 6, %s1996_s24  ;;  %vm479_vm2 = vcmask 7168   ;;  %v1659_v9 = vmov -inf  }
  0x27   : > { %491 = vst.msk [vmem:[#allocation4 + $0x10] sm:$0xff] %vm488_vm0, %v1655_v4  ;;  %492 = vst.msk [vmem:[#allocation4 + $0x18] sm:$0xff] %vm488_vm0, %v1655_v4  ;;  %1453 = vmatprep.subr.bf16.mxu1 %v1655_v4  ;;  %1455 = vmatprep.mubr.msk.bf16.mxu1 %vm1656_vm1, %v1655_v4  ;;  %s1497_s14 = smul.u32 3, %s1998_s23  ;;  %vm551_vm3 = vcmask 130048   ;;  %v1660_v20 = vmov 0   ;;  %v1842_v30 = vld [vmem:[%s396_s8] sm:$0xff]  }
  0x28   : > { %640 = vrot.lane.b32.xlu1 %v1564_v5, %s1657_s13  ;;  %1430 = vmatpush3.bf16.xpose.msra.mxu0 %v508_v6  ;;  %480 = vst.msk [vmem:[#allocation2] sm:$0xff] %vm479_vm2, %v1659_v9  ;;  %481 = vst.msk [vmem:[#allocation2 + $0x8] sm:$0xff] %vm479_vm2, %v1659_v9  ;;  %vm1089_vm4 = vcmask 523264   ;;  %vm1091_vm5 = vcmask 785408  }
  0x29   : > { %1435 = vmatprep.subr.bf16.mxu0 %v1655_v4  ;;  %s453_s15 = sadd.s32 %s1498_s12, %s1497_s14  ;;  %482 = vst.msk [vmem:[#allocation2 + $0x10] sm:$0xff] %vm479_vm2, %v1659_v9  ;;  %483 = vst.msk [vmem:[#allocation2 + $0x18] sm:$0xff] %vm479_vm2, %v1659_v9  ;;  %1562 = vset.pattern.permute.xlu0 %v1660_v20 }
  0x2a   : > { %s1377_s16 = sshll.u32 %s453_s15, 2  ;;  %484 = vst.msk [vmem:[#allocation3] sm:$0xff] %vm479_vm2, %v1655_v4  ;;  %485 = vst.msk [vmem:[#allocation3 + $0x8] sm:$0xff] %vm479_vm2, %v1655_v4  ;;  %1563 = vset.pattern.permute.xlu1 %v1660_v20 }
  0x2b   : > { %s455_s19 = scalar_lea.vmem %s1975_s0, %s1377_s16  ;;  %486 = vst.msk [vmem:[#allocation3 + $0x10] sm:$0xff] %vm479_vm2, %v1655_v4  ;;  %487 = vst.msk [vmem:[#allocation3 + $0x18] sm:$0xff] %vm479_vm2, %v1655_v4 }
  0x2c   : > { %v493_v7 = vld [vmem:[%s455_s19] sm:$0xf] }
  0x2d   : > { %v1386_v8 = vcombine.low %v493_v7, %v493_v7 }
  0x2f   : > { %1432 = vmatmul.mubr.msk.bf16.vlgmr.msra.gmra.mxu0 %vm488_vm0, %v493_v7  ;;  %638 = vrot.lane.b32.xlu1 %v1386_v8, %s1657_s13  ;;  %v1831_v25 = vld [vmem:[#allocation2] sm:$0xff]  ;;  %v689_v6 = vld [vmem:[#allocation2 + $0x8] sm:$0xff] }
  0x30   : > { %1437 = vmatprep.mubr.msk.bf16.mxu0 %vm1656_vm1, %v1655_v4  ;;  %1436 = vmatpush3.bf16.msra.mxu0 %v1842_v30  ;;  %v822_v40 = vld [vmem:[#allocation2 + $0x10] sm:$0xff]  ;;  %v955_v9 = vld [vmem:[#allocation2 + $0x18] sm:$0xff] }
  0x31   : > { %1441 = vmatprep.subr.bf16.mxu0 %v1655_v4 }
  0x32   : > { %v839_v1 = vld [vmem:[#allocation3 + $0x10] sm:$0xff] }
  0x33   : > { %773 = vrot.lane.b32.xlu1 %v1564_v5, %s1658_s20 }
  0x37   : > { %771 = vrot.lane.b32.xlu1 %v1386_v8, %s1658_s20 }
  0x3b   : > { %906 = vrot.lane.b32.xlu1 %v1564_v5, %s1661_s7 }
  0x3f   : > { %904 = vrot.lane.b32.xlu1 %v1386_v8, %s1661_s7 }
  0x9a   : > { %v641_v10 = vpop.permute.xlu1 %640 }
  0x9b   : > { %v646_v39 = vsel %vm488_vm0, %v641_v10, 0 }
  0xa1   : > { %v639_v11 = vpop.permute.xlu1 %638 }
  0xa5   : > { %v774_v12 = vpop.permute.xlu1 %773 }
  0xa6   : > { %v779_v13 = vsel %vm488_vm0, %v774_v12, 0 }
  0xa7   : > { %1454 = vmatpush3.bf16.xpose.msra.mxu1 %v779_v13 }
  0xa8   : > { %1465 = vmatprep.subr.bf16.mxu1 %v1655_v4 }
  0xa9   : > { %v772_v14 = vpop.permute.xlu1 %771 }
  0xad   : > { %v907_v29 = vpop.permute.xlu1 %906 }
  0xae   : > { %1456 = vmatmul.mubr.msk.bf16.vlgmr.msra.gmra.mxu1 %vm488_vm0, %v772_v14  ;;  %v912_v31 = vsel %vm488_vm0, %v907_v29, 0 }
  0xaf   : > { %1467 = vmatprep.mubr.msk.bf16.mxu1 %vm1656_vm1, %v1655_v4  ;;  %1466 = vmatpush3.bf16.xpose.msra.mxu1 %v912_v31 }
  0xb0   : > { %1477 = vmatprep.subr.bf16.mxu1 %v1655_v4 }
  0xb1   : > { %v905_v32 = vpop.permute.xlu1 %904 }
  0xb6   : > { %1468 = vmatmul.mubr.msk.bf16.vlgmr.msra.gmra.mxu1 %vm488_vm0, %v905_v32 }
  0xb7   : > { %1493 = vmatprep.mubr.msk.bf16.mxu1 %vm1656_vm1, %v1655_v4 }
  0xef   : > { %v544_v15 = vpop.f32.mrf.mxu0 }
  0xf0   : > { %v552_v16 = vsel %vm551_vm3, %v544_v15, -inf }
  0xf1   : > { %553 = vmax.xlane.f32.xlu0 %v552_v16  ;;  %v1433_v17 = vpop.f32.mrf.mxu0 }
  0xf3   : > { %v547_v18 = vpop.f32.mrf.mxu0 }
  0xf5   : > { %v1434_v19 = vpop.f32.mrf.mxu0 }
 0x16e   : > { %v815_v21 = vpop.f32.mrf.mxu1 }
 0x16f   : > { %v823_v33 = vsel %vm551_vm3, %v815_v21, -inf }
 0x170   : > { %v1457_v22 = vpop.f32.mrf.mxu1 }
 0x172   : > { %v818_v23 = vpop.f32.mrf.mxu1 }
 0x174   : > { %v1458_v24 = vpop.f32.mrf.mxu1 }
 0x176   : > { %v948_v44 = vpop.f32.mrf.mxu1 }
 0x177   : > { %v956_v60 = vsel %vm551_vm3, %v948_v44, -inf }
 0x178   : > { %v1469_v45 = vpop.f32.mrf.mxu1 }
 0x179   : > { %v972_v45 = vld [vmem:[#allocation3 + $0x18] sm:$0xff] }
 0x17a   : > { %v554_v26 = vpop.xlane.xlu0 %553  ;;  %v951_v46 = vpop.f32.mrf.mxu1 }
 0x17b   : > { %v1834_v27 = vmax.f32 %v1831_v25, %v554_v26 }
 0x17c   : > { %v1470_v47 = vpop.f32.mrf.mxu1 }
 0x17d   : > { %v556_v28 = vsub.f32 %v1831_v25, %v1834_v27  ;;  %634 = vst.msk [vmem:[#allocation2] sm:$0xff] %vm479_vm2, %v1834_v27  ;;  %561 = vperm.xlu0 %1562, %v1834_v27   ;;  %v567_v25 = vld [vmem:[#allocation3] sm:$0xff] }
 0x19c   : > { %824 = vmax.xlane.f32.xlu0 %v823_v33 }
 0x1f8   : > { %v562_v34 = vpop.permute.xlu0 %561 }
 0x1f9   : > { %v564_v35 = vsub.f32 %v544_v15, %v562_v34 }
 0x1fb   : > { %v565_v36 = vmul.f32 1.442695, %v564_v35 }
 0x1fd   : > { %1575 = vpow2.f32 %v565_v36  ;;  %v557_v36 = vmul.f32 1.442695, %v556_v28 }
 0x20a   : > { %v1852_v37 = vpop.eup %1575 }
 0x20b   : > { %v582_v38 = vpack.c.bf16 %v1852_v37, %v1852_v37  ;;  %v569_v29 = vsel %vm551_vm3, %v1852_v37, 0.0 }
 0x20d   : > { %1438 = vmatmul.mubr.msk.bf16.vlgmr.msra.gmra.mxu0 %vm551_vm3, %v582_v38 }
 0x20e   : > { %1442 = vmatpush3.bf16.xpose.msra.mxu0 %v646_v39  ;;  %1443 = vmatprep.mubr.msk.bf16.mxu0 %vm1656_vm1, %v1655_v4 }
 0x20f   : > { %1447 = vmatprep.subr.bf16.mxu0 %v1655_v4 }
 0x215   : > { %1444 = vmatmul.mubr.msk.bf16.vlgmr.msra.gmra.mxu0 %vm488_vm0, %v639_v11 }
 0x216   : > { %1449 = vmatprep.mubr.msk.bf16.mxu0 %vm1656_vm1, %v1655_v4 }
 0x225   : > { %v825_v41 = vpop.xlane.xlu0 %824 }
 0x226   : > { %v826_v42 = vmax.f32 %v822_v40, %v825_v41 }
 0x228   : > { %v827_v43 = vsub.f32 %v822_v40, %v826_v42  ;;  %903 = vst.msk [vmem:[#allocation2 + $0x10] sm:$0xff] %vm479_vm2, %v826_v42  ;;  %832 = vperm.xlu0 %1562, %v826_v42   ;;  %v706_v42 = vld [vmem:[#allocation3 + $0x8] sm:$0xff] }
 0x22a   : > { %v828_v63 = vmul.f32 1.442695, %v827_v43 }
 0x2a3   : > { %v833_v48 = vpop.permute.xlu0 %832 }
 0x2a4   : > { %v835_v49 = vsub.f32 %v815_v21, %v833_v48 }
 0x2a6   : > { %v836_v50 = vmul.f32 1.442695, %v835_v49 }
 0x2a8   : > { %1577 = vpow2.f32 %v836_v50 }
 0x2a9   : > { %1579 = vpow2.f32 %v828_v63 }
 0x2b5   : > { %v1865_v51 = vpop.eup %1577 }
 0x2b6   : > { %v841_v52 = vsel %vm551_vm3, %v1865_v51, 0.0  ;;  %v1580_v0 = vpop.eup %1579  ;;  %v854_v32 = vpack.c.bf16 %v1865_v51, %v1865_v51 }
 0x2b7   : > { %842 = vadd.xlane.f32.xlu0 %v841_v52  ;;  %v840_v2 = vmul.f32 %v1580_v0, %v839_v1  ;;  %v714_v1 = vld [vmem:[#allocation4 + $0x8] sm:$0xff] }
 0x2cd   : > { %v1869_v53 = vpop.f32.mrf.mxu0 }
 0x2cf   : > { %v1439_v54 = vpop.f32.mrf.mxu0 }
 0x2d1   : > { %v629_v55 = vpop.f32.mrf.mxu0 }
 0x2d3   : > { %v1440_v56 = vpop.f32.mrf.mxu0 }
 0x2d5   : > { %v682_v57 = vpop.f32.mrf.mxu0 }
 0x2d6   : > { %v690_v58 = vsel %vm551_vm3, %v682_v57, -inf }
 0x2d7   : > { %691 = vmax.xlane.f32.xlu1 %v690_v58  ;;  %v1445_v59 = vpop.f32.mrf.mxu0  ;;  %v575_v58 = vld [vmem:[#allocation4] sm:$0xff] }
 0x2d9   : > { %v685_v61 = vpop.f32.mrf.mxu0 }
 0x2db   : > { %957 = vmax.xlane.f32.xlu1 %v956_v60  ;;  %v1446_v62 = vpop.f32.mrf.mxu0 }
 0x340   : > { %v843_v3 = vpop.xlane.xlu0 %842 }
 0x341   : > { %v844_v5 = vadd.f32 %v843_v3, %v840_v2 }
 0x343   : > { %845 = vst.msk [vmem:[#allocation3 + $0x10] sm:$0xff] %vm479_vm2, %v844_v5 }
 0x34a   : > { %v1059_v35 = vld [vmem:[#allocation3 + $0x10] sm:$0xff] }
 0x360   : > { %v692_v7 = vpop.xlane.xlu1 %691 }
 0x361   : > { %v693_v8 = vmax.f32 %v689_v6, %v692_v7 }
 0x363   : > { %v694_v10 = vsub.f32 %v689_v6, %v693_v8  ;;  %770 = vst.msk [vmem:[#allocation2 + $0x8] sm:$0xff] %vm479_vm2, %v693_v8  ;;  %699 = vperm.xlu1 %1563, %v693_v8   ;;  %v847_v8 = vld [vmem:[#allocation4 + $0x10] sm:$0xff] }
 0x364   : > { %v958_v11 = vpop.xlane.xlu1 %957 }
 0x365   : > { %v959_v12 = vmax.f32 %v955_v9, %v958_v11  ;;  %v695_v34 = vmul.f32 1.442695, %v694_v10  ;;  %v1567_v11 = vld [vmem:[%s1979_s4 + $0x38] sm:$0xff]  }
 0x366   : > { %1478 = vmatpush3.bf16.msra.mxu1 %v1567_v11 }
 0x367   : > { %v960_v13 = vsub.f32 %v955_v9, %v959_v12  ;;  %1036 = vst.msk [vmem:[#allocation2 + $0x18] sm:$0xff] %vm479_vm2, %v959_v12  ;;  %965 = vperm.xlu1 %1563, %v959_v12   ;;  %1479 = vmatprep.subr.bf16.mxu1 %v1655_v4 }
 0x369   : > { %v961_v31 = vmul.f32 1.442695, %v960_v13 }
 0x36b   : > { %722 = vrot.lane.b32.xlu1 %v1842_v30, %s1657_s13 }
 0x36f   : > { %855 = vrot.lane.b32.xlu1 %v1842_v30, %s1658_s20 }
 0x373   : > { %988 = vrot.lane.b32.xlu1 %v1842_v30, %s1661_s7 }
 0x3de   : > { %v700_v14 = vpop.permute.xlu1 %699 }
 0x3df   : > { %v702_v15 = vsub.f32 %v682_v57, %v700_v14  ;;  %v1568_v14 = vld [vmem:[%s1979_s4 + $0x30] sm:$0xff]  }
 0x3e0   : > { %1480 = vmatpush3.bf16.msra.mxu1 %v1568_v14 }
 0x3e1   : > { %v703_v16 = vmul.f32 1.442695, %v702_v15  ;;  %1481 = vmatprep.subr.bf16.mxu1 %v1655_v4 }
 0x3e2   : > { %v966_v17 = vpop.permute.xlu1 %965 }
 0x3e3   : > { %1581 = vpow2.f32 %v703_v16  ;;  %v968_v18 = vsub.f32 %v948_v44, %v966_v17  ;;  %v980_v16 = vld [vmem:[#allocation4 + $0x18] sm:$0xff] }
 0x3e5   : > { %v969_v19 = vmul.f32 1.442695, %v968_v18  ;;  %v1569_v18 = vld [vmem:[%s1979_s4 + $0x28] sm:$0xff]  }
 0x3e6   : > { %v723_v20 = vpop.permute.xlu1 %722  ;;  %1482 = vmatpush3.bf16.msra.mxu1 %v1569_v18 }
 0x3e7   : > { %1583 = vpow2.f32 %v969_v19  ;;  %1448 = vmatpush3.bf16.msra.mxu0 %v723_v20  ;;  %1483 = vmatprep.subr.bf16.mxu1 %v1655_v4 }
 0x3e8   : > { %1459 = vmatprep.subr.bf16.mxu0 %v1655_v4  ;;  %1585 = vpow2.f32 %v961_v31  ;;  %v1571_v31 = vld [vmem:[%s1979_s4 + $0x18] sm:$0xff]  }
 0x3e9   : > { %1587 = vpow2.f32 %v695_v34  ;;  %v1573_v34 = vld [vmem:[%s1979_s4 + $0x8] sm:$0xff]  }
 0x3ea   : > { %v856_v24 = vpop.permute.xlu1 %855  ;;  %1589 = vrcp.f32 %v1059_v35  ;;  %v1574_v35 = vld [vmem:[%s1979_s4] sm:$0xff]  }
 0x3eb   : > { %1591 = vpow2.f32 %v557_v36 }
 0x3ee   : > { %v989_v33 = vpop.permute.xlu1 %988 }
 0x3f0   : > { %v1582_v21 = vpop.eup %1581 }
 0x3f1   : > { %v708_v22 = vsel %vm551_vm3, %v1582_v21, 0.0  ;;  %v721_v23 = vpack.c.bf16 %v1582_v21, %v1582_v21 }
 0x3f2   : > { %709 = vadd.xlane.f32.xlu1 %v708_v22 }
 0x3f3   : > { %1450 = vmatmul.mubr.msk.bf16.vlgmr.msra.gmra.mxu0 %vm551_vm3, %v721_v23  ;;  %v1570_v23 = vld [vmem:[%s1979_s4 + $0x20] sm:$0xff]  }
 0x3f4   : > { %v1584_v26 = vpop.eup %1583  ;;  %1460 = vmatpush3.bf16.msra.mxu0 %v856_v24  ;;  %1461 = vmatprep.mubr.msk.bf16.mxu0 %vm1656_vm1, %v1655_v4 }
 0x3f5   : > { %v974_v30 = vsel %vm551_vm3, %v1584_v26, 0.0  ;;  %1471 = vmatprep.subr.bf16.mxu0 %v1655_v4  ;;  %v987_v37 = vpack.c.bf16 %v1584_v26, %v1584_v26  ;;  %v1586_v38 = vpop.eup %1585  ;;  %1484 = vmatpush3.bf16.msra.mxu1 %v1570_v23 }
 0x3f6   : > { %570 = vadd.xlane.f32.xlu1 %v569_v29  ;;  %975 = vadd.xlane.f32.xlu0 %v974_v30  ;;  %v1588_v39 = vpop.eup %1587  ;;  %v973_v28 = vmul.f32 %v1586_v38, %v972_v45 }
 0x3f7   : > { %v1590_v40 = vpop.eup %1589  ;;  %v707_v43 = vmul.f32 %v1588_v39, %v706_v42  ;;  %1485 = vmatprep.subr.bf16.mxu1 %v1655_v4 }
 0x3f8   : > { %v1592_v41 = vpop.eup %1591 }
 0x3f9   : > { %v568_v46 = vmul.f32 %v1592_v41, %v567_v25  ;;  %1486 = vmatpush3.bf16.msra.mxu1 %v1571_v31 }
 0x3fa   : > { %1487 = vmatprep.subr.bf16.mxu1 %v1655_v4 }
 0x3fb   : > { %1462 = vmatmul.mubr.msk.bf16.vlgmr.msra.gmra.mxu0 %vm551_vm3, %v854_v32 }
 0x3fc   : > { %1472 = vmatpush3.bf16.msra.mxu0 %v989_v33  ;;  %1473 = vmatprep.mubr.msk.bf16.mxu0 %vm1656_vm1, %v1655_v4  ;;  %v1572_v33 = vld [vmem:[%s1979_s4 + $0x10] sm:$0xff]  }
 0x3fd   : > { %1488 = vmatpush3.bf16.msra.mxu1 %v1572_v33 }
 0x3fe   : > { %1489 = vmatprep.subr.bf16.mxu1 %v1655_v4 }
 0x401   : > { %1490 = vmatpush3.bf16.msra.mxu1 %v1573_v34 }
 0x402   : > { %1491 = vmatprep.subr.bf16.mxu1 %v1655_v4 }
 0x403   : > { %1474 = vmatmul.mubr.msk.bf16.vlgmr.msra.gmra.mxu0 %vm551_vm3, %v987_v37 }
 0x405   : > { %1492 = vmatpush3.bf16.msra.mxu1 %v1574_v35 }
 0x407   : > { %850 = vperm.xlu1 %1563, %v1580_v0  }
 0x40b   : > { %983 = vperm.xlu1 %1563, %v1586_v38  }
 0x40c   : > { %717 = vperm.xlu0 %1562, %v1588_v39  }
 0x40f   : > { %1063 = vperm.xlu1 %1563, %v1590_v40  }
 0x413   : > { %578 = vperm.xlu1 %1563, %v1592_v41  }
 0x47b   : > { %v710_v44 = vpop.xlane.xlu1 %709 }
 0x47c   : > { %v711_v27 = vadd.f32 %v710_v44, %v707_v43 }
 0x47e   : > { %712 = vst.msk [vmem:[#allocation3 + $0x8] sm:$0xff] %vm479_vm2, %v711_v27 }
 0x47f   : > { %v976_v47 = vpop.xlane.xlu0 %975  ;;  %v571_v48 = vpop.xlane.xlu1 %570 }
 0x480   : > { %v977_v49 = vadd.f32 %v976_v47, %v973_v28  ;;  %v572_v50 = vadd.f32 %v571_v48, %v568_v46  ;;  %v1393_v48 = vld [vmem:[%s1980_s5] ss:$0 sm:$0xff] }
 0x482   : > { %978 = vst.msk [vmem:[#allocation3 + $0x18] sm:$0xff] %vm479_vm2, %v977_v49  ;;  %574 = vst.msk [vmem:[#allocation3] sm:$0xff] %vm479_vm2, %v572_v50 }
 0x483   : > { %v851_v51 = vpop.permute.xlu1 %850 }
 0x485   : > { %v1050_v52 = vld [vmem:[#allocation3 + $0x8] sm:$0xff] }
 0x486   : > { %1593 = vrcp.f32 %v1050_v52 }
 0x487   : > { %v984_v54 = vpop.permute.xlu1 %983  ;;  %v718_v2 = vpop.permute.xlu0 %717 }
 0x488   : > { %v720_v3 = vmul.f32 %v718_v2, %v714_v1  ;;  %v986_v20 = vmul.f32 %v984_v54, %v980_v16 }
 0x489   : > { %v1068_v55 = vld [vmem:[#allocation3 + $0x18] sm:$0xff]  ;;  %v1041_v57 = vld [vmem:[#allocation3] sm:$0xff] }
 0x48a   : > { %1595 = vrcp.f32 %v1068_v55 }
 0x48b   : > { %v1064_v56 = vpop.permute.xlu1 %1063  ;;  %1597 = vrcp.f32 %v1041_v57 }
 0x48f   : > { %v579_v59 = vpop.permute.xlu1 %578 }
 0x490   : > { %v581_v60 = vmul.f32 %v579_v59, %v575_v58 }
 0x492   : > { %v632_v61 = vadd.f32 %v1869_v53, %v581_v60  ;;  %v853_v53 = vmul.f32 %v851_v51, %v847_v8 }
 0x493   : > { %v1594_v62 = vpop.eup %1593 }
 0x494   : > { %633 = vst.msk [vmem:[#allocation4] sm:$0xff] %vm488_vm0, %v632_v61  ;;  %1054 = vperm.xlu0 %1562, %v1594_v62  }
 0x497   : > { %v1596_v63 = vpop.eup %1595 }
 0x498   : > { %1072 = vperm.xlu0 %1562, %v1596_v63   ;;  %v1598_v0 = vpop.eup %1597 }
 0x49b   : > { %v1040_v43 = vld [vmem:[#allocation4] sm:$0xff] }
 0x49c   : > { %1045 = vperm.xlu0 %1562, %v1598_v0  }
 0x4b3   : > { %v762_v5 = vpop.f32.mrf.mxu0 }
 0x4b4   : > { %v768_v6 = vadd.f32 %v762_v5, %v720_v3 }
 0x4b5   : > { %v1451_v7 = vpop.f32.mrf.mxu0 }
 0x4b6   : > { %769 = vst.msk [vmem:[#allocation4 + $0x8] sm:$0xff] %vm488_vm0, %v768_v6 }
 0x4b7   : > { %v765_v9 = vpop.f32.mrf.mxu0 }
 0x4b9   : > { %v1452_v10 = vpop.f32.mrf.mxu0 }
 0x4bb   : > { %v895_v12 = vpop.f32.mrf.mxu0 }
 0x4bc   : > { %v901_v13 = vadd.f32 %v895_v12, %v853_v53 }
 0x4bd   : > { %v1463_v15 = vpop.f32.mrf.mxu0  ;;  %v1049_v37 = vld [vmem:[#allocation4 + $0x8] sm:$0xff] }
 0x4be   : > { %902 = vst.msk [vmem:[#allocation4 + $0x10] sm:$0xff] %vm488_vm0, %v901_v13 }
 0x4bf   : > { %v898_v17 = vpop.f32.mrf.mxu0 }
 0x4c1   : > { %v1464_v19 = vpop.f32.mrf.mxu0 }
 0x4c3   : > { %v1028_v21 = vpop.f32.mrf.mxu0 }
 0x4c4   : > { %v1034_v22 = vadd.f32 %v1028_v21, %v986_v20 }
 0x4c5   : > { %v1475_v24 = vpop.f32.mrf.mxu0  ;;  %v1058_v26 = vld [vmem:[#allocation4 + $0x10] sm:$0xff] }
 0x4c6   : > { %1035 = vst.msk [vmem:[#allocation4 + $0x18] sm:$0xff] %vm488_vm0, %v1034_v22  ;;  %v1066_v29 = vmul.f32 %v1064_v56, %v1058_v26 }
 0x4c7   : > { %v1031_v30 = vpop.f32.mrf.mxu0 }
 0x4c8   : > { %1081 = vrot.lane.b32.xlu0 %v1066_v29, %s1658_s20 }
 0x4c9   : > { %v1476_v32 = vpop.f32.mrf.mxu0 }
 0x4cd   : > { %v1067_v40 = vld [vmem:[#allocation4 + $0x18] sm:$0xff] }
 0x50f   : > { %v1055_v36 = vpop.permute.xlu0 %1054 }
 0x510   : > { %v1057_v38 = vmul.f32 %v1055_v36, %v1049_v37 }
 0x512   : > { %1077 = vrot.lane.b32.xlu1 %v1057_v38, %s1661_s7  ;;  %s1378_s7 = sshll.u32 %s1996_s24, 1 }
 0x513   : > { %v1073_v39 = vpop.permute.xlu0 %1072  ;;  %s463_s21 = sadd.s32 %s1378_s7, %s1998_s23 }
 0x514   : > { %v1075_v41 = vmul.f32 %v1073_v39, %v1067_v40  ;;  %s1379_s12 = sshll.u32 %s463_s21, 3 }
 0x515   : > { %s473_s8 = scalar_lea.vmem %s1981_s6, %s1379_s12 }
 0x516   : > { %1085 = vrot.lane.b32.xlu1 %v1075_v41, %s1657_s13  ;;  %s465_s13 = scalar_lea.vmem %s1978_s3, %s1379_s12 }
 0x517   : > { %v1046_v42 = vpop.permute.xlu0 %1045  ;;  %v1205_v50 = vld [vmem:[%s465_s13] sm:$0xff] }
 0x518   : > { %v1048_v4 = vmul.f32 %v1046_v42, %v1040_v43 }
 0x53a   : > { %v1082_v25 = vpop.permute.xlu0 %1081 }
 0x584   : > { %v1078_v44 = vpop.permute.xlu1 %1077 }
 0x585   : > { %v1088_v45 = vsel %vm488_vm0, %v1048_v4, %v1078_v44 }
 0x586   : > { %v1090_v27 = vsel %vm1089_vm4, %v1088_v45, %v1082_v25 }
 0x588   : > { %v1086_v28 = vpop.permute.xlu1 %1085 }
 0x589   : > { %v1092_v46 = vsel %vm1091_vm5, %v1090_v27, %v1086_v28 }
 0x58a   : > { %v1093_v47 = vpack.c.bf16 %v1092_v46, %v1092_v46 }
 0x58c   : > { %1494 = vmatmul.mubr.bf16.vlgmr.msra.gmra.mxu1 %v1093_v47 }
 0x64c   : > { %v1199_v49 = vpop.f32.mrf.mxu1 }
 0x64d   : > { %v1200_v51 = vadd.f32 %v1393_v48, %v1199_v49 }
 0x64e   : > { %v1495_v52 = vpop.f32.mrf.mxu1 }
 0x64f   : > { %v1206_v54 = vadd.f32 %v1205_v50, %v1200_v51 }
 0x650   : > { %v1202_v55 = vpop.f32.mrf.mxu1 }
 0x651   : > { %1207 = vst [vmem:[%s473_s8] sm:$0xff] %v1206_v54 }
 0x652   : > { %v1496_v56 = vpop.f32.mrf.mxu1 }
 0x653 PF: > { %s16_s27 = sadd.s32 1, %s1653_s27   ;;  %s1983_s21 = smov %s1633_s22 }
 0x654   : > { %p13_p12 = scmp.ge.s32.totalorder %s16_s27, 6   ;;  %s1984_s22 = smov %s1750_s9 }
 0x655   : > { %s1985_s23 = smov %s1645_s25  ;;  %s1986_s24 = smov %s1649_s26 }
 0x656   : > { %s1987_s25 = smov %s1990_s28  ;;  %s1988_s26 = smov %s1994_s29 }
 0x657   :  { %15 = sbr.rel (!%p13_p12) target bundleno = 4 (0x4), region = 192 }

// kernel: point_transformer_forward.9
= control target key start
LH: loop header
LB: loop body
LE: loop exit
PB: predicated region body
PF: predicated region fallthrough
CT: control target
= control target key end

     0   :  { %s544_s15 = smov 0   ;;  %s596_s0 = inlined_call_operand.vmem [shape: f32[32,128], index: 0, kind: input, shape index: {}]   ;;  %s597_s1 = inlined_call_operand.vmem [shape: bf16[128,4], index: 1, kind: input, shape index: {}]   ;;  %s598_s2 = inlined_call_operand.vmem [shape: f32[1,4], index: 2, kind: input, shape index: {}]   ;;  %s599_s3 = inlined_call_operand.vmem [shape: f32[32,4], index: 3, kind: input, shape index: {}]   ;;  %s600_s4 = inlined_call_operand.vmem [shape: f32[32,4], index: 4, kind: output, shape index: {}]  }
   0x1 LB: > { %s430_s16 = sadd.s32 4294967295, %s515_s15   ;;  %p434_p0 = scmp.ge.s32.totalorder %s515_s15, 1  ;;  %s515_s15 = sphi %s544_s15, %s14_s15  }
   0x2   : > { %p174_p1 = scmp.lt.s32.totalorder %s515_s15, 3 }
   0x4   : > { %p175_p2 = pnand %p434_p0, %p174_p1 }
   0x5   : > { %s435_s23 = sshll.u32 (!%p175_p2), %s430_s16, 1 }
   0x6   : > { %178 = sbr.rel (%p175_p2) target bundleno = 284 (0x11c), region = 36  ;;  %p206_p3 = scmp.lt.s32.totalorder (!%p175_p2), %s435_s23, 3 }
   0xb   : > { %v493_v0 = vld [vmem:[%s597_s1 + $0x38] sm:$0xff]   ;;  %v517_v1 = vmov 0.0   ;;  %v494_v2 = vld [vmem:[%s597_s1 + $0x30] sm:$0xff]   ;;  %vm518_vm0 = vmmov 0   ;;  %v495_v3 = vld [vmem:[%s597_s1 + $0x28] sm:$0xff]   ;;  %s602_s23 = smov (!%p206_p3, %s435_s23), 3 }
   0xc   : > { %463 = vmatprep.subr.bf16.mxu0 %v517_v1  ;;  %479 = vmatprep.mubr.msk.bf16.mxu0 %vm518_vm0, %v517_v1  ;;  %v496_v4 = vld [vmem:[%s597_s1 + $0x20] sm:$0xff]   ;;  %v497_v5 = vld [vmem:[%s597_s1 + $0x18] sm:$0xff]   ;;  %v498_v6 = vld [vmem:[%s597_s1 + $0x10] sm:$0xff]   ;;  %s570_s30 = sshll.u32 %s602_s23, 3  ;;  %vm359_vm1 = vcmask 31744  }
   0xd   : > { %464 = vmatpush3.bf16.msra.mxu0 %v493_v0  ;;  %v499_v7 = vld [vmem:[%s597_s1 + $0x8] sm:$0xff]   ;;  %s209_s9 = scalar_lea.vmem %s596_s0, %s570_s30  ;;  %v500_v8 = vld [vmem:[%s597_s1] sm:$0xff]   ;;  %s215_s17 = scalar_lea.vmem %s599_s3, %s570_s30 }
   0xe   : > { %465 = vmatprep.subr.bf16.mxu0 %v517_v1  ;;  %v224_v9 = vld [vmem:[%s209_s9] sm:$0xff]  ;;  %v225_v10 = vld [vmem:[%s209_s9 + $0x8] sm:$0xff]  ;;  %s221_s20 = scalar_lea.vmem %s600_s4, %s570_s30 }
   0xf   : > { %v226_v11 = vpack.c.bf16 %v225_v10, %v224_v9  ;;  %v441_v12 = vld [vmem:[%s598_s2] ss:$0 sm:$0xff]  ;;  %v356_v34 = vld [vmem:[%s215_s17 + $0x8] sm:$0xff] }
  0x10   : > { %v355_v29 = vld [vmem:[%s215_s17] sm:$0xff] }
  0x11   : > { %466 = vmatpush3.bf16.msra.mxu0 %v494_v2 }
  0x12   : > { %467 = vmatprep.subr.bf16.mxu0 %v517_v1 }
  0x15   : > { %468 = vmatpush3.bf16.msra.mxu0 %v495_v3 }
  0x16   : > { %469 = vmatprep.subr.bf16.mxu0 %v517_v1 }
  0x19   : > { %470 = vmatpush3.bf16.msra.mxu0 %v496_v4 }
  0x1a   : > { %471 = vmatprep.subr.bf16.mxu0 %v517_v1 }
  0x1d   : > { %472 = vmatpush3.bf16.msra.mxu0 %v497_v5 }
  0x1e   : > { %473 = vmatprep.subr.bf16.mxu0 %v517_v1 }
  0x21   : > { %474 = vmatpush3.bf16.msra.mxu0 %v498_v6 }
  0x22   : > { %475 = vmatprep.subr.bf16.mxu0 %v517_v1 }
  0x25   : > { %476 = vmatpush3.bf16.msra.mxu0 %v499_v7 }
  0x26   : > { %477 = vmatprep.subr.bf16.mxu0 %v517_v1 }
  0x29   : > { %478 = vmatpush3.bf16.msra.mxu0 %v500_v8 }
  0x2c   : > { %480 = vmatmul.mubr.bf16.vlgmr.msra.gmra.mxu0 %v226_v11 }
  0xec   : > { %v332_v13 = vpop.f32.mrf.mxu0 }
  0xed   : > { %v333_v14 = vadd.f32 %v441_v12, %v332_v13 }
  0xee   : > { %v481_v15 = vpop.f32.mrf.mxu0 }
  0xef   : > { %v339_v16 = vsub.f32 0.0, %v333_v14 }
  0xf0   : > { %v335_v17 = vpop.f32.mrf.mxu0 }
  0xf1   : > { %v341_v18 = vmul.f32 1.442695, %v339_v16  ;;  %v336_v19 = vadd.f32 %v441_v12, %v335_v17 }
  0xf2   : > { %v482_v20 = vpop.f32.mrf.mxu0 }
  0xf3   : > { %501 = vpow2.f32 %v341_v18  ;;  %v340_v21 = vsub.f32 0.0, %v336_v19 }
  0xf5   : > { %v343_v22 = vmul.f32 1.442695, %v340_v21 }
  0xf7   : > { %503 = vpow2.f32 %v343_v22 }
 0x100   : > { %v502_v23 = vpop.eup %501 }
 0x101   : > { %v345_v24 = vadd.f32 1.0, %v502_v23 }
 0x103   : > { %505 = vrcp.f32 %v345_v24 }
 0x104   : > { %v504_v25 = vpop.eup %503 }
 0x105   : > { %v346_v26 = vadd.f32 1.0, %v504_v25 }
 0x107   : > { %507 = vrcp.f32 %v346_v26 }
 0x110   : > { %v506_v27 = vpop.eup %505 }
 0x111   : > { %v351_v28 = vmul.f32 0.4, %v506_v27 }
 0x113   : > { %v450_v30 = vadd.f32 -0.2, %v351_v28 }
 0x114   : > { %v508_v31 = vpop.eup %507 }
 0x115   : > { %v357_v32 = vadd.f32 %v450_v30, %v355_v29  ;;  %v352_v33 = vmul.f32 0.4, %v508_v31 }
 0x117   : > { %360 = vst.msk [vmem:[%s221_s20] sm:$0xff] %vm359_vm1, %v357_v32  ;;  %v451_v35 = vadd.f32 -0.2, %v352_v33 }
 0x119   : > { %v358_v36 = vadd.f32 %v451_v35, %v356_v34 }
 0x11b   : > { %361 = vst.msk [vmem:[%s221_s20 + $0x8] sm:$0xff] %vm359_vm1, %v358_v36 }
 0x11c PF: > { %s14_s15 = sadd.s32 1, %s515_s15  }
 0x11d   : > { %p11_p4 = scmp.ge.s32.totalorder %s14_s15, 4  }
 0x11f   :  { %13 = sbr.rel (!%p11_p4) target bundleno = 1 (0x1), region = 69 }

// kernel: point_transformer_forward.8
= control target key start
LH: loop header
LB: loop body
LE: loop exit
PB: predicated region body
PF: predicated region fallthrough
CT: control target
= control target key end

     0   :  { %12 = vsyncpa [#allocation3], 0  ;;  %s1917_s24 = smov 0   ;;  %s2421_s0 = inlined_call_operand.vmem [shape: f32[32,128], index: 0, kind: input, shape index: {}]   ;;  %s2422_s1 = inlined_call_operand.vmem [shape: f32[1,128], index: 1, kind: input, shape index: {}]   ;;  %s2423_s2 = inlined_call_operand.vmem [shape: f32[1,128], index: 2, kind: input, shape index: {}]   ;;  %s2424_s3 = inlined_call_operand.vmem [shape: bf16[128,1024], index: 3, kind: input, shape index: {}]   ;;  %s2425_s4 = inlined_call_operand.vmem [shape: f32[1,1024], index: 4, kind: input, shape index: {}]   ;;  %s2426_s5 = inlined_call_operand.hbm [shape: bf16[512,128], index: 5, kind: input, shape index: {}]   ;;  %s2427_s6 = inlined_call_operand.vmem [shape: f32[1,128], index: 6, kind: input, shape index: {}]   ;;  %s2428_s7 = inlined_call_operand.vmem [shape: f32[32,128], index: 7, kind: output, shape index: {}]  }
   0x1 LB: > { %s1585_s25 = sadd.s32 4294967295, %s1870_s24   ;;  %p1587_p0 = scmp.ge.s32.totalorder %s1870_s24, 1  ;;  %s1870_s24 = sphi %s1917_s24, %s18_s24  }
   0x2   : > { %p201_p1 = scmp.lt.s32.totalorder %s1870_s24, 3  ;;  %s1872_s26 = smov [#allocation2]  }
   0x3   : > { %s225_s27 = sshll.u32 %s1872_s26, 4  ;;  %p1929_p3 = scmp.eq.s32.totalorder %s1585_s25, 0  ;;  %s226_s27 = int_to_ptr.vmem [resolvable:$true] %s225_s27 }
   0x4   : > { %p1925_p2 = pnand %p1587_p0, %p201_p1  ;;  %s1845_s30 = scalar_lea.vmem %s226_s27, 4096 }
   0x5   : > { %p1846_p7 = scmp.ne.s32.totalorder %s226_s27, %s1845_s30  ;;  %p1853_p10 = scmp.lt.s32.totalorder %s226_s27, %s226_s27 }
   0x6   : > { %p1745_p4 = pneg %p1925_p2  ;;  %p1854_p11 = scmp.lt.s32.totalorder %s1845_s30, %s1845_s30 }
   0x8   : > { %p1746_p5 = pnand %p1929_p3, %p1745_p4  ;;  %p1855_p12 = por %p1854_p11, %p1853_p10 }
   0xa   : > { %p1836_p6 = pneg %p1746_p5 }
   0xc   : > { %p1848_p8 = pnand %p1846_p7, %p1836_p6 }
   0xe   : > { %p1849_p9 = pneg %p1848_p8 }
  0x10   : > { %p1856_p13 = pnand %p1855_p12, %p1849_p9 }
  0x12   : > { %1859 = shalt.err (!%p1856_p13)
}
  0x13   : > { %s1873_s8 = smov 64   ;;  %s1874_s9 = smov 4  }
  0x14   : > { %1748 = dma.hbm_to_vmem [thread:$0]  (!%p1746_p5), %s2426_s5, 4096, %s226_s27, [#allocation3], %s1873_s8, %s1873_s8, %s1874_s9  }
  0x15   : > { %253 = sbr.rel (%p1925_p2) target bundleno = 850 (0x352), region = 48 }
  0x1a   : > { %1865 = dma.done.wait (%p1929_p3), [#allocation3], 4096  }
  0x1b   : > { %1867 = vsyncadd (%p1929_p3), [#allocation3], 4294963200  ;;  %s1592_s12 = sshll.u32 %s1585_s25, 1  ;;  %v398_v2 = vld [vmem:[%s2424_s3 + $0x1c0] sm:$0xff]  ;;  %v399_v4 = vld [vmem:[%s2424_s3 + $0x1c8] sm:$0xff]  ;;  %v1875_v49 = vmov 0  }
  0x1c   : > { %p286_p0 = scmp.lt.s32.totalorder %s1592_s12, 3  ;;  %v402_v3 = vld [vmem:[%s2424_s3 + $0x1e0] sm:$0xff]  ;;  %v403_v6 = vld [vmem:[%s2424_s3 + $0x1e8] sm:$0xff]  ;;  %800 = vmatprep.mubr.bf16.mxu0 %v1875_v49  ;;  %843 = vmatprep.mubr.bf16.mxu1 %v1875_v49  ;;  %v2055_v61 = vld [vmem:[%s2424_s3 + $0x1d0] sm:$0xff] }
  0x1d   : > { %v1655_v5 = vcombine.high %v398_v2, %v402_v3  ;;  %v1654_v7 = vcombine.low %v398_v2, %v402_v3  ;;  %v1657_v8 = vcombine.high %v399_v4, %v403_v6  ;;  %v1656_v9 = vcombine.low %v399_v4, %v403_v6  ;;  %v390_v18 = vld [vmem:[%s2424_s3 + $0x180] sm:$0xff]  ;;  %v391_v20 = vld [vmem:[%s2424_s3 + $0x188] sm:$0xff]  ;;  %v2060_v62 = vld [vmem:[%s2424_s3 + $0x1f0] sm:$0xff] }
  0x1e   : > { %s2432_s12 = smov (!%p286_p0, %s1592_s12), 3  ;;  %v394_v19 = vld [vmem:[%s2424_s3 + $0x1a0] sm:$0xff]  ;;  %v395_v22 = vld [vmem:[%s2424_s3 + $0x1a8] sm:$0xff]  ;;  %v2072_v2 = vld [vmem:[%s2424_s3 + $0x1f8] sm:$0xff] }
  0x1f   : > { %s1593_s13 = sshll.u32 %s2432_s12, 3  ;;  %768 = vmatprep.subr.bf16.mxu0 %v1655_v5  ;;  %811 = vmatprep.subr.bf16.mxu1 %v1657_v8  ;;  %v1647_v21 = vcombine.high %v390_v18, %v394_v19  ;;  %v1649_v23 = vcombine.high %v391_v20, %v395_v22  ;;  %v1646_v24 = vcombine.low %v390_v18, %v394_v19  ;;  %v382_v26 = vld [vmem:[%s2424_s3 + $0x140] sm:$0xff]  ;;  %v383_v28 = vld [vmem:[%s2424_s3 + $0x148] sm:$0xff] }
  0x20   : > { %s1954_s16 = scalar_lea.vmem %s2421_s0, %s1593_s13  ;;  %769 = vmatpush1.bf16.msra.mxu0 %v1654_v7  ;;  %812 = vmatpush1.bf16.msra.mxu1 %v1656_v9  ;;  %v1648_v25 = vcombine.low %v391_v20, %v395_v22  ;;  %v386_v27 = vld [vmem:[%s2424_s3 + $0x160] sm:$0xff]  ;;  %v387_v30 = vld [vmem:[%s2424_s3 + $0x168] sm:$0xff]  ;;  %v1659_v19 = vcombine.high %v2055_v61, %v2060_v62  ;;  %s295_s22 = scalar_lea.vmem %s2428_s7, %s1593_s13 }
  0x21   : > { %v298_v0 = vld [vmem:[%s1954_s16] sm:$0xff]  ;;  %v299_v1 = vld [vmem:[%s1954_s16 + $0x8] sm:$0xff]  ;;  %770 = vmatprep.subr.bf16.mxu0 %v1647_v21  ;;  %813 = vmatprep.subr.bf16.mxu1 %v1649_v23  ;;  %v1639_v29 = vcombine.high %v382_v26, %v386_v27  ;;  %v1641_v31 = vcombine.high %v383_v28, %v387_v30  ;;  %v1638_v32 = vcombine.low %v382_v26, %v386_v27 }
  0x22   : > { %302 = vadd.xlane.f32.xlu0 %v298_v0  ;;  %v1640_v33 = vcombine.low %v383_v28, %v387_v30  ;;  %v374_v34 = vld [vmem:[%s2424_s3 + $0x100] sm:$0xff]  ;;  %v375_v36 = vld [vmem:[%s2424_s3 + $0x108] sm:$0xff] }
  0x23   : > { %v378_v35 = vld [vmem:[%s2424_s3 + $0x120] sm:$0xff]  ;;  %v379_v38 = vld [vmem:[%s2424_s3 + $0x128] sm:$0xff] }
  0x24   : > { %771 = vmatpush1.bf16.msra.mxu0 %v1646_v24  ;;  %814 = vmatpush1.bf16.msra.mxu1 %v1648_v25  ;;  %v1631_v37 = vcombine.high %v374_v34, %v378_v35  ;;  %v1633_v39 = vcombine.high %v375_v36, %v379_v38  ;;  %v1630_v40 = vcombine.low %v374_v34, %v378_v35  ;;  %v366_v42 = vld [vmem:[%s2424_s3 + $0xc0] sm:$0xff]  ;;  %v367_v44 = vld [vmem:[%s2424_s3 + $0xc8] sm:$0xff]  ;;  %v392_v35 = vld [vmem:[%s2424_s3 + $0x190] sm:$0xff] }
  0x25   : > { %772 = vmatprep.subr.bf16.mxu0 %v1639_v29  ;;  %815 = vmatprep.subr.bf16.mxu1 %v1641_v31  ;;  %v1632_v41 = vcombine.low %v375_v36, %v379_v38  ;;  %v370_v43 = vld [vmem:[%s2424_s3 + $0xe0] sm:$0xff]  ;;  %v371_v46 = vld [vmem:[%s2424_s3 + $0xe8] sm:$0xff]  ;;  %v393_v36 = vld [vmem:[%s2424_s3 + $0x198] sm:$0xff] }
  0x26   : > { %304 = vadd.xlane.f32.xlu0 %v299_v1  ;;  %v1623_v45 = vcombine.high %v366_v42, %v370_v43  ;;  %v358_v47 = vld [vmem:[%s2424_s3 + $0x80] sm:$0xff]  ;;  %v1625_v50 = vcombine.high %v367_v44, %v371_v46  ;;  %v1622_v51 = vcombine.low %v366_v42, %v370_v43  ;;  %v359_v52 = vld [vmem:[%s2424_s3 + $0x88] sm:$0xff]  ;;  %v1624_v54 = vcombine.low %v367_v44, %v371_v46  ;;  %v384_v42 = vld [vmem:[%s2424_s3 + $0x150] sm:$0xff] }
  0x27   : > { %v362_v48 = vld [vmem:[%s2424_s3 + $0xa0] sm:$0xff]  ;;  %v363_v53 = vld [vmem:[%s2424_s3 + $0xa8] sm:$0xff]  ;;  %v388_v43 = vld [vmem:[%s2424_s3 + $0x170] sm:$0xff] }
  0x28   : > { %773 = vmatpush1.bf16.msra.mxu0 %v1638_v32  ;;  %816 = vmatpush1.bf16.msra.mxu1 %v1640_v33  ;;  %v1615_v55 = vcombine.high %v358_v47, %v362_v48  ;;  %v1617_v56 = vcombine.high %v359_v52, %v363_v53  ;;  %v350_v57 = vld [vmem:[%s2424_s3 + $0x40] sm:$0xff]  ;;  %v351_v59 = vld [vmem:[%s2424_s3 + $0x48] sm:$0xff]  ;;  %v1614_v63 = vcombine.low %v358_v47, %v362_v48  ;;  %v385_v44 = vld [vmem:[%s2424_s3 + $0x158] sm:$0xff] }
  0x29   : > { %774 = vmatprep.subr.bf16.mxu0 %v1631_v37  ;;  %817 = vmatprep.subr.bf16.mxu1 %v1633_v39  ;;  %v354_v58 = vld [vmem:[%s2424_s3 + $0x60] sm:$0xff]  ;;  %v355_v60 = vld [vmem:[%s2424_s3 + $0x68] sm:$0xff]  ;;  %v1616_v3 = vcombine.low %v359_v52, %v363_v53  ;;  %v1643_v48 = vcombine.high %v384_v42, %v388_v43  ;;  %v380_v52 = vld [vmem:[%s2424_s3 + $0x130] sm:$0xff] }
  0x2a   : > { %v1607_v4 = vcombine.high %v350_v57, %v354_v58  ;;  %v1609_v6 = vcombine.high %v351_v59, %v355_v60  ;;  %v342_v7 = vld [vmem:[%s2424_s3] sm:$0xff]  ;;  %v343_v9 = vld [vmem:[%s2424_s3 + $0x8] sm:$0xff]  ;;  %v377_v53 = vld [vmem:[%s2424_s3 + $0x118] sm:$0xff] }
  0x2b   : > { %v346_v8 = vld [vmem:[%s2424_s3 + $0x20] sm:$0xff] }
  0x2c   : > { %775 = vmatpush1.bf16.msra.mxu0 %v1630_v40  ;;  %818 = vmatpush1.bf16.msra.mxu1 %v1632_v41  ;;  %v1596_v29 = vld [vmem:[%s2422_s1] ss:$0 sm:$0xff] }
  0x2d   : > { %776 = vmatprep.subr.bf16.mxu0 %v1623_v45  ;;  %819 = vmatprep.subr.bf16.mxu1 %v1625_v50  ;;  %v1597_v33 = vld [vmem:[%s2423_s2] ss:$0 sm:$0xff]  ;;  %v389_v45 = vld [vmem:[%s2424_s3 + $0x178] sm:$0xff] }
  0x2e   : > { %v1645_v50 = vcombine.high %v385_v44, %v389_v45 }
  0x30   : > { %777 = vmatpush1.bf16.msra.mxu0 %v1622_v51  ;;  %820 = vmatpush1.bf16.msra.mxu1 %v1624_v54  ;;  %v376_v51 = vld [vmem:[%s2424_s3 + $0x110] sm:$0xff]  ;;  %v381_v54 = vld [vmem:[%s2424_s3 + $0x138] sm:$0xff] }
  0x31   : > { %778 = vmatprep.subr.bf16.mxu0 %v1615_v55  ;;  %821 = vmatprep.subr.bf16.mxu1 %v1617_v56  ;;  %v1642_v55 = vcombine.low %v384_v42, %v388_v43  ;;  %v1644_v56 = vcombine.low %v385_v44, %v389_v45  ;;  %v1778_v42 = vld [vmem:[#allocation2 + $0x20] sm:$0xff]   ;;  %v1780_v44 = vld [vmem:[#allocation2 + $0x58] sm:$0xff]  }
  0x32   : > { %v1779_v43 = vld [vmem:[#allocation2 + $0xa0] sm:$0xff]   ;;  %v1781_v45 = vld [vmem:[#allocation2 + $0xd8] sm:$0xff]  }
  0x34   : > { %779 = vmatpush1.bf16.msra.mxu0 %v1614_v63  ;;  %822 = vmatpush1.bf16.msra.mxu1 %v1616_v3  ;;  %v1636_v63 = vcombine.low %v377_v53, %v381_v54  ;;  %v364_v3 = vld [vmem:[%s2424_s3 + $0xb0] sm:$0xff] }
  0x35   : > { %780 = vmatprep.subr.bf16.mxu0 %v1607_v4  ;;  %823 = vmatprep.subr.bf16.mxu1 %v1609_v6  ;;  %v361_v4 = vld [vmem:[%s2424_s3 + $0x98] sm:$0xff] }
  0xab   : > { %v303_v10 = vpop.xlane.xlu0 %302 }
  0xac   : > { %v307_v11 = vmul.f32 0.0078125, %v303_v10  ;;  %v347_v10 = vld [vmem:[%s2424_s3 + $0x28] sm:$0xff] }
  0xad   : > { %v1600_v18 = vcombine.low %v343_v9, %v347_v10 }
  0xae   : > { %v1970_v12 = vsub.f32 %v298_v0, %v307_v11  ;;  %v1658_v0 = vcombine.low %v2055_v61, %v2060_v62  ;;  %v1606_v11 = vcombine.low %v350_v57, %v354_v58  ;;  %v1635_v57 = vcombine.high %v376_v51, %v380_v52  ;;  %v373_v61 = vld [vmem:[%s2424_s3 + $0xf8] sm:$0xff] }
  0xaf   : > { %v305_v13 = vpop.xlane.xlu0 %304  ;;  %v1637_v58 = vcombine.high %v377_v53, %v381_v54  ;;  %v1634_v62 = vcombine.low %v376_v51, %v380_v52  ;;  %v1786_v51 = vld [vmem:[#allocation2 + $0x10] sm:$0xff]   ;;  %v1788_v53 = vld [vmem:[#allocation2 + $0x48] sm:$0xff]  }
  0xb0   : > { %v308_v14 = vmul.f32 0.0078125, %v305_v13  ;;  %v311_v15 = vmul.f32 %v1970_v12, %v1970_v12  ;;  %v1608_v13 = vcombine.low %v351_v59, %v355_v60  ;;  %781 = vmatpush1.bf16.msra.mxu0 %v1606_v11  ;;  %v368_v59 = vld [vmem:[%s2424_s3 + $0xd0] sm:$0xff]  ;;  %v1789_v54 = vld [vmem:[#allocation2 + $0xc8] sm:$0xff]  }
  0xb1   : > { %v372_v60 = vld [vmem:[%s2424_s3 + $0xf0] sm:$0xff] }
  0xb2   : > { %v1974_v16 = vsub.f32 %v299_v1, %v308_v14  ;;  %313 = vadd.xlane.f32.xlu1 %v311_v15  ;;  %v2067_v1 = vld [vmem:[%s2424_s3 + $0x1d8] sm:$0xff]  ;;  %v1599_v14 = vcombine.high %v342_v7, %v346_v8  ;;  %v1601_v15 = vcombine.high %v343_v9, %v347_v10  ;;  %824 = vmatpush1.bf16.msra.mxu1 %v1608_v13  ;;  %v352_v10 = vld [vmem:[%s2424_s3 + $0x50] sm:$0xff] }
  0xb3   : > { %v1660_v5 = vcombine.low %v2067_v1, %v2072_v2  ;;  %v1661_v20 = vcombine.high %v2067_v1, %v2072_v2  ;;  %v360_v2 = vld [vmem:[%s2424_s3 + $0x90] sm:$0xff]  ;;  %v1626_v6 = vcombine.low %v368_v59, %v372_v60  ;;  %v353_v13 = vld [vmem:[%s2424_s3 + $0x58] sm:$0xff] }
  0xb4   : > { %v312_v17 = vmul.f32 %v1974_v16, %v1974_v16  ;;  %782 = vmatprep.subr.bf16.mxu0 %v1599_v14  ;;  %825 = vmatprep.subr.bf16.mxu1 %v1601_v15  ;;  %v356_v11 = vld [vmem:[%s2424_s3 + $0x70] sm:$0xff]  ;;  %v357_v14 = vld [vmem:[%s2424_s3 + $0x78] sm:$0xff]  ;;  %v1618_v15 = vcombine.low %v360_v2, %v364_v3 }
  0xb5   : > { %v1787_v52 = vld [vmem:[#allocation2 + $0x90] sm:$0xff]  }
  0xb6   : > { %315 = vadd.xlane.f32.xlu1 %v312_v17  ;;  %v1598_v17 = vcombine.low %v342_v7, %v346_v8  ;;  %826 = vmatpush1.bf16.msra.mxu1 %v1600_v18  ;;  %v1619_v8 = vcombine.high %v360_v2, %v364_v3  ;;  %v1611_v18 = vcombine.high %v352_v10, %v356_v11 }
  0xb7   : > { %897 = vmatprep.subr.bf16.mxu1 %v1661_v20  ;;  %v344_v20 = vld [vmem:[%s2424_s3 + $0x10] sm:$0xff] }
  0xb8   : > { %783 = vmatpush1.bf16.msra.mxu0 %v1598_v17 }
  0xb9   : > { %854 = vmatprep.subr.bf16.mxu0 %v1659_v19  ;;  %v1613_v19 = vcombine.high %v353_v13, %v357_v14 }
 0x13b   : > { %v314_v21 = vpop.xlane.xlu1 %313 }
 0x13c   : > { %v317_v22 = vmul.f32 0.0078125, %v314_v21  ;;  %v348_v21 = vld [vmem:[%s2424_s3 + $0x30] sm:$0xff] }
 0x13e   : > { %v319_v23 = vadd.f32 1e-05, %v317_v22  ;;  %v345_v22 = vld [vmem:[%s2424_s3 + $0x18] sm:$0xff] }
 0x13f   : > { %v316_v24 = vpop.xlane.xlu1 %315 }
 0x140   : > { %1796 = vrsqrt.f32 %v319_v23  ;;  %v318_v25 = vmul.f32 0.0078125, %v316_v24  ;;  %v349_v23 = vld [vmem:[%s2424_s3 + $0x38] sm:$0xff]  ;;  %v1610_v24 = vcombine.low %v352_v10, %v356_v11 }
 0x142   : > { %v320_v26 = vadd.f32 1e-05, %v318_v25  ;;  %v1612_v25 = vcombine.low %v353_v13, %v357_v14 }
 0x144   : > { %1798 = vrsqrt.f32 %v320_v26  ;;  %v1603_v26 = vcombine.high %v344_v20, %v348_v21 }
 0x14d   : > { %v1797_v27 = vpop.eup %1796 }
 0x14e   : > { %v323_v28 = vmul.f32 %v1797_v27, %v1970_v12  ;;  %v396_v12 = vld [vmem:[%s2424_s3 + $0x1b0] sm:$0xff]  ;;  %v1605_v27 = vcombine.high %v345_v22, %v349_v23 }
 0x14f   : > { %v1651_v40 = vcombine.high %v392_v35, %v396_v12  ;;  %v1650_v46 = vcombine.low %v392_v35, %v396_v12  ;;  %v1769_v35 = vld [vmem:[#allocation2 + $0xf0] sm:$0xff]  }
 0x150   : > { %v331_v32 = vmul.f32 %v1596_v29, %v323_v28  ;;  %v1602_v28 = vcombine.low %v344_v20, %v348_v21  ;;  %v1770_v12 = vld [vmem:[#allocation2 + $0x30] sm:$0xff]  }
 0x151   : > { %v1799_v30 = vpop.eup %1798 }
 0x152   : > { %v324_v31 = vmul.f32 %v1799_v30, %v1974_v16  ;;  %v397_v16 = vld [vmem:[%s2424_s3 + $0x1b8] sm:$0xff]  ;;  %v339_v37 = vadd.f32 %v1597_v33, %v331_v32 }
 0x153   : > { %v1653_v41 = vcombine.high %v393_v36, %v397_v16  ;;  %v1652_v47 = vcombine.low %v393_v36, %v397_v16  ;;  %v1764_v30 = vld [vmem:[#allocation2 + $0x78] sm:$0xff]   ;;  %v1771_v36 = vld [vmem:[#allocation2 + $0xb0] sm:$0xff]   ;;  %v1772_v16 = vld [vmem:[#allocation2 + $0x68] sm:$0xff]  }
 0x154   : > { %v332_v34 = vmul.f32 %v1596_v29, %v324_v31  ;;  %v1604_v29 = vcombine.low %v345_v22, %v349_v23  ;;  %v1765_v31 = vld [vmem:[#allocation2 + $0xf8] sm:$0xff]  }
 0x155   : > { %v1766_v32 = vld [vmem:[#allocation2 + $0x38] sm:$0xff]  }
 0x156   : > { %v340_v38 = vadd.f32 %v1597_v33, %v332_v34  ;;  %v1767_v33 = vld [vmem:[#allocation2 + $0xb8] sm:$0xff]   ;;  %v1768_v34 = vld [vmem:[#allocation2 + $0x70] sm:$0xff]  }
 0x158   : > { %v2112_v39 = vpack.c.bf16 %v340_v38, %v339_v37  ;;  %v1773_v37 = vld [vmem:[#allocation2 + $0xe8] sm:$0xff]  }
 0x159   : > { %v1774_v38 = vld [vmem:[#allocation2 + $0x28] sm:$0xff]  }
 0x15a   : > { %801 = vmatmul.mubr.bf16.vlgmr.msra.gmra.mxu0 %v2112_v39  ;;  %844 = vmatmul.mubr.bf16.vlgmr.msra.gmra.mxu1 %v2112_v39 }
 0x15b   : > { %855 = vmatpush1.bf16.msra.mxu0 %v1658_v0  ;;  %898 = vmatpush1.bf16.msra.mxu1 %v1660_v5  ;;  %v1627_v0 = vcombine.high %v368_v59, %v372_v60  ;;  %v365_v5 = vld [vmem:[%s2424_s3 + $0xb8] sm:$0xff]  ;;  %v1794_v59 = vld [vmem:[#allocation2] sm:$0xff]  }
 0x15c   : > { %856 = vmatprep.subr.bf16.mxu0 %v1651_v40  ;;  %899 = vmatprep.subr.bf16.mxu1 %v1653_v41  ;;  %v1621_v9 = vcombine.high %v361_v4, %v365_v5  ;;  %v1620_v17 = vcombine.low %v361_v4, %v365_v5  ;;  %v1776_v40 = vld [vmem:[#allocation2 + $0x60] sm:$0xff]  }
 0x15d   : > { %886 = vmatprep.mubr.bf16.mxu0 %v1875_v49  ;;  %929 = vmatprep.mubr.bf16.mxu1 %v1875_v49  ;;  %v369_v49 = vld [vmem:[%s2424_s3 + $0xd8] sm:$0xff]  ;;  %v1777_v41 = vld [vmem:[#allocation2 + $0xe0] sm:$0xff]  }
 0x15e   : > { %v1629_v1 = vcombine.high %v369_v49, %v373_v61  ;;  %v1628_v7 = vcombine.low %v369_v49, %v373_v61  ;;  %v1795_v60 = vld [vmem:[#allocation2 + $0x80] sm:$0xff]  }
 0x15f   : > { %857 = vmatpush1.bf16.msra.mxu0 %v1650_v46  ;;  %900 = vmatpush1.bf16.msra.mxu1 %v1652_v47  ;;  %v1782_v46 = vld [vmem:[#allocation2 + $0x18] sm:$0xff]  }
 0x160   : > { %858 = vmatprep.subr.bf16.mxu0 %v1643_v48  ;;  %901 = vmatprep.subr.bf16.mxu1 %v1645_v50  ;;  %v1783_v47 = vld [vmem:[#allocation2 + $0x98] sm:$0xff]   ;;  %v1784_v48 = vld [vmem:[#allocation2 + $0x50] sm:$0xff]  }
 0x161   : > { %v1785_v50 = vld [vmem:[#allocation2 + $0xd0] sm:$0xff]  }
 0x163   : > { %859 = vmatpush1.bf16.msra.mxu0 %v1642_v55  ;;  %902 = vmatpush1.bf16.msra.mxu1 %v1644_v56  ;;  %v1790_v55 = vld [vmem:[#allocation2 + $0x8] sm:$0xff]  }
 0x164   : > { %860 = vmatprep.subr.bf16.mxu0 %v1635_v57  ;;  %903 = vmatprep.subr.bf16.mxu1 %v1637_v58  ;;  %v1791_v56 = vld [vmem:[#allocation2 + $0x88] sm:$0xff]   ;;  %v1792_v57 = vld [vmem:[#allocation2 + $0x40] sm:$0xff]  }
 0x165   : > { %v1793_v58 = vld [vmem:[#allocation2 + $0xc0] sm:$0xff]  }
 0x167   : > { %861 = vmatpush1.bf16.msra.mxu0 %v1634_v62  ;;  %904 = vmatpush1.bf16.msra.mxu1 %v1636_v63  ;;  %v408_v62 = vlaneseq }
 0x168   : > { %862 = vmatprep.subr.bf16.mxu0 %v1627_v0  ;;  %905 = vmatprep.subr.bf16.mxu1 %v1629_v1 }
 0x169   : > { %v2203_v1 = vshrl.u32 %v408_v62, 7 }
 0x16b   : > { %863 = vmatpush1.bf16.msra.mxu0 %v1626_v6  ;;  %906 = vmatpush1.bf16.msra.mxu1 %v1628_v7  ;;  %v426_v2 = vsub.s32 4, %v2203_v1  ;;  %v434_v3 = vsub.s32 6, %v2203_v1  ;;  %v2214_v6 = vld [vmem:[%s2425_s4] sm:$0xff]  ;;  %v430_v7 = vsub.s32 5, %v2203_v1 }
 0x16c   : > { %864 = vmatprep.subr.bf16.mxu0 %v1619_v8  ;;  %907 = vmatprep.subr.bf16.mxu1 %v1621_v9  ;;  %v438_v8 = vsub.s32 7, %v2203_v1 }
 0x16d   : > { %v427_v9 = vrot.slane %v2214_v6, %v426_v2  ;;  %v435_v10 = vrot.slane %v2214_v6, %v434_v3 }
 0x16f   : > { %865 = vmatpush1.bf16.msra.mxu0 %v1618_v15  ;;  %908 = vmatpush1.bf16.msra.mxu1 %v1620_v17  ;;  %v431_v17 = vrot.slane %v2214_v6, %v430_v7 }
 0x170   : > { %866 = vmatprep.subr.bf16.mxu0 %v1611_v18  ;;  %909 = vmatprep.subr.bf16.mxu1 %v1613_v19  ;;  %v439_v18 = vrot.slane %v2214_v6, %v438_v8 }
 0x173   : > { %867 = vmatpush1.bf16.msra.mxu0 %v1610_v24  ;;  %910 = vmatpush1.bf16.msra.mxu1 %v1612_v25 }
 0x174   : > { %868 = vmatprep.subr.bf16.mxu0 %v1603_v26  ;;  %911 = vmatprep.subr.bf16.mxu1 %v1605_v27 }
 0x177   : > { %869 = vmatpush1.bf16.msra.mxu0 %v1602_v28  ;;  %912 = vmatpush1.bf16.msra.mxu1 %v1604_v29 }
 0x178   : > { %1697 = vmatprep.subr.bf16.mxu0 %v1764_v30  ;;  %1719 = vmatprep.subr.bf16.mxu1 %v1765_v31 }
 0x17a   : > { %887 = vmatmul.mubr.bf16.vlgmr.msra.gmra.mxu0 %v2112_v39  ;;  %930 = vmatmul.mubr.bf16.vlgmr.msra.gmra.mxu1 %v2112_v39  ;;  %v1775_v39 = vld [vmem:[#allocation2 + $0xa8] sm:$0xff]  }
 0x17b   : > { %1698 = vmatpush3.bf16.msra.mxu0 %v1766_v32  ;;  %1720 = vmatpush3.bf16.msra.mxu1 %v1767_v33 }
 0x17c   : > { %1699 = vmatprep.subr.bf16.mxu0 %v1768_v34  ;;  %1721 = vmatprep.subr.bf16.mxu1 %v1769_v35 }
 0x17f   : > { %1700 = vmatpush3.bf16.msra.mxu0 %v1770_v12  ;;  %1722 = vmatpush3.bf16.msra.mxu1 %v1771_v36 }
 0x180   : > { %1701 = vmatprep.subr.bf16.mxu0 %v1772_v16  ;;  %1723 = vmatprep.subr.bf16.mxu1 %v1773_v37 }
 0x183   : > { %1702 = vmatpush3.bf16.msra.mxu0 %v1774_v38  ;;  %1724 = vmatpush3.bf16.msra.mxu1 %v1775_v39 }
 0x184   : > { %1703 = vmatprep.subr.bf16.mxu0 %v1776_v40  ;;  %1725 = vmatprep.subr.bf16.mxu1 %v1777_v41 }
 0x187   : > { %1704 = vmatpush3.bf16.msra.mxu0 %v1778_v42  ;;  %1726 = vmatpush3.bf16.msra.mxu1 %v1779_v43 }
 0x188   : > { %1705 = vmatprep.subr.bf16.mxu0 %v1780_v44  ;;  %1727 = vmatprep.subr.bf16.mxu1 %v1781_v45 }
 0x18b   : > { %1706 = vmatpush3.bf16.msra.mxu0 %v1782_v46  ;;  %1728 = vmatpush3.bf16.msra.mxu1 %v1783_v47 }
 0x18c   : > { %1707 = vmatprep.subr.bf16.mxu0 %v1784_v48  ;;  %1729 = vmatprep.subr.bf16.mxu1 %v1785_v50 }
 0x18f   : > { %1708 = vmatpush3.bf16.msra.mxu0 %v1786_v51  ;;  %1730 = vmatpush3.bf16.msra.mxu1 %v1787_v52 }
 0x190   : > { %1709 = vmatprep.subr.bf16.mxu0 %v1788_v53  ;;  %1731 = vmatprep.subr.bf16.mxu1 %v1789_v54 }
 0x193   : > { %1710 = vmatpush3.bf16.msra.mxu0 %v1790_v55  ;;  %1732 = vmatpush3.bf16.msra.mxu1 %v1791_v56 }
 0x194   : > { %1711 = vmatprep.subr.bf16.mxu0 %v1792_v57  ;;  %1733 = vmatprep.subr.bf16.mxu1 %v1793_v58 }
 0x197   : > { %1712 = vmatpush3.bf16.msra.mxu0 %v1794_v59  ;;  %1734 = vmatpush3.bf16.msra.mxu1 %v1795_v60  ;;  %v410_v60 = vsub.s32 0, %v2203_v1 }
 0x21a   : > { %v2195_v49 = vpop.f32.mrf.mxu0  ;;  %v2197_v61 = vpop.f32.mrf.mxu1 }
 0x21c   : > { %v2199_v63 = vpop.f32.mrf.mxu0  ;;  %v2201_v0 = vpop.f32.mrf.mxu1 }
 0x21e   : > { %v2207_v4 = vpop.f32.mrf.mxu0  ;;  %v2209_v5 = vpop.f32.mrf.mxu1 }
 0x220   : > { %v2220_v11 = vpop.f32.mrf.mxu0  ;;  %v2222_v13 = vpop.f32.mrf.mxu1 }
 0x23a   : > { %v888_v14 = vpop.f32.mrf.mxu0  ;;  %v931_v15 = vpop.f32.mrf.mxu1 }
 0x23b   : > { %v2226_v19 = vadd.f32 %v888_v14, %v427_v9  ;;  %v2228_v20 = vadd.f32 %v931_v15, %v435_v10 }
 0x23c   : > { %v890_v21 = vpop.f32.mrf.mxu0  ;;  %v933_v22 = vpop.f32.mrf.mxu1 }
 0x23d   : > { %v2231_v23 = vmul.f32 0.70710677, %v2226_v19  ;;  %v2234_v24 = vmul.f32 0.70710677, %v2228_v20  ;;  %v2236_v25 = vadd.f32 %v890_v21, %v431_v17  ;;  %v2238_v26 = vadd.f32 %v933_v22, %v439_v18 }
 0x23e   : > { %v892_v30 = vpop.f32.mrf.mxu0  ;;  %v935_v16 = vpop.f32.mrf.mxu1  ;;  %v2289_v21 = vrot.slane %v2214_v6, %v410_v60 }
 0x23f   : > { %v972_v27 = vand.u32 2147483647, %v2231_v23  ;;  %v2242_v28 = vand.u32 2147483647, %v2234_v24  ;;  %v2245_v29 = vmul.f32 0.70710677, %v2236_v25  ;;  %v2253_v40 = vadd.f32 %v892_v30, %v427_v9 }
 0x240   : > { %v2250_v34 = vmul.f32 0.70710677, %v2238_v26  ;;  %v894_v37 = vpop.f32.mrf.mxu0  ;;  %v2255_v41 = vadd.f32 %v935_v16, %v435_v10  ;;  %v937_v50 = vpop.f32.mrf.mxu1  ;;  %v418_v9 = vsub.s32 2, %v2203_v1  ;;  %vm956_vm0 = vcmp.ge.f32.partialorder %v2231_v23, 0.0 }
 0x241   : > { %v980_v31 = vmul.f32 0.3275911, %v972_v27  ;;  %v982_v32 = vmul.f32 0.3275911, %v2242_v28  ;;  %v973_v33 = vand.u32 2147483647, %v2245_v29  ;;  %v2257_v42 = vadd.f32 %v894_v37, %v431_v17 }
 0x242   : > { %v975_v39 = vand.u32 2147483647, %v2250_v34  ;;  %v2260_v44 = vmul.f32 0.70710677, %v2253_v40  ;;  %v2263_v46 = vmul.f32 0.70710677, %v2255_v41  ;;  %v2273_v54 = vadd.f32 %v937_v50, %v439_v18 }
 0x243   : > { %v988_v35 = vadd.f32 1.0, %v980_v31  ;;  %v990_v12 = vadd.f32 1.0, %v982_v32  ;;  %v981_v36 = vmul.f32 0.3275911, %v973_v33  ;;  %v2267_v48 = vmul.f32 0.70710677, %v2257_v42 }
 0x244   : > { %v983_v43 = vmul.f32 0.3275911, %v975_v39  ;;  %v976_v47 = vand.u32 2147483647, %v2260_v44  ;;  %v978_v52 = vand.u32 2147483647, %v2263_v46 }
 0x245   : > { %1800 = vrcp.f32 %v988_v35  ;;  %v989_v38 = vadd.f32 1.0, %v981_v36  ;;  %v2271_v53 = vand.u32 2147483647, %v2267_v48  ;;  %v1084_v57 = vsub.f32 0.0, %v972_v27 }
 0x246   : > { %1802 = vrcp.f32 %v990_v12  ;;  %v991_v45 = vadd.f32 1.0, %v983_v43  ;;  %v984_v51 = vmul.f32 0.3275911, %v976_v47  ;;  %v986_v56 = vmul.f32 0.3275911, %v978_v52 }
 0x247   : > { %1804 = vrcp.f32 %v989_v38  ;;  %v1085_v58 = vsub.f32 0.0, %v973_v33  ;;  %v985_v59 = vmul.f32 0.3275911, %v2271_v53  ;;  %v2280_v7 = vmul.f32 0.70710677, %v2273_v54 }
 0x248   : > { %1806 = vrcp.f32 %v991_v45  ;;  %v992_v55 = vadd.f32 1.0, %v984_v51  ;;  %v994_v62 = vadd.f32 1.0, %v986_v56  ;;  %v1086_v14 = vsub.f32 0.0, %v2242_v28 }
 0x249   : > { %v993_v3 = vadd.f32 1.0, %v985_v59  ;;  %v1092_v15 = vmul.f32 %v1084_v57, %v972_v27  ;;  %v1093_v18 = vmul.f32 %v1085_v58, %v973_v33  ;;  %v2292_v30 = vand.u32 2147483647, %v2280_v7 }
 0x24a   : > { %1808 = vrcp.f32 %v992_v55  ;;  %v1087_v35 = vsub.f32 0.0, %v975_v39  ;;  %v1088_v12 = vsub.f32 0.0, %v976_v47  ;;  %v2297_v36 = vrot.slane %v2214_v6, %v418_v9 }
 0x24b   : > { %1810 = vrcp.f32 %v994_v62  ;;  %v987_v16 = vmul.f32 0.3275911, %v2292_v30  ;;  %v1100_v37 = vmul.f32 1.442695, %v1092_v15  ;;  %v1094_v43 = vmul.f32 %v1086_v14, %v2242_v28 }
 0x24c   : > { %1812 = vrcp.f32 %v993_v3  ;;  %v1102_v45 = vmul.f32 1.442695, %v1093_v18  ;;  %v1090_v56 = vsub.f32 0.0, %v978_v52  ;;  %v1095_v60 = vmul.f32 %v1087_v35, %v975_v39 }
 0x24d   : > { %v995_v57 = vadd.f32 1.0, %v987_v16  ;;  %v1096_v62 = vmul.f32 %v1088_v12, %v976_v47  ;;  %v414_v28 = vsub.s32 1, %v2203_v1  ;;  %v422_v14 = vsub.s32 3, %v2203_v1 }
 0x24e   : > { %v1104_v15 = vmul.f32 1.442695, %v1094_v43  ;;  %v1106_v35 = vmul.f32 1.442695, %v1095_v60  ;;  %vm958_vm1 = vcmp.ge.f32.partialorder %v2234_v24, 0.0  ;;  %vm957_vm2 = vcmp.ge.f32.partialorder %v2245_v29, 0.0 }
 0x24f   : > { %1814 = vrcp.f32 %v995_v57  ;;  %v1108_v16 = vmul.f32 1.442695, %v1096_v62  ;;  %vm960_vm3 = vcmp.ge.f32.partialorder %v2260_v44, 0.0  ;;  %vm959_vm4 = vcmp.ge.f32.partialorder %v2250_v34, 0.0 }
 0x250   : > { %1816 = vpow2.f32 %v1100_v37  ;;  %v1091_v37 = vsub.f32 0.0, %v2292_v30  ;;  %vm962_vm5 = vcmp.ge.f32.partialorder %v2263_v46, 0.0  ;;  %vm961_vm6 = vcmp.ge.f32.partialorder %v2267_v48, 0.0 }
 0x251   : > { %1818 = vpow2.f32 %v1102_v45  ;;  %v807_v34 = vadd.f32 %v2207_v4, %v2289_v21  ;;  %vm963_vm7 = vcmp.ge.f32.partialorder %v2280_v7, 0.0  ;;  %v803_v7 = vadd.f32 %v2195_v49, %v2289_v21 }
 0x252   : > { %v2277_v2 = vpop.eup %1800  ;;  %1820 = vpow2.f32 %v1104_v15  ;;  %v1099_v15 = vmul.f32 %v1091_v37, %v2292_v30 }
 0x253   : > { %v2282_v8 = vpop.eup %1802  ;;  %v1012_v10 = vmul.f32 1.0614054, %v2277_v2  ;;  %1822 = vpow2.f32 %v1106_v35 }
 0x254   : > { %v1014_v17 = vmul.f32 1.0614054, %v2282_v8  ;;  %v2294_v31 = vpop.eup %1804  ;;  %1824 = vpow2.f32 %v1108_v16  ;;  %v1114_v37 = vmul.f32 1.442695, %v1099_v15 }
 0x255   : > { %v1020_v22 = vadd.f32 -1.4531521, %v1012_v10  ;;  %v1013_v33 = vmul.f32 1.0614054, %v2294_v31  ;;  %v2304_v50 = vpop.eup %1806  ;;  %v1089_v10 = vsub.f32 0.0, %v2271_v53 }
 0x256   : > { %v1022_v32 = vadd.f32 -1.4531521, %v1014_v17  ;;  %v1015_v59 = vmul.f32 1.0614054, %v2304_v50 }
 0x257   : > { %v1028_v27 = vmul.f32 %v2277_v2, %v1020_v22  ;;  %v1021_v55 = vadd.f32 -1.4531521, %v1013_v33  ;;  %v1097_v1 = vmul.f32 %v1089_v10, %v2271_v53 }
 0x258   : > { %v1030_v38 = vmul.f32 %v2282_v8, %v1022_v32  ;;  %v1023_v17 = vadd.f32 -1.4531521, %v1015_v59  ;;  %v1098_v32 = vmul.f32 %v1090_v56, %v978_v52 }
 0x259   : > { %v1036_v51 = vadd.f32 1.4214138, %v1028_v27  ;;  %v1029_v9 = vmul.f32 %v2294_v31, %v1021_v55  ;;  %v2312_v27 = vpop.eup %1808 }
 0x25a   : > { %v1038_v58 = vadd.f32 1.4214138, %v1030_v38  ;;  %v1031_v47 = vmul.f32 %v2304_v50, %v1023_v17  ;;  %v1016_v33 = vmul.f32 1.0614054, %v2312_v27  ;;  %v2320_v38 = vrot.slane %v2214_v6, %v414_v28  ;;  %v2323_v43 = vpop.eup %1810 }
 0x25b   : > { %v1044_v3 = vmul.f32 %v2277_v2, %v1036_v51  ;;  %v1037_v22 = vadd.f32 1.4214138, %v1029_v9  ;;  %v1112_v56 = vmul.f32 1.442695, %v1098_v32  ;;  %v1018_v53 = vmul.f32 1.0614054, %v2323_v43  ;;  %v2328_v59 = vpop.eup %1812 }
 0x25c   : > { %v1046_v39 = vmul.f32 %v2282_v8, %v1038_v58  ;;  %v1039_v52 = vadd.f32 1.4214138, %v1031_v47  ;;  %v1024_v55 = vadd.f32 -1.4531521, %v1016_v33  ;;  %v1017_v28 = vmul.f32 1.0614054, %v2328_v59  ;;  %v2341_v16 = vpop.eup %1814 }
 0x25d   : > { %v1052_v18 = vadd.f32 -0.28449672, %v1044_v3  ;;  %v1045_v12 = vmul.f32 %v2294_v31, %v1037_v22  ;;  %v1110_v3 = vmul.f32 1.442695, %v1097_v1  ;;  %v1026_v10 = vadd.f32 -1.4531521, %v1018_v53 }
 0x25e   : > { %v1054_v57 = vadd.f32 -0.28449672, %v1046_v39  ;;  %v1047_v58 = vmul.f32 %v2304_v50, %v1039_v52  ;;  %v1032_v62 = vmul.f32 %v2312_v27, %v1024_v55  ;;  %1826 = vpow2.f32 %v1112_v56 }
 0x25f   : > { %v1060_v45 = vmul.f32 %v2277_v2, %v1052_v18  ;;  %v1053_v51 = vadd.f32 -0.28449672, %v1045_v12  ;;  %v1034_v47 = vmul.f32 %v2323_v43, %v1026_v10  ;;  %v1025_v35 = vadd.f32 -1.4531521, %v1017_v28 }
 0x260   : > { %v1055_v9 = vadd.f32 -0.28449672, %v1047_v58  ;;  %v1040_v22 = vadd.f32 1.4214138, %v1032_v62  ;;  %v1062_v32 = vmul.f32 %v2282_v8, %v1054_v57  ;;  %v2338_v12 = vrot.slane %v2214_v6, %v422_v14  ;;  %v1817_v57 = vpop.eup %1816 }
 0x261   : > { %v1061_v60 = vmul.f32 %v2294_v31, %v1053_v51  ;;  %v1068_v17 = vadd.f32 0.2548296, %v1060_v45  ;;  %1828 = vpow2.f32 %v1110_v3  ;;  %v1042_v1 = vadd.f32 1.4214138, %v1034_v47 }
 0x262   : > { %v1063_v39 = vmul.f32 %v2304_v50, %v1055_v9  ;;  %v1048_v33 = vmul.f32 %v2312_v27, %v1040_v22  ;;  %v1033_v52 = vmul.f32 %v2328_v59, %v1025_v35  ;;  %v1019_v56 = vmul.f32 1.0614054, %v2341_v16 }
 0x263   : > { %v1069_v18 = vadd.f32 0.2548296, %v1061_v60  ;;  %v1076_v45 = vmul.f32 %v2277_v2, %v1068_v17  ;;  %v2349_v6 = vadd.f32 %v2199_v63, %v2320_v38  ;;  %v1070_v14 = vadd.f32 0.2548296, %v1062_v32 }
 0x264   : > { %v1071_v51 = vadd.f32 0.2548296, %v1063_v39  ;;  %v1056_v55 = vadd.f32 -0.28449672, %v1048_v33  ;;  %v1050_v58 = vmul.f32 %v2323_v43, %v1042_v1  ;;  %v1041_v53 = vadd.f32 1.4214138, %v1033_v52 }
 0x265   : > { %v1077_v30 = vmul.f32 %v2294_v31, %v1069_v18  ;;  %v1819_v31 = vpop.eup %1818  ;;  %v1027_v60 = vadd.f32 -1.4531521, %v1019_v56  ;;  %1830 = vpow2.f32 %v1114_v37  ;;  %v1116_v63 = vmul.f32 %v1817_v57, %v1076_v45 }
 0x266   : > { %v1064_v2 = vmul.f32 %v2312_v27, %v1056_v55  ;;  %v1058_v3 = vadd.f32 -0.28449672, %v1050_v58  ;;  %v1049_v9 = vmul.f32 %v2328_v59, %v1041_v53  ;;  %v1821_v10 = vpop.eup %1820  ;;  %v1079_v28 = vmul.f32 %v2304_v50, %v1071_v51 }
 0x267   : > { %v1117_v62 = vmul.f32 %v1819_v31, %v1077_v30  ;;  %v1035_v17 = vmul.f32 %v2341_v16, %v1027_v60  ;;  %v1876_v18 = vmov -1.0   ;;  %v1078_v22 = vmul.f32 %v2282_v8, %v1070_v14  ;;  %v1823_v47 = vpop.eup %1822 }
 0x268   : > { %v1072_v15 = vadd.f32 0.2548296, %v1064_v2  ;;  %v964_v23 = vsel %vm956_vm0, 1.0, %v1876_v18  ;;  %v1066_v32 = vmul.f32 %v2323_v43, %v1058_v3  ;;  %v1057_v39 = vadd.f32 -0.28449672, %v1049_v9  ;;  %v1825_v30 = vpop.eup %1824 }
 0x269   : > { %v966_v35 = vsel %vm958_vm1, 1.0, %v1876_v18  ;;  %v1043_v33 = vadd.f32 1.4214138, %v1035_v17  ;;  %v1125_v1 = vsub.f32 1.0, %v1117_v62  ;;  %v1124_v37 = vsub.f32 1.0, %v1116_v63 }
 0x26a   : > { %v1080_v50 = vmul.f32 %v2312_v27, %v1072_v15  ;;  %v1074_v52 = vadd.f32 0.2548296, %v1066_v32  ;;  %v1065_v8 = vmul.f32 %v2328_v59, %v1057_v39  ;;  %v1119_v45 = vmul.f32 %v1823_v47, %v1079_v28 }
 0x26b   : > { %v1051_v55 = vmul.f32 %v2341_v16, %v1043_v33  ;;  %v1827_v56 = vpop.eup %1826  ;;  %v1118_v24 = vmul.f32 %v1821_v10, %v1078_v22  ;;  %v965_v57 = vsel %vm957_vm2, 1.0, %v1876_v18  ;;  %v968_v14 = vsel %vm960_vm3, 1.0, %v1876_v18 }
 0x26c   : > { %v1120_v51 = vmul.f32 %v1825_v30, %v1080_v50  ;;  %v1082_v29 = vmul.f32 %v2323_v43, %v1074_v52  ;;  %v1073_v27 = vadd.f32 0.2548296, %v1065_v8  ;;  %v1133_v31 = vmul.f32 %v1125_v1, %v965_v57 }
 0x26d   : > { %v1059_v58 = vadd.f32 -0.28449672, %v1051_v55  ;;  %v1132_v62 = vmul.f32 %v1124_v37, %v964_v23  ;;  %v1127_v3 = vsub.f32 1.0, %v1119_v45  ;;  %v1126_v43 = vsub.f32 1.0, %v1118_v24 }
 0x26e   : > { %v1128_v44 = vsub.f32 1.0, %v1120_v51  ;;  %v1829_v53 = vpop.eup %1828  ;;  %v1122_v2 = vmul.f32 %v1827_v56, %v1082_v29  ;;  %v1081_v60 = vmul.f32 %v2328_v59, %v1073_v27  ;;  %v967_v15 = vsel %vm959_vm4, 1.0, %v1876_v18 }
 0x26f   : > { %v1067_v10 = vmul.f32 %v2341_v16, %v1059_v58  ;;  %v970_v46 = vsel %vm962_vm5, 1.0, %v1876_v18  ;;  %v1141_v32 = vadd.f32 1.0, %v1133_v31  ;;  %v944_v59 = vmul.f32 0.5, %v2253_v40 }
 0x270   : > { %v1136_v9 = vmul.f32 %v1128_v44, %v968_v14  ;;  %v1130_v63 = vsub.f32 1.0, %v1122_v2  ;;  %v1121_v28 = vmul.f32 %v1829_v53, %v1081_v60  ;;  %v1140_v50 = vadd.f32 1.0, %v1132_v62 }
 0x271   : > { %v1075_v22 = vadd.f32 0.2548296, %v1067_v10  ;;  %v1135_v33 = vmul.f32 %v1127_v3, %v967_v15  ;;  %v969_v30 = vsel %vm961_vm6, 1.0, %v1876_v18  ;;  %v1134_v1 = vmul.f32 %v1126_v43, %v966_v35 }
 0x272   : > { %v1144_v17 = vadd.f32 1.0, %v1136_v9  ;;  %v1138_v23 = vmul.f32 %v1130_v63, %v970_v46  ;;  %v1129_v39 = vsub.f32 1.0, %v1121_v28  ;;  %v1831_v47 = vpop.eup %1830  ;;  %v941_v52 = vmul.f32 0.5, %v2236_v25 }
 0x273   : > { %v1083_v48 = vmul.f32 %v2341_v16, %v1075_v22  ;;  %v940_v37 = vmul.f32 0.5, %v2226_v19  ;;  %v945_v56 = vmul.f32 0.5, %v2257_v42  ;;  %v809_v16 = vadd.f32 %v2220_v11, %v2320_v38 }
 0x274   : > { %v1137_v8 = vmul.f32 %v1129_v39, %v969_v30  ;;  %v1152_v45 = vmul.f32 %v1144_v17, %v944_v59  ;;  %v1149_v51 = vmul.f32 %v1141_v32, %v941_v52  ;;  %v1146_v55 = vadd.f32 1.0, %v1138_v23 }
 0x275   : > { %v1123_v40 = vmul.f32 %v1831_v47, %v1083_v48  ;;  %v1148_v57 = vmul.f32 %v1140_v50, %v940_v37  ;;  %v1143_v4 = vadd.f32 1.0, %v1135_v33  ;;  %v1142_v29 = vadd.f32 1.0, %v1134_v1  ;;  %v1832_v50 = vld [vmem:[%s1954_s16] sm:$0xff] }
 0x276   : > { %v1145_v24 = vadd.f32 1.0, %v1137_v8  ;;  %v946_v25 = vmul.f32 0.5, %v2255_v41  ;;  %v971_v19 = vsel %vm963_vm7, 1.0, %v1876_v18  ;;  %v943_v14 = vmul.f32 0.5, %v2238_v26 }
 0x277   : > { %v1131_v35 = vsub.f32 1.0, %v1123_v40  ;;  %v1160_v44 = vmul.f32 %v1152_v45, %v807_v34  ;;  %v942_v58 = vmul.f32 0.5, %v2228_v20  ;;  %v1157_v11 = vmul.f32 %v1149_v51, %v2349_v6  ;;  %v1833_v34 = vld [vmem:[%s1954_s16 + $0x8] sm:$0xff] }
 0x278   : > { %v1153_v27 = vmul.f32 %v1145_v24, %v945_v56  ;;  %v1154_v53 = vmul.f32 %v1146_v55, %v946_v25  ;;  %v1156_v31 = vmul.f32 %v1148_v57, %v803_v7  ;;  %v1151_v2 = vmul.f32 %v1143_v4, %v943_v14 }
 0x279   : > { %v1139_v42 = vmul.f32 %v1131_v35, %v971_v19  ;;  %v947_v41 = vmul.f32 0.5, %v2273_v54  ;;  %v850_v18 = vadd.f32 %v2209_v5, %v2297_v36  ;;  %v1150_v62 = vmul.f32 %v1142_v29, %v942_v58 }
 0x27a   : > { %v1161_v38 = vmul.f32 %v1153_v27, %v809_v16  ;;  %v848_v26 = vadd.f32 %v2201_v0, %v2338_v12  ;;  %v852_v20 = vadd.f32 %v2222_v13, %v2338_v12  ;;  %v1164_v3 = vpack.c.bf16 %v1160_v44, %v1156_v31  ;;  %v1662_v13 = vld [vmem:[%s2427_s6] ss:$0 sm:$0xff] }
 0x27b   : > { %v1147_v60 = vadd.f32 1.0, %v1139_v42  ;;  %v846_v6 = vadd.f32 %v2197_v61, %v2297_v36  ;;  %v1162_v9 = vmul.f32 %v1154_v53, %v850_v18 }
 0x27c   : > { %v1165_v49 = vpack.c.bf16 %v1161_v38, %v1157_v11  ;;  %v1159_v54 = vmul.f32 %v1151_v2, %v848_v26 }
 0x27d   : > { %v1155_v21 = vmul.f32 %v1147_v60, %v947_v41  ;;  %v1158_v43 = vmul.f32 %v1150_v62, %v846_v6 }
 0x27e   : > { %1463 = vmatprep.mubr.bf16.mxu0 %v1165_v49 }
 0x27f   : > { %v1163_v10 = vmul.f32 %v1155_v21, %v852_v20  ;;  %1464 = vmatmul.mubr.bf16.vlgmr.msra.gmra.mxu0 %v1164_v3  ;;  %v1166_v63 = vpack.c.bf16 %v1162_v9, %v1158_v43 }
 0x281   : > { %v1167_v5 = vpack.c.bf16 %v1163_v10, %v1159_v54 }
 0x283   : > { %1504 = vmatprep.mubr.bf16.mxu1 %v1167_v5 }
 0x284   : > { %1505 = vmatmul.mubr.bf16.vlgmr.msra.gmra.mxu1 %v1166_v63 }
 0x33f   : > { %v1713_v0 = vpop.f32.mrf.mxu0 }
 0x341   : > { %v1714_v28 = vpop.f32.mrf.mxu0 }
 0x342   : > { %v1715_v12 = vadd.f32 %v1714_v28, %v1713_v0 }
 0x343   : > { %v1716_v61 = vpop.f32.mrf.mxu0 }
 0x344   : > { %v1735_v36 = vpop.f32.mrf.mxu1  ;;  %v1466_v15 = vadd.f32 %v1715_v12, %v1662_v13 }
 0x345   : > { %v1717_v17 = vpop.f32.mrf.mxu0 }
 0x346   : > { %v1736_v46 = vpop.f32.mrf.mxu1  ;;  %v1718_v22 = vadd.f32 %v1717_v17, %v1716_v61 }
 0x347   : > { %v1737_v32 = vadd.f32 %v1736_v46, %v1735_v36 }
 0x348   : > { %v1738_v59 = vpop.f32.mrf.mxu1  ;;  %v1469_v39 = vadd.f32 %v1718_v22, %v1662_v13 }
 0x349   : > { %v1507_v23 = vadd.f32 %v1737_v32, %v1466_v15 }
 0x34a   : > { %v1739_v47 = vpop.f32.mrf.mxu1 }
 0x34b   : > { %v1513_v33 = vadd.f32 %v1832_v50, %v1507_v23  ;;  %v1740_v30 = vadd.f32 %v1739_v47, %v1738_v59 }
 0x34d   : > { %1515 = vst [vmem:[%s295_s22] sm:$0xff] %v1513_v33  ;;  %v1510_v48 = vadd.f32 %v1740_v30, %v1469_v39 }
 0x34f   : > { %v1514_v1 = vadd.f32 %v1833_v34, %v1510_v48 }
 0x351   : > { %1516 = vst [vmem:[%s295_s22 + $0x8] sm:$0xff] %v1514_v1 }
 0x352 PF: > { %s18_s24 = sadd.s32 1, %s1870_s24  }
 0x353   : > { %p15_p1 = scmp.ge.s32.totalorder %s18_s24, 4  }
 0x355   :  { %17 = sbr.rel (!%p15_p1) target bundleno = 1 (0x1), region = 83 }
 0x35a   :  { %1539 = vsyncpa [#allocation3], 1 }
 0x35b   :  { %1541 = vsyncpa [#allocation3 + $0x1], 1 }

</bundles_post_ra>
